<compile_context>
chip_gen: v7x
topology: tpu7x:2x2x1
jax: 0.10.0
libtpu: 0.0.40
codegen_flags: <defaults>
</compile_context>

<pallas_src>
import jax
import jax.numpy as jnp
from jax.experimental import pallas as pl
from jax.experimental.pallas import tpu as pltpu  # noqa: F401  (TPU backend)

LANE = 128       # TPU vreg lane width; all feature dims are padded to this.
SUBLANE = 8      # sublane granularity; row blocks are padded to a multiple.
BATCH_PAD = SUBLANE  # per-position sample block in the fc stage.


# ------------------------------ small helpers -------------------------------

def _round_up(x, m):
    return (x + m - 1) // m * m


def _pad_axis(x, axis, target):
    if x.shape[axis] >= target:
        return x
    cfg = [(0, 0)] * x.ndim
    cfg[axis] = (0, target - x.shape[axis])
    return jnp.pad(x, cfg)


def _full_spec(a):
    # whole array as a single VMEM block (block_shape == array shape)
    return pl.BlockSpec(a.shape, lambda: (0,) * a.ndim)


# ------------------------------ Pallas kernels ------------------------------

def _conv_relu_pool_kernel(p_ref, w_ref, b_ref, o_ref):
    """conv (as im2col matmul) + bias + ReLU + 2x2 maxpool.

    p: (4*M, K) im2col patches, rows grouped by 2x2-pool tap
    w: (K, 128), b: (1, 128)      (lane-padded channels)
    o: (M, 128) = maxpool(relu(conv))
    """
    y = jnp.dot(p_ref[...], w_ref[...], preferred_element_type=jnp.float32)
    y = jnp.maximum(y + b_ref[...], 0.0)
    m = o_ref.shape[0]                     # multiple of 8 -> aligned slices
    o_ref[...] = jnp.maximum(jnp.maximum(y[0 * m:1 * m], y[1 * m:2 * m]),
                             jnp.maximum(y[2 * m:3 * m], y[3 * m:4 * m]))


def _conv_pool_fc_kernel(p_ref, w2_ref, b2_ref, wf1_ref, bf1_ref,
                         wf2_ref, bf2_ref, wf3_ref, bf3_ref, o_ref):
    """conv2 + ReLU + 2x2 maxpool + fc1/fc2/fc3, all resident in VMEM.

    p:   (4*Mblk, K2)  im2col patches, rows ordered (pool-tap, position, n_pad)
    w2:  (K2, 128), b2: (1, 128)
    wf1: (n_pos*128, 128)  per-spatial-position blocks of fc1 weights
    wf2, wf3: (128, 128);  bf1, bf2, bf3: (1, 128)
    o:   (BATCH_PAD, 128)  logits (first 10 lanes / first `batch` rows real)
    """
    mblk = p_ref.shape[0] // 4
    bpad = o_ref.shape[0]
    n_pos = wf1_ref.shape[0] // LANE

    # conv2 + bias + relu (single big MXU dot: RHS loaded once)
    y = jnp.dot(p_ref[...], w2_ref[...], preferred_element_type=jnp.float32)
    y = jnp.maximum(y + b2_ref[...], 0.0)

    # 2x2 maxpool == elementwise max over the four tap row-blocks.
    # Rows of `pooled` are ordered (spatial position, padded sample); rows of
    # padded samples carry garbage that only lands in discarded output rows.
    pooled = jnp.maximum(jnp.maximum(y[0:mblk], y[mblk:2 * mblk]),
                         jnp.maximum(y[2 * mblk:3 * mblk], y[3 * mblk:4 * mblk]))

    # fc1 as a sum of per-position (8,128)@(128,128) dots: consumes the pooled
    # map directly; every slice is sublane-aligned (bpad == 8).
    h1 = jnp.zeros((bpad, LANE), jnp.float32)
    for pos in range(n_pos):
        h1 = h1 + jnp.dot(pooled[pos * bpad:(pos + 1) * bpad, :],
                          wf1_ref[pos * LANE:(pos + 1) * LANE, :],
                          preferred_element_type=jnp.float32)
    h1 = jnp.maximum(h1 + bf1_ref[...], 0.0)

    h2 = jnp.dot(h1, wf2_ref[...], preferred_element_type=jnp.float32)
    h2 = jnp.maximum(h2 + bf2_ref[...], 0.0)

    o_ref[...] = (jnp.dot(h2, wf3_ref[...], preferred_element_type=jnp.float32)
                  + bf3_ref[...])


# ------------------------------ kernel wrappers ------------------------------

def conv_relu_pool(patches, w_pad, b_pad):
    m = patches.shape[0] // 4
    p = _pad_axis(patches.astype(jnp.float32), 1, w_pad.shape[0])
    return pl.pallas_call(
        _conv_relu_pool_kernel,
        out_shape=jax.ShapeDtypeStruct((m, LANE), jnp.float32),
        in_specs=[_full_spec(p), _full_spec(w_pad), _full_spec(b_pad)],
        out_specs=pl.BlockSpec((m, LANE), lambda: (0, 0)),
    )(p, w_pad, b_pad)


def conv_pool_fc(patches, prep):
    p = _pad_axis(patches.astype(jnp.float32), 1, prep["w2"].shape[0])
    args = (p, prep["w2"], prep["b2"], prep["wf1"], prep["bf1"],
            prep["wf2"], prep["bf2"], prep["wf3"], prep["bf3"])
    return pl.pallas_call(
        _conv_pool_fc_kernel,
        out_shape=jax.ShapeDtypeStruct((BATCH_PAD, LANE), jnp.float32),
        in_specs=[_full_spec(a) for a in args],
        out_specs=pl.BlockSpec((BATCH_PAD, LANE), lambda: (0, 0)),
    )(*args)


# --------------------------------- glue --------------------------------------

def _im2col(x, k):
    """x: (N, H, W, C) -> (N, Ho, Wo, k*k*C); patch flattened in (kh, kw, c)
    order (matches the conv-weight flattening in prepare_params)."""
    n, h, w, c = x.shape
    ho, wo = h - k + 1, w - k + 1
    cols = [x[:, i:i + ho, j:j + wo, :] for i in range(k) for j in range(k)]
    p = jnp.stack(cols, axis=3)                 # (N, Ho, Wo, k*k, C)
    return p.reshape(n, ho, wo, k * k * c)


def _tap_group_stage1(p):
    """p: (N, Ho, Wo, K) -> (4*Mblk, K); rows per tap ordered (n, hp, wp),
    each tap block zero-padded to a multiple of 8 rows."""
    n, ho, wo, k = p.shape
    hp, wp = ho // 2, wo // 2
    taps = [p[:, a::2, b::2, :] for a in (0, 1) for b in (0, 1)]
    t = jnp.stack(taps, axis=0).reshape(4, n * hp * wp, k)
    mblk = _round_up(n * hp * wp, SUBLANE)
    t = _pad_axis(t, 1, mblk)
    return t.reshape(4 * mblk, k), mblk


def _tap_group_stage2(p, batch_pad):
    """p: (N, Ho, Wo, K) -> (4*Mblk, K); rows per tap ordered
    (position, padded sample) so every per-position block is 8-row aligned."""
    n, ho, wo, k = p.shape
    hp, wp = ho // 2, wo // 2
    taps = [p[:, a::2, b::2, :] for a in (0, 1) for b in (0, 1)]
    t = jnp.stack(taps, axis=0)                 # (4, N, Hp, Wp, K)
    t = jnp.transpose(t, (0, 2, 3, 1, 4))       # (4, Hp, Wp, N, K)
    t = _pad_axis(t, 3, batch_pad)              # (4, Hp, Wp, Bp, K)
    mblk = hp * wp * batch_pad
    return t.reshape(4 * mblk, k), mblk


# -------------------------------- parameters ---------------------------------

def init_params(key):
    """Parameters in PyTorch-native layouts (Conv2d OIHW, Linear (out, in))."""
    ks = jax.random.split(key, 10)
    s = 0.05
    return {
        "conv1_w": jax.random.normal(ks[0], (6, 3, 5, 5), jnp.float32) * s,
        "conv1_b": jax.random.normal(ks[1], (6,), jnp.float32) * s,
        "conv2_w": jax.random.normal(ks[2], (16, 6, 5, 5), jnp.float32) * s,
        "conv2_b": jax.random.normal(ks[3], (16,), jnp.float32) * s,
        "fc1_w": jax.random.normal(ks[4], (120, 400), jnp.float32) * s,
        "fc1_b": jax.random.normal(ks[5], (120,), jnp.float32) * s,
        "fc2_w": jax.random.normal(ks[6], (84, 120), jnp.float32) * s,
        "fc2_b": jax.random.normal(ks[7], (84,), jnp.float32) * s,
        "fc3_w": jax.random.normal(ks[8], (10, 84), jnp.float32) * s,
        "fc3_b": jax.random.normal(ks[9], (10,), jnp.float32) * s,
    }


def prepare_params(params):
    """One-time conversion from PyTorch layouts to lane-dense kernel layouts:
    pad every channel/feature dim to 128 lanes, pad contraction dims to a
    multiple of 128, and permute fc1 into per-spatial-position row blocks so
    the NCHW flatten/transpose disappears from the forward pass."""
    def conv_w(w):                           # (O, Cin, KH, KW) -> (K_pad, 128)
        o, c, kh, kw = w.shape
        wf = jnp.transpose(w, (2, 3, 1, 0)).reshape(kh * kw * c, o)
        return _pad_axis(_pad_axis(wf, 0, _round_up(kh * kw * c, LANE)), 1, LANE)

    def vec(b):                              # (F,) -> (1, 128)
        return _pad_axis(b.reshape(1, -1).astype(jnp.float32), 1, LANE)

    def fc_w(w):                             # (out, in) -> (in_pad, out_pad)
        return _pad_axis(_pad_axis(jnp.transpose(w), 0, LANE), 1, LANE)

    # fc1: torch flatten order of the (16, 5, 5) map is (c, h, w).  Regroup
    # into 25 per-position blocks of 128 rows, row index inside a block = c.
    wf1 = params["fc1_w"].reshape(120, 16, 25)         # (out, c, pos)
    wf1 = jnp.transpose(wf1, (2, 1, 0))                # (pos, c, out)
    wf1 = _pad_axis(_pad_axis(wf1, 1, LANE), 2, LANE)  # (25, 128, 128)
    wf1_stack = wf1.reshape(25 * LANE, LANE)

    return {
        "w1": conv_w(params["conv1_w"]), "b1": vec(params["conv1_b"]),
        "w2": conv_w(params["conv2_w"]), "b2": vec(params["conv2_b"]),
        "wf1": wf1_stack, "bf1": vec(params["fc1_b"]),
        "wf2": fc_w(params["fc2_w"]), "bf2": vec(params["fc2_b"]),
        "wf3": fc_w(params["fc3_w"]), "bf3": vec(params["fc3_b"]),
    }


# -------------------------------- forward pass --------------------------------

def net_forward(x_nchw, prep):
    n = x_nchw.shape[0]
    x = jnp.transpose(x_nchw, (0, 2, 3, 1)).astype(jnp.float32)  # (N,32,32,3)

    # stage 1: conv1 + ReLU + 2x2 maxpool, fused in one kernel
    p1, _ = _tap_group_stage1(_im2col(x, 5))                     # (4*M1, 75)
    y1 = conv_relu_pool(p1, prep["w1"], prep["b1"])              # (M1, 128)
    y1 = y1[:n * 14 * 14].reshape(n, 14, 14, LANE)[..., :6]      # (N,14,14,6)

    # stage 2: conv2 + ReLU + pool + fc1/fc2/fc3, fused in one kernel
    p2, _ = _tap_group_stage2(_im2col(y1, 5), BATCH_PAD)         # (4*M2, 150)
    logits = conv_pool_fc(p2, prep)                              # (8, 128)
    return logits[:n, :10]


# pure-JAX reference with PyTorch semantics / layouts, for a sanity check
def net_forward_ref(x_nchw, params):
    x = x_nchw.astype(jnp.float32)

    def conv_relu(x, w, b):
        y = jax.lax.conv_general_dilated(
            x, w, window_strides=(1, 1), padding="VALID",
            dimension_numbers=("NCHW", "OIHW", "NCHW"))
        return jnp.maximum(y + b.reshape(1, -1, 1, 1), 0.0)

    def pool(x):
        n, c, h, w = x.shape
        return jnp.max(x.reshape(n, c, h // 2, 2, w // 2, 2), axis=(3, 5))

    y = pool(conv_relu(x, params["conv1_w"], params["conv1_b"]))
    y = pool(conv_relu(y, params["conv2_w"], params["conv2_b"]))
    y = y.reshape(y.shape[0], -1)                         # torch.flatten(x, 1)
    y = jnp.maximum(y @ params["fc1_w"].T + params["fc1_b"], 0.0)
    y = jnp.maximum(y @ params["fc2_w"].T + params["fc2_b"], 0.0)
    return y @ params["fc3_w"].T + params["fc3_b"]


if __name__ == "__main__":
    key = jax.random.PRNGKey(0)
    k_x, k_p = jax.random.split(key)

    # batch=2; spatial must be 32x32 with 3 channels for fc1's 16*5*5 input.
    x = jax.random.normal(k_x, (2, 3, 32, 32), jnp.float32)
    params = init_params(k_p)
    prep = prepare_params(params)

    out = jax.jit(net_forward)(x, prep)
    out = jax.block_until_ready(out)
    assert out.shape == (2, 10), out.shape

    ref = net_forward_ref(x, params)
    assert jnp.allclose(out, ref, rtol=2e-2, atol=2e-2), (out, ref)

    print("KERNEL_OK")
</pallas_src>

<mosaic_0001>
module attributes {stable_mosaic.version = 11 : i64} {
  func.func @_conv_relu_pool_kernel(%arg0: memref<1568x128xf32, #tpu.memory_space<vmem>>, %arg1: memref<128x128xf32, #tpu.memory_space<vmem>>, %arg2: memref<1x128xf32, #tpu.memory_space<vmem>>, %arg3: memref<392x128xf32, #tpu.memory_space<vmem>>) attributes {dimension_semantics = [], scalar_prefetch = 0 : i64, scratch_operands = 0 : i64, tpu.core_type = #tpu.core_type<tc>} {
    %c0 = arith.constant 0 : index
    %c0_0 = arith.constant 0 : index
    %0 = vector.load %arg0[%c0, %c0_0] : memref<1568x128xf32, #tpu.memory_space<vmem>>, vector<1568x128xf32>
    %c0_1 = arith.constant 0 : index
    %c0_2 = arith.constant 0 : index
    %1 = vector.load %arg1[%c0_1, %c0_2] : memref<128x128xf32, #tpu.memory_space<vmem>>, vector<128x128xf32>
    %cst = arith.constant dense<0.000000e+00> : vector<1568x128xf32>
    %2 = tpu.matmul %0, %1, %cst {dimension_numbers = #tpu.dot_dimension_numbers<[1], [0], [0], [1], [0, 0, 1, 1], [], []>} : vector<1568x128xf32>, vector<128x128xf32>, vector<1568x128xf32> -> vector<1568x128xf32>
    %c0_3 = arith.constant 0 : index
    %c0_4 = arith.constant 0 : index
    %3 = vector.load %arg2[%c0_3, %c0_4] : memref<1x128xf32, #tpu.memory_space<vmem>>, vector<1x128xf32>
    %4 = vector.broadcast %3 : vector<1x128xf32> to vector<1568x128xf32>
    %5 = arith.addf %2, %4 : vector<1568x128xf32>
    %cst_5 = arith.constant 0.000000e+00 : f32
    %6 = vector.broadcast %cst_5 : f32 to vector<1568x128xf32>
    %7 = arith.maximumf %5, %6 : vector<1568x128xf32>
    %8 = vector.extract_strided_slice %7 {offsets = [0, 0], sizes = [392, 128], strides = [1, 1]} : vector<1568x128xf32> to vector<392x128xf32>
    %9 = vector.extract_strided_slice %7 {offsets = [392, 0], sizes = [392, 128], strides = [1, 1]} : vector<1568x128xf32> to vector<392x128xf32>
    %10 = arith.maximumf %8, %9 : vector<392x128xf32>
    %11 = vector.extract_strided_slice %7 {offsets = [784, 0], sizes = [392, 128], strides = [1, 1]} : vector<1568x128xf32> to vector<392x128xf32>
    %12 = vector.extract_strided_slice %7 {offsets = [1176, 0], sizes = [392, 128], strides = [1, 1]} : vector<1568x128xf32> to vector<392x128xf32>
    %13 = arith.maximumf %11, %12 : vector<392x128xf32>
    %14 = arith.maximumf %10, %13 : vector<392x128xf32>
    %c0_6 = arith.constant 0 : index
    %c0_7 = arith.constant 0 : index
    %15 = vector.load %arg3[%c0_6, %c0_7] : memref<392x128xf32, #tpu.memory_space<vmem>>, vector<392x128xf32>
    tpu.vector_store %arg3[%c0_6, %c0_7], %14 {strides = array<i32>} : memref<392x128xf32, #tpu.memory_space<vmem>>, vector<392x128xf32>,
    return
  }
}

module attributes {stable_mosaic.version = 11 : i64} {
  func.func @_conv_pool_fc_kernel(%arg0: memref<800x256xf32, #tpu.memory_space<vmem>>, %arg1: memref<256x128xf32, #tpu.memory_space<vmem>>, %arg2: memref<1x128xf32, #tpu.memory_space<vmem>>, %arg3: memref<3200x128xf32, #tpu.memory_space<vmem>>, %arg4: memref<1x128xf32, #tpu.memory_space<vmem>>, %arg5: memref<128x128xf32, #tpu.memory_space<vmem>>, %arg6: memref<1x128xf32, #tpu.memory_space<vmem>>, %arg7: memref<128x128xf32, #tpu.memory_space<vmem>>, %arg8: memref<1x128xf32, #tpu.memory_space<vmem>>, %arg9: memref<8x128xf32, #tpu.memory_space<vmem>>) attributes {dimension_semantics = [], scalar_prefetch = 0 : i64, scratch_operands = 0 : i64, tpu.core_type = #tpu.core_type<tc>} {
    %c0 = arith.constant 0 : index
    %c0_0 = arith.constant 0 : index
    %0 = vector.load %arg0[%c0, %c0_0] : memref<800x256xf32, #tpu.memory_space<vmem>>, vector<800x256xf32>
    %c0_1 = arith.constant 0 : index
    %c0_2 = arith.constant 0 : index
    %1 = vector.load %arg1[%c0_1, %c0_2] : memref<256x128xf32, #tpu.memory_space<vmem>>, vector<256x128xf32>
    %cst = arith.constant dense<0.000000e+00> : vector<800x128xf32>
    %2 = tpu.matmul %0, %1, %cst {dimension_numbers = #tpu.dot_dimension_numbers<[1], [0], [0], [1], [0, 0, 1, 1], [], []>} : vector<800x256xf32>, vector<256x128xf32>, vector<800x128xf32> -> vector<800x128xf32>
    %c0_3 = arith.constant 0 : index
    %c0_4 = arith.constant 0 : index
    %3 = vector.load %arg2[%c0_3, %c0_4] : memref<1x128xf32, #tpu.memory_space<vmem>>, vector<1x128xf32>
    %4 = vector.broadcast %3 : vector<1x128xf32> to vector<800x128xf32>
    %5 = arith.addf %2, %4 : vector<800x128xf32>
    %cst_5 = arith.constant 0.000000e+00 : f32
    %6 = vector.broadcast %cst_5 : f32 to vector<800x128xf32>
    %7 = arith.maximumf %5, %6 : vector<800x128xf32>
    %8 = vector.extract_strided_slice %7 {offsets = [0, 0], sizes = [200, 128], strides = [1, 1]} : vector<800x128xf32> to vector<200x128xf32>
    %9 = vector.extract_strided_slice %7 {offsets = [200, 0], sizes = [200, 128], strides = [1, 1]} : vector<800x128xf32> to vector<200x128xf32>
    %10 = arith.maximumf %8, %9 : vector<200x128xf32>
    %11 = vector.extract_strided_slice %7 {offsets = [400, 0], sizes = [200, 128], strides = [1, 1]} : vector<800x128xf32> to vector<200x128xf32>
    %12 = vector.extract_strided_slice %7 {offsets = [600, 0], sizes = [200, 128], strides = [1, 1]} : vector<800x128xf32> to vector<200x128xf32>
    %13 = arith.maximumf %11, %12 : vector<200x128xf32>
    %14 = arith.maximumf %10, %13 : vector<200x128xf32>
    %cst_6 = arith.constant 0.000000e+00 : f32
    %15 = vector.broadcast %cst_6 : f32 to vector<8x128xf32>
    %16 = vector.extract_strided_slice %14 {offsets = [0, 0], sizes = [8, 128], strides = [1, 1]} : vector<200x128xf32> to vector<8x128xf32>
    %c0_7 = arith.constant 0 : index
    %c0_8 = arith.constant 0 : index
    %17 = vector.load %arg3[%c0_7, %c0_8] : memref<3200x128xf32, #tpu.memory_space<vmem>>, vector<128x128xf32>
    %cst_9 = arith.constant dense<0.000000e+00> : vector<8x128xf32>
    %18 = tpu.matmul %16, %17, %cst_9 {dimension_numbers = #tpu.dot_dimension_numbers<[1], [0], [0], [1], [0, 0, 1, 1], [], []>} : vector<8x128xf32>, vector<128x128xf32>, vector<8x128xf32> -> vector<8x128xf32>
    %19 = arith.addf %15, %18 : vector<8x128xf32>
    %20 = vector.extract_strided_slice %14 {offsets = [8, 0], sizes = [8, 128], strides = [1, 1]} : vector<200x128xf32> to vector<8x128xf32>
    %c128 = arith.constant 128 : index
    %c0_10 = arith.constant 0 : index
    %21 = vector.load %arg3[%c128, %c0_10] : memref<3200x128xf32, #tpu.memory_space<vmem>>, vector<128x128xf32>
    %cst_11 = arith.constant dense<0.000000e+00> : vector<8x128xf32>
    %22 = tpu.matmul %20, %21, %cst_11 {dimension_numbers = #tpu.dot_dimension_numbers<[1], [0], [0], [1], [0, 0, 1, 1], [], []>} : vector<8x128xf32>, vector<128x128xf32>, vector<8x128xf32> -> vector<8x128xf32>
    %23 = arith.addf %19, %22 : vector<8x128xf32>
    %24 = vector.extract_strided_slice %14 {offsets = [16, 0], sizes = [8, 128], strides = [1, 1]} : vector<200x128xf32> to vector<8x128xf32>
    %c256 = arith.constant 256 : index
    %c0_12 = arith.constant 0 : index
    %25 = vector.load %arg3[%c256, %c0_12] : memref<3200x128xf32, #tpu.memory_space<vmem>>, vector<128x128xf32>
    %cst_13 = arith.constant dense<0.000000e+00> : vector<8x128xf32>
    %26 = tpu.matmul %24, %25, %cst_13 {dimension_numbers = #tpu.dot_dimension_numbers<[1], [0], [0], [1], [0, 0, 1, 1], [], []>} : vector<8x128xf32>, vector<128x128xf32>, vector<8x128xf32> -> vector<8x128xf32>
    %27 = arith.addf %23, %26 : vector<8x128xf32>
    %28 = vector.extract_strided_slice %14 {offsets = [24, 0], sizes = [8, 128], strides = [1, 1]} : vector<200x128xf32> to vector<8x128xf32>
    %c384 = arith.constant 384 : index
    %c0_14 = arith.constant 0 : index
    %29 = vector.load %arg3[%c384, %c0_14] : memref<3200x128xf32, #tpu.memory_space<vmem>>, vector<128x128xf32>
    %cst_15 = arith.constant dense<0.000000e+00> : vector<8x128xf32>
    %30 = tpu.matmul %28, %29, %cst_15 {dimension_numbers = #tpu.dot_dimension_numbers<[1], [0], [0], [1], [0, 0, 1, 1], [], []>} : vector<8x128xf32>, vector<128x128xf32>, vector<8x128xf32> -> vector<8x128xf32>
    %31 = arith.addf %27, %30 : vector<8x128xf32>
    %32 = vector.extract_strided_slice %14 {offsets = [32, 0], sizes = [8, 128], strides = [1, 1]} : vector<200x128xf32> to vector<8x128xf32>
    %c512 = arith.constant 512 : index
    %c0_16 = arith.constant 0 : index
    %33 = vector.load %arg3[%c512, %c0_16] : memref<3200x128xf32, #tpu.memory_space<vmem>>, vector<128x128xf32>
    %cst_17 = arith.constant dense<0.000000e+00> : vector<8x128xf32>
    %34 = tpu.matmul %32, %33, %cst_17 {dimension_numbers = #tpu.dot_dimension_numbers<[1], [0], [0], [1], [0, 0, 1, 1], [], []>} : vector<8x128xf32>, vector<128x128xf32>, vector<8x128xf32> -> vector<8x128xf32>
    %35 = arith.addf %31, %34 : vector<8x128xf32>
    %36 = vector.extract_strided_slice %14 {offsets = [40, 0], sizes = [8, 128], strides = [1, 1]} : vector<200x128xf32> to vector<8x128xf32>
    %c640 = arith.constant 640 : index
    %c0_18 = arith.constant 0 : index
    %37 = vector.load %arg3[%c640, %c0_18] : memref<3200x128xf32, #tpu.memory_space<vmem>>, vector<128x128xf32>
    %cst_19 = arith.constant dense<0.000000e+00> : vector<8x128xf32>
    %38 = tpu.matmul %36, %37, %cst_19 {dimension_numbers = #tpu.dot_dimension_numbers<[1], [0], [0], [1], [0, 0, 1, 1], [], []>} : vector<8x128xf32>, vector<128x128xf32>, vector<8x128xf32> -> vector<8x128xf32>
    %39 = arith.addf %35, %38 : vector<8x128xf32>
    %40 = vector.extract_strided_slice %14 {offsets = [48, 0], sizes = [8, 128], strides = [1, 1]} : vector<200x128xf32> to vector<8x128xf32>
    %c768 = arith.constant 768 : index
    %c0_20 = arith.constant 0 : index
    %41 = vector.load %arg3[%c768, %c0_20] : memref<3200x128xf32, #tpu.memory_space<vmem>>, vector<128x128xf32>
    %cst_21 = arith.constant dense<0.000000e+00> : vector<8x128xf32>
    %42 = tpu.matmul %40, %41, %cst_21 {dimension_numbers = #tpu.dot_dimension_numbers<[1], [0], [0], [1], [0, 0, 1, 1], [], []>} : vector<8x128xf32>, vector<128x128xf32>, vector<8x128xf32> -> vector<8x128xf32>
    %43 = arith.addf %39, %42 : vector<8x128xf32>
    %44 = vector.extract_strided_slice %14 {offsets = [56, 0], sizes = [8, 128], strides = [1, 1]} : vector<200x128xf32> to vector<8x128xf32>
    %c896 = arith.constant 896 : index
    %c0_22 = arith.constant 0 : index
    %45 = vector.load %arg3[%c896, %c0_22] : memref<3200x128xf32, #tpu.memory_space<vmem>>, vector<128x128xf32>
    %cst_23 = arith.constant dense<0.000000e+00> : vector<8x128xf32>
    %46 = tpu.matmul %44, %45, %cst_23 {dimension_numbers = #tpu.dot_dimension_numbers<[1], [0], [0], [1], [0, 0, 1, 1], [], []>} : vector<8x128xf32>, vector<128x128xf32>, vector<8x128xf32> -> vector<8x128xf32>
    %47 = arith.addf %43, %46 : vector<8x128xf32>
    %48 = vector.extract_strided_slice %14 {offsets = [64, 0], sizes = [8, 128], strides = [1, 1]} : vector<200x128xf32> to vector<8x128xf32>
    %c1024 = arith.constant 1024 : index
    %c0_24 = arith.constant 0 : index
    %49 = vector.load %arg3[%c1024, %c0_24] : memref<3200x128xf32, #tpu.memory_space<vmem>>, vector<128x128xf32>
    %cst_25 = arith.constant dense<0.000000e+00> : vector<8x128xf32>
    %50 = tpu.matmul %48, %49, %cst_25 {dimension_numbers = #tpu.dot_dimension_numbers<[1], [0], [0], [1], [0, 0, 1, 1], [], []>} : vector<8x128xf32>, vector<128x128xf32>, vector<8x128xf32> -> vector<8x128xf32>
    %51 = arith.addf %47, %50 : vector<8x128xf32>
    %52 = vector.extract_strided_slice %14 {offsets = [72, 0], sizes = [8, 128], strides = [1, 1]} : vector<200x128xf32> to vector<8x128xf32>
    %c1152 = arith.constant 1152 : index
    %c0_26 = arith.constant 0 : index
    %53 = vector.load %arg3[%c1152, %c0_26] : memref<3200x128xf32, #tpu.memory_space<vmem>>, vector<128x128xf32>
    %cst_27 = arith.constant dense<0.000000e+00> : vector<8x128xf32>
    %54 = tpu.matmul %52, %53, %cst_27 {dimension_numbers = #tpu.dot_dimension_numbers<[1], [0], [0], [1], [0, 0, 1, 1], [], []>} : vector<8x128xf32>, vector<128x128xf32>, vector<8x128xf32> -> vector<8x128xf32>
    %55 = arith.addf %51, %54 : vector<8x128xf32>
    %56 = vector.extract_strided_slice %14 {offsets = [80, 0], sizes = [8, 128], strides = [1, 1]} : vector<200x128xf32> to vector<8x128xf32>
    %c1280 = arith.constant 1280 : index
    %c0_28 = arith.constant 0 : index
    %57 = vector.load %arg3[%c1280, %c0_28] : memref<3200x128xf32, #tpu.memory_space<vmem>>, vector<128x128xf32>
    %cst_29 = arith.constant dense<0.000000e+00> : vector<8x128xf32>
    %58 = tpu.matmul %56, %57, %cst_29 {dimension_numbers = #tpu.dot_dimension_numbers<[1], [0], [0], [1], [0, 0, 1, 1], [], []>} : vector<8x128xf32>, vector<128x128xf32>, vector<8x128xf32> -> vector<8x128xf32>
    %59 = arith.addf %55, %58 : vector<8x128xf32>
    %60 = vector.extract_strided_slice %14 {offsets = [88, 0], sizes = [8, 128], strides = [1, 1]} : vector<200x128xf32> to vector<8x128xf32>
    %c1408 = arith.constant 1408 : index
    %c0_30 = arith.constant 0 : index
    %61 = vector.load %arg3[%c1408, %c0_30] : memref<3200x128xf32, #tpu.memory_space<vmem>>, vector<128x128xf32>
    %cst_31 = arith.constant dense<0.000000e+00> : vector<8x128xf32>
    %62 = tpu.matmul %60, %61, %cst_31 {dimension_numbers = #tpu.dot_dimension_numbers<[1], [0], [0], [1], [0, 0, 1, 1], [], []>} : vector<8x128xf32>, vector<128x128xf32>, vector<8x128xf32> -> vector<8x128xf32>
    %63 = arith.addf %59, %62 : vector<8x128xf32>
    %64 = vector.extract_strided_slice %14 {offsets = [96, 0], sizes = [8, 128], strides = [1, 1]} : vector<200x128xf32> to vector<8x128xf32>
    %c1536 = arith.constant 1536 : index
    %c0_32 = arith.constant 0 : index
    %65 = vector.load %arg3[%c1536, %c0_32] : memref<3200x128xf32, #tpu.memory_space<vmem>>, vector<128x128xf32>
    %cst_33 = arith.constant dense<0.000000e+00> : vector<8x128xf32>
    %66 = tpu.matmul %64, %65, %cst_33 {dimension_numbers = #tpu.dot_dimension_numbers<[1], [0], [0], [1], [0, 0, 1, 1], [], []>} : vector<8x128xf32>, vector<128x128xf32>, vector<8x128xf32> -> vector<8x128xf32>
    %67 = arith.addf %63, %66 : vector<8x128xf32>
    %68 = vector.extract_strided_slice %14 {offsets = [104, 0], sizes = [8, 128], strides = [1, 1]} : vector<200x128xf32> to vector<8x128xf32>
    %c1664 = arith.constant 1664 : index
    %c0_34 = arith.constant 0 : index
    %69 = vector.load %arg3[%c1664, %c0_34] : memref<3200x128xf32, #tpu.memory_space<vmem>>, vector<128x128xf32>
    %cst_35 = arith.constant dense<0.000000e+00> : vector<8x128xf32>
    %70 = tpu.matmul %68, %69, %cst_35 {dimension_numbers = #tpu.dot_dimension_numbers<[1], [0], [0], [1], [0, 0, 1, 1], [], []>} : vector<8x128xf32>, vector<128x128xf32>, vector<8x128xf32> -> vector<8x128xf32>
    %71 = arith.addf %67, %70 : vector<8x128xf32>
    %72 = vector.extract_strided_slice %14 {offsets = [112, 0], sizes = [8, 128], strides = [1, 1]} : vector<200x128xf32> to vector<8x128xf32>
    %c1792 = arith.constant 1792 : index
    %c0_36 = arith.constant 0 : index
    %73 = vector.load %arg3[%c1792, %c0_36] : memref<3200x128xf32, #tpu.memory_space<vmem>>, vector<128x128xf32>
    %cst_37 = arith.constant dense<0.000000e+00> : vector<8x128xf32>
    %74 = tpu.matmul %72, %73, %cst_37 {dimension_numbers = #tpu.dot_dimension_numbers<[1], [0], [0], [1], [0, 0, 1, 1], [], []>} : vector<8x128xf32>, vector<128x128xf32>, vector<8x128xf32> -> vector<8x128xf32>
    %75 = arith.addf %71, %74 : vector<8x128xf32>
    %76 = vector.extract_strided_slice %14 {offsets = [120, 0], sizes = [8, 128], strides = [1, 1]} : vector<200x128xf32> to vector<8x128xf32>
    %c1920 = arith.constant 1920 : index
    %c0_38 = arith.constant 0 : index
    %77 = vector.load %arg3[%c1920, %c0_38] : memref<3200x128xf32, #tpu.memory_space<vmem>>, vector<128x128xf32>
    %cst_39 = arith.constant dense<0.000000e+00> : vector<8x128xf32>
    %78 = tpu.matmul %76, %77, %cst_39 {dimension_numbers = #tpu.dot_dimension_numbers<[1], [0], [0], [1], [0, 0, 1, 1], [], []>} : vector<8x128xf32>, vector<128x128xf32>, vector<8x128xf32> -> vector<8x128xf32>
    %79 = arith.addf %75, %78 : vector<8x128xf32>
    %80 = vector.extract_strided_slice %14 {offsets = [128, 0], sizes = [8, 128], strides = [1, 1]} : vector<200x128xf32> to vector<8x128xf32>
    %c2048 = arith.constant 2048 : index
    %c0_40 = arith.constant 0 : index
    %81 = vector.load %arg3[%c2048, %c0_40] : memref<3200x128xf32, #tpu.memory_space<vmem>>, vector<128x128xf32>
    %cst_41 = arith.constant dense<0.000000e+00> : vector<8x128xf32>
    %82 = tpu.matmul %80, %81, %cst_41 {dimension_numbers = #tpu.dot_dimension_numbers<[1], [0], [0], [1], [0, 0, 1, 1], [], []>} : vector<8x128xf32>, vector<128x128xf32>, vector<8x128xf32> -> vector<8x128xf32>
    %83 = arith.addf %79, %82 : vector<8x128xf32>
    %84 = vector.extract_strided_slice %14 {offsets = [136, 0], sizes = [8, 128], strides = [1, 1]} : vector<200x128xf32> to vector<8x128xf32>
    %c2176 = arith.constant 2176 : index
    %c0_42 = arith.constant 0 : index
    %85 = vector.load %arg3[%c2176, %c0_42] : memref<3200x128xf32, #tpu.memory_space<vmem>>, vector<128x128xf32>
    %cst_43 = arith.constant dense<0.000000e+00> : vector<8x128xf32>
    %86 = tpu.matmul %84, %85, %cst_43 {dimension_numbers = #tpu.dot_dimension_numbers<[1], [0], [0], [1], [0, 0, 1, 1], [], []>} : vector<8x128xf32>, vector<128x128xf32>, vector<8x128xf32> -> vector<8x128xf32>
    %87 = arith.addf %83, %86 : vector<8x128xf32>
    %88 = vector.extract_strided_slice %14 {offsets = [144, 0], sizes = [8, 128], strides = [1, 1]} : vector<200x128xf32> to vector<8x128xf32>
    %c2304 = arith.constant 2304 : index
    %c0_44 = arith.constant 0 : index
    %89 = vector.load %arg3[%c2304, %c0_44] : memref<3200x128xf32, #tpu.memory_space<vmem>>, vector<128x128xf32>
    %cst_45 = arith.constant dense<0.000000e+00> : vector<8x128xf32>
    %90 = tpu.matmul %88, %89, %cst_45 {dimension_numbers = #tpu.dot_dimension_numbers<[1], [0], [0], [1], [0, 0, 1, 1], [], []>} : vector<8x128xf32>, vector<128x128xf32>, vector<8x128xf32> -> vector<8x128xf32>
    %91 = arith.addf %87, %90 : vector<8x128xf32>
    %92 = vector.extract_strided_slice %14 {offsets = [152, 0], sizes = [8, 128], strides = [1, 1]} : vector<200x128xf32> to vector<8x128xf32>
    %c2432 = arith.constant 2432 : index
    %c0_46 = arith.constant 0 : index
    %93 = vector.load %arg3[%c2432, %c0_46] : memref<3200x128xf32, #tpu.memory_space<vmem>>, vector<128x128xf32>
    %cst_47 = arith.constant dense<0.000000e+00> : vector<8x128xf32>
    %94 = tpu.matmul %92, %93, %cst_47 {dimension_numbers = #tpu.dot_dimension_numbers<[1], [0], [0], [1], [0, 0, 1, 1], [], []>} : vector<8x128xf32>, vector<128x128xf32>, vector<8x128xf32> -> vector<8x128xf32>
    %95 = arith.addf %91, %94 : vector<8x128xf32>
    %96 = vector.extract_strided_slice %14 {offsets = [160, 0], sizes = [8, 128], strides = [1, 1]} : vector<200x128xf32> to vector<8x128xf32>
    %c2560 = arith.constant 2560 : index
    %c0_48 = arith.constant 0 : index
    %97 = vector.load %arg3[%c2560, %c0_48] : memref<3200x128xf32, #tpu.memory_space<vmem>>, vector<128x128xf32>
    %cst_49 = arith.constant dense<0.000000e+00> : vector<8x128xf32>
    %98 = tpu.matmul %96, %97, %cst_49 {dimension_numbers = #tpu.dot_dimension_numbers<[1], [0], [0], [1], [0, 0, 1, 1], [], []>} : vector<8x128xf32>, vector<128x128xf32>, vector<8x128xf32> -> vector<8x128xf32>
    %99 = arith.addf %95, %98 : vector<8x128xf32>
    %100 = vector.extract_strided_slice %14 {offsets = [168, 0], sizes = [8, 128], strides = [1, 1]} : vector<200x128xf32> to vector<8x128xf32>
    %c2688 = arith.constant 2688 : index
    %c0_50 = arith.constant 0 : index
    %101 = vector.load %arg3[%c2688, %c0_50] : memref<3200x128xf32, #tpu.memory_space<vmem>>, vector<128x128xf32>
    %cst_51 = arith.constant dense<0.000000e+00> : vector<8x128xf32>
    %102 = tpu.matmul %100, %101, %cst_51 {dimension_numbers = #tpu.dot_dimension_numbers<[1], [0], [0], [1], [0, 0, 1, 1], [], []>} : vector<8x128xf32>, vector<128x128xf32>, vector<8x128xf32> -> vector<8x128xf32>
    %103 = arith.addf %99, %102 : vector<8x128xf32>
    %104 = vector.extract_strided_slice %14 {offsets = [176, 0], sizes = [8, 128], strides = [1, 1]} : vector<200x128xf32> to vector<8x128xf32>
    %c2816 = arith.constant 2816 : index
    %c0_52 = arith.constant 0 : index
    %105 = vector.load %arg3[%c2816, %c0_52] : memref<3200x128xf32, #tpu.memory_space<vmem>>, vector<128x128xf32>
    %cst_53 = arith.constant dense<0.000000e+00> : vector<8x128xf32>
    %106 = tpu.matmul %104, %105, %cst_53 {dimension_numbers = #tpu.dot_dimension_numbers<[1], [0], [0], [1], [0, 0, 1, 1], [], []>} : vector<8x128xf32>, vector<128x128xf32>, vector<8x128xf32> -> vector<8x128xf32>
    %107 = arith.addf %103, %106 : vector<8x128xf32>
    %108 = vector.extract_strided_slice %14 {offsets = [184, 0], sizes = [8, 128], strides = [1, 1]} : vector<200x128xf32> to vector<8x128xf32>
    %c2944 = arith.constant 2944 : index
    %c0_54 = arith.constant 0 : index
    %109 = vector.load %arg3[%c2944, %c0_54] : memref<3200x128xf32, #tpu.memory_space<vmem>>, vector<128x128xf32>
    %cst_55 = arith.constant dense<0.000000e+00> : vector<8x128xf32>
    %110 = tpu.matmul %108, %109, %cst_55 {dimension_numbers = #tpu.dot_dimension_numbers<[1], [0], [0], [1], [0, 0, 1, 1], [], []>} : vector<8x128xf32>, vector<128x128xf32>, vector<8x128xf32> -> vector<8x128xf32>
    %111 = arith.addf %107, %110 : vector<8x128xf32>
    %112 = vector.extract_strided_slice %14 {offsets = [192, 0], sizes = [8, 128], strides = [1, 1]} : vector<200x128xf32> to vector<8x128xf32>
    %c3072 = arith.constant 3072 : index
    %c0_56 = arith.constant 0 : index
    %113 = vector.load %arg3[%c3072, %c0_56] : memref<3200x128xf32, #tpu.memory_space<vmem>>, vector<128x128xf32>
    %cst_57 = arith.constant dense<0.000000e+00> : vector<8x128xf32>
    %114 = tpu.matmul %112, %113, %cst_57 {dimension_numbers = #tpu.dot_dimension_numbers<[1], [0], [0], [1], [0, 0, 1, 1], [], []>} : vector<8x128xf32>, vector<128x128xf32>, vector<8x128xf32> -> vector<8x128xf32>
    %115 = arith.addf %111, %114 : vector<8x128xf32>
    %c0_58 = arith.constant 0 : index
    %c0_59 = arith.constant 0 : index
    %116 = vector.load %arg4[%c0_58, %c0_59] : memref<1x128xf32, #tpu.memory_space<vmem>>, vector<1x128xf32>
    %117 = vector.broadcast %116 : vector<1x128xf32> to vector<8x128xf32>
    %118 = arith.addf %115, %117 : vector<8x128xf32>
    %cst_60 = arith.constant 0.000000e+00 : f32
    %119 = vector.broadcast %cst_60 : f32 to vector<8x128xf32>
    %120 = arith.maximumf %118, %119 : vector<8x128xf32>
    %c0_61 = arith.constant 0 : index
    %c0_62 = arith.constant 0 : index
    %121 = vector.load %arg5[%c0_61, %c0_62] : memref<128x128xf32, #tpu.memory_space<vmem>>, vector<128x128xf32>
    %cst_63 = arith.constant dense<0.000000e+00> : vector<8x128xf32>
    %122 = tpu.matmul %120, %121, %cst_63 {dimension_numbers = #tpu.dot_dimension_numbers<[1], [0], [0], [1], [0, 0, 1, 1], [], []>} : vector<8x128xf32>, vector<128x128xf32>, vector<8x128xf32> -> vector<8x128xf32>
    %c0_64 = arith.constant 0 : index
    %c0_65 = arith.constant 0 : index
    %123 = vector.load %arg6[%c0_64, %c0_65] : memref<1x128xf32, #tpu.memory_space<vmem>>, vector<1x128xf32>
    %124 = vector.broadcast %123 : vector<1x128xf32> to vector<8x128xf32>
    %125 = arith.addf %122, %124 : vector<8x128xf32>
    %cst_66 = arith.constant 0.000000e+00 : f32
    %126 = vector.broadcast %cst_66 : f32 to vector<8x128xf32>
    %127 = arith.maximumf %125, %126 : vector<8x128xf32>
    %c0_67 = arith.constant 0 : index
    %c0_68 = arith.constant 0 : index
    %128 = vector.load %arg7[%c0_67, %c0_68] : memref<128x128xf32, #tpu.memory_space<vmem>>, vector<128x128xf32>
    %cst_69 = arith.constant dense<0.000000e+00> : vector<8x128xf32>
    %129 = tpu.matmul %127, %128, %cst_69 {dimension_numbers = #tpu.dot_dimension_numbers<[1], [0], [0], [1], [0, 0, 1, 1], [], []>} : vector<8x128xf32>, vector<128x128xf32>, vector<8x128xf32> -> vector<8x128xf32>
    %c0_70 = arith.constant 0 : index
    %c0_71 = arith.constant 0 : index
    %130 = vector.load %arg8[%c0_70, %c0_71] : memref<1x128xf32, #tpu.memory_space<vmem>>, vector<1x128xf32>
    %131 = vector.broadcast %130 : vector<1x128xf32> to vector<8x128xf32>
    %132 = arith.addf %129, %131 : vector<8x128xf32>
    %c0_72 = arith.constant 0 : index
    %c0_73 = arith.constant 0 : index
    %133 = vector.load %arg9[%c0_72, %c0_73] : memref<8x128xf32, #tpu.memory_space<vmem>>, vector<8x128xf32>
    tpu.vector_store %arg9[%c0_72, %c0_73], %132 {strides = array<i32>} : memref<8x128xf32, #tpu.memory_space<vmem>>, vector<8x128xf32>,
    return
  }
}

</mosaic_0001>

<bundles_post_ra>
// kernel: net_forward.2
= control target key start
LH: loop header
LB: loop body
LE: loop exit
PB: predicated region body
PF: predicated region fallthrough
CT: control target
= control target key end

     0   :  { %s4039_s1 = inlined_call_operand.vmem [shape: f32[128,128], index: 1, kind: input, shape index: {}]   ;;  %s4040_s0 = inlined_call_operand.vmem [shape: f32[1568,128], index: 0, kind: input, shape index: {}]   ;;  %s4041_s2 = inlined_call_operand.vmem [shape: f32[1,128], index: 2, kind: input, shape index: {}]   ;;  %s4042_s3 = inlined_call_operand.vmem [shape: f32[392,128], index: 3, kind: output, shape index: {}]  }
   0x1   :  { %v210_v0 = vld [vmem:[%s4039_s1] sm:$0xff]  ;;  %v211_v1 = vld [vmem:[%s4039_s1 + $0x8] sm:$0xff]  ;;  %v212_v2 = vld [vmem:[%s4039_s1 + $0x10] sm:$0xff] }
   0x2   :  { %v2213_v3 = vpack.c.bf16 %v211_v1, %v210_v0  ;;  %v213_v4 = vld [vmem:[%s4039_s1 + $0x18] sm:$0xff]  ;;  %v214_v6 = vld [vmem:[%s4039_s1 + $0x20] sm:$0xff]  ;;  %v215_v7 = vld [vmem:[%s4039_s1 + $0x28] sm:$0xff] }
   0x3   :  { %v2217_v5 = vpack.c.bf16 %v213_v4, %v212_v2  ;;  %v2221_v8 = vpack.c.bf16 %v215_v7, %v214_v6  ;;  %v14_v9 = vld [vmem:[%s4040_s0] sm:$0xff]  ;;  %v112_v10 = vld [vmem:[%s4040_s0 + $0x310] sm:$0xff]  ;;  %v217_v12 = vld [vmem:[%s4039_s1 + $0x38] sm:$0xff] }
   0x4   :  { %2214 = vmatprep.subr.bf16.mxu0 %v2213_v3  ;;  %2245 = vmatprep.subr.bf16.mxu1 %v2213_v3  ;;  %v216_v11 = vld [vmem:[%s4039_s1 + $0x30] sm:$0xff]  ;;  %v218_v14 = vld [vmem:[%s4039_s1 + $0x40] sm:$0xff]  ;;  %v219_v15 = vld [vmem:[%s4039_s1 + $0x48] sm:$0xff] }
   0x5   :  { %2216 = vmatpush3.bf16.msra.mxu0 %v2213_v3  ;;  %2253 = vmatpush3.bf16.msra.mxu1 %v2213_v3  ;;  %v2225_v13 = vpack.c.bf16 %v217_v12, %v216_v11  ;;  %v2229_v16 = vpack.c.bf16 %v219_v15, %v218_v14  ;;  %v220_v17 = vld [vmem:[%s4039_s1 + $0x50] sm:$0xff]  ;;  %v221_v18 = vld [vmem:[%s4039_s1 + $0x58] sm:$0xff]  ;;  %v222_v20 = vld [vmem:[%s4039_s1 + $0x60] sm:$0xff] }
   0x6   :  { %2218 = vmatprep.subr.bf16.mxu0 %v2217_v5  ;;  %2246 = vmatprep.subr.bf16.mxu1 %v2217_v5  ;;  %v2233_v19 = vpack.c.bf16 %v221_v18, %v220_v17  ;;  %v223_v21 = vld [vmem:[%s4039_s1 + $0x68] sm:$0xff]  ;;  %v224_v23 = vld [vmem:[%s4039_s1 + $0x70] sm:$0xff]  ;;  %v225_v24 = vld [vmem:[%s4039_s1 + $0x78] sm:$0xff] }
   0x7   :  { %1919 = vmatprep.mubr.f32.mxu0 %v14_v9  ;;  %2066 = vmatprep.mubr.f32.mxu1 %v112_v10  ;;  %v2237_v22 = vpack.c.bf16 %v223_v21, %v222_v20  ;;  %v2241_v25 = vpack.c.bf16 %v225_v24, %v224_v23  ;;  %v15_v26 = vld [vmem:[%s4040_s0 + $0x8] sm:$0xff]  ;;  %v113_v27 = vld [vmem:[%s4040_s0 + $0x318] sm:$0xff]  ;;  %v16_v28 = vld [vmem:[%s4040_s0 + $0x10] sm:$0xff] }
   0x8   :  { %v114_v29 = vld [vmem:[%s4040_s0 + $0x320] sm:$0xff]  ;;  %v17_v30 = vld [vmem:[%s4040_s0 + $0x18] sm:$0xff]  ;;  %v115_v31 = vld [vmem:[%s4040_s0 + $0x328] sm:$0xff] }
   0x9   :  { %2220 = vmatpush3.bf16.msra.mxu0 %v2217_v5  ;;  %2254 = vmatpush3.bf16.msra.mxu1 %v2217_v5  ;;  %v18_v32 = vld [vmem:[%s4040_s0 + $0x20] sm:$0xff]  ;;  %v116_v33 = vld [vmem:[%s4040_s0 + $0x330] sm:$0xff]  ;;  %v19_v34 = vld [vmem:[%s4040_s0 + $0x28] sm:$0xff] }
   0xa   :  { %2222 = vmatprep.subr.bf16.mxu0 %v2221_v8  ;;  %2247 = vmatprep.subr.bf16.mxu1 %v2221_v8  ;;  %v117_v35 = vld [vmem:[%s4040_s0 + $0x338] sm:$0xff]  ;;  %v20_v36 = vld [vmem:[%s4040_s0 + $0x30] sm:$0xff]  ;;  %v118_v37 = vld [vmem:[%s4040_s0 + $0x340] sm:$0xff] }
   0xb   :  { %v21_v38 = vld [vmem:[%s4040_s0 + $0x38] sm:$0xff]  ;;  %v119_v39 = vld [vmem:[%s4040_s0 + $0x348] sm:$0xff]  ;;  %v22_v40 = vld [vmem:[%s4040_s0 + $0x40] sm:$0xff] }
   0xc   :  { %v120_v41 = vld [vmem:[%s4040_s0 + $0x350] sm:$0xff]  ;;  %v23_v42 = vld [vmem:[%s4040_s0 + $0x48] sm:$0xff]  ;;  %v121_v43 = vld [vmem:[%s4040_s0 + $0x358] sm:$0xff] }
   0xd   :  { %2224 = vmatpush3.bf16.msra.mxu0 %v2221_v8  ;;  %2255 = vmatpush3.bf16.msra.mxu1 %v2221_v8  ;;  %v24_v44 = vld [vmem:[%s4040_s0 + $0x50] sm:$0xff]  ;;  %v122_v45 = vld [vmem:[%s4040_s0 + $0x360] sm:$0xff]  ;;  %v25_v46 = vld [vmem:[%s4040_s0 + $0x58] sm:$0xff] }
   0xe   :  { %2226 = vmatprep.subr.bf16.mxu0 %v2225_v13  ;;  %2248 = vmatprep.subr.bf16.mxu1 %v2225_v13  ;;  %v123_v47 = vld [vmem:[%s4040_s0 + $0x368] sm:$0xff]  ;;  %v26_v48 = vld [vmem:[%s4040_s0 + $0x60] sm:$0xff]  ;;  %v124_v49 = vld [vmem:[%s4040_s0 + $0x370] sm:$0xff] }
   0xf   :  { %v27_v50 = vld [vmem:[%s4040_s0 + $0x68] sm:$0xff]  ;;  %v125_v51 = vld [vmem:[%s4040_s0 + $0x378] sm:$0xff]  ;;  %v28_v52 = vld [vmem:[%s4040_s0 + $0x70] sm:$0xff] }
  0x10   :  { %v126_v53 = vld [vmem:[%s4040_s0 + $0x380] sm:$0xff]  ;;  %v29_v54 = vld [vmem:[%s4040_s0 + $0x78] sm:$0xff]  ;;  %v127_v55 = vld [vmem:[%s4040_s0 + $0x388] sm:$0xff] }
  0x11   :  { %2228 = vmatpush3.bf16.msra.mxu0 %v2225_v13  ;;  %2256 = vmatpush3.bf16.msra.mxu1 %v2225_v13  ;;  %v30_v56 = vld [vmem:[%s4040_s0 + $0x80] sm:$0xff]  ;;  %v128_v57 = vld [vmem:[%s4040_s0 + $0x390] sm:$0xff]  ;;  %v31_v58 = vld [vmem:[%s4040_s0 + $0x88] sm:$0xff] }
  0x12   :  { %2230 = vmatprep.subr.bf16.mxu0 %v2229_v16  ;;  %2249 = vmatprep.subr.bf16.mxu1 %v2229_v16  ;;  %v129_v59 = vld [vmem:[%s4040_s0 + $0x398] sm:$0xff]  ;;  %v32_v60 = vld [vmem:[%s4040_s0 + $0x90] sm:$0xff]  ;;  %v130_v61 = vld [vmem:[%s4040_s0 + $0x3a0] sm:$0xff] }
  0x13   :  { %v33_v62 = vld [vmem:[%s4040_s0 + $0x98] sm:$0xff]  ;;  %v131_v63 = vld [vmem:[%s4040_s0 + $0x3a8] sm:$0xff]  ;;  %v34_v0 = vld [vmem:[%s4040_s0 + $0xa0] sm:$0xff] }
  0x14   :  { %v132_v1 = vld [vmem:[%s4040_s0 + $0x3b0] sm:$0xff]  ;;  %v35_v2 = vld [vmem:[%s4040_s0 + $0xa8] sm:$0xff]  ;;  %v133_v3 = vld [vmem:[%s4040_s0 + $0x3b8] sm:$0xff] }
  0x15   :  { %2232 = vmatpush3.bf16.msra.mxu0 %v2229_v16  ;;  %2257 = vmatpush3.bf16.msra.mxu1 %v2229_v16  ;;  %v36_v4 = vld [vmem:[%s4040_s0 + $0xb0] sm:$0xff]  ;;  %v134_v5 = vld [vmem:[%s4040_s0 + $0x3c0] sm:$0xff]  ;;  %v37_v6 = vld [vmem:[%s4040_s0 + $0xb8] sm:$0xff] }
  0x16   :  { %2234 = vmatprep.subr.bf16.mxu0 %v2233_v19  ;;  %2250 = vmatprep.subr.bf16.mxu1 %v2233_v19  ;;  %v135_v7 = vld [vmem:[%s4040_s0 + $0x3c8] sm:$0xff]  ;;  %v38_v8 = vld [vmem:[%s4040_s0 + $0xc0] sm:$0xff]  ;;  %v136_v9 = vld [vmem:[%s4040_s0 + $0x3d0] sm:$0xff] }
  0x17   :  { %v39_v10 = vld [vmem:[%s4040_s0 + $0xc8] sm:$0xff]  ;;  %v137_v11 = vld [vmem:[%s4040_s0 + $0x3d8] sm:$0xff]  ;;  %v40_v12 = vld [vmem:[%s4040_s0 + $0xd0] sm:$0xff] }
  0x18   :  { %v138_v13 = vld [vmem:[%s4040_s0 + $0x3e0] sm:$0xff]  ;;  %v41_v14 = vld [vmem:[%s4040_s0 + $0xd8] sm:$0xff]  ;;  %v139_v15 = vld [vmem:[%s4040_s0 + $0x3e8] sm:$0xff] }
  0x19   :  { %2236 = vmatpush3.bf16.msra.mxu0 %v2233_v19  ;;  %2258 = vmatpush3.bf16.msra.mxu1 %v2233_v19  ;;  %v42_v16 = vld [vmem:[%s4040_s0 + $0xe0] sm:$0xff]  ;;  %v140_v17 = vld [vmem:[%s4040_s0 + $0x3f0] sm:$0xff]  ;;  %v43_v18 = vld [vmem:[%s4040_s0 + $0xe8] sm:$0xff] }
  0x1a   :  { %2238 = vmatprep.subr.bf16.mxu0 %v2237_v22  ;;  %2251 = vmatprep.subr.bf16.mxu1 %v2237_v22  ;;  %v141_v19 = vld [vmem:[%s4040_s0 + $0x3f8] sm:$0xff]  ;;  %v44_v20 = vld [vmem:[%s4040_s0 + $0xf0] sm:$0xff]  ;;  %v142_v21 = vld [vmem:[%s4040_s0 + $0x400] sm:$0xff] }
  0x1b   :  { %v143_v23 = vld [vmem:[%s4040_s0 + $0x408] sm:$0xff]  ;;  %v46_v24 = vld [vmem:[%s4040_s0 + $0x100] sm:$0xff] }
  0x1d   :  { %2240 = vmatpush3.bf16.msra.mxu0 %v2237_v22  ;;  %2259 = vmatpush3.bf16.msra.mxu1 %v2237_v22  ;;  %v45_v22 = vld [vmem:[%s4040_s0 + $0xf8] sm:$0xff] }
  0x1e   :  { %2242 = vmatprep.subr.bf16.mxu0 %v2241_v25  ;;  %2252 = vmatprep.subr.bf16.mxu1 %v2241_v25 }
  0x21   :  { %2244 = vmatpush3.bf16.msra.mxu0 %v2241_v25  ;;  %2260 = vmatpush3.bf16.msra.mxu1 %v2241_v25  ;;  %v144_v25 = vld [vmem:[%s4040_s0 + $0x410] sm:$0xff] }
  0x24   :  { %1920 = vmatmul.mubr.f32.vlgmr.msra.gmra.mrb[0].mxu0 %v15_v26  ;;  %2067 = vmatmul.mubr.f32.vlgmr.msra.gmra.mrb[0].mxu1 %v113_v27  ;;  %v47_v26 = vld [vmem:[%s4040_s0 + $0x108] sm:$0xff]  ;;  %v145_v27 = vld [vmem:[%s4040_s0 + $0x418] sm:$0xff] }
  0x25   :  { %1922 = vmatprep.mubr.f32.mxu0 %v16_v28  ;;  %2069 = vmatprep.mubr.f32.mxu1 %v114_v29  ;;  %v48_v28 = vld [vmem:[%s4040_s0 + $0x110] sm:$0xff]  ;;  %v146_v29 = vld [vmem:[%s4040_s0 + $0x420] sm:$0xff] }
  0x28   :  { %1923 = vmatmul.mubr.f32.gmra.mrb[2].mxu0 %v17_v30  ;;  %2070 = vmatmul.mubr.f32.gmra.mrb[2].mxu1 %v115_v31  ;;  %v49_v30 = vld [vmem:[%s4040_s0 + $0x118] sm:$0xff]  ;;  %v147_v31 = vld [vmem:[%s4040_s0 + $0x428] sm:$0xff] }
  0x29   :  { %1925 = vmatprep.mubr.f32.mxu0 %v18_v32  ;;  %2072 = vmatprep.mubr.f32.mxu1 %v116_v33  ;;  %v50_v32 = vld [vmem:[%s4040_s0 + $0x120] sm:$0xff]  ;;  %v148_v33 = vld [vmem:[%s4040_s0 + $0x430] sm:$0xff] }
  0x2c   :  { %1926 = vmatmul.mubr.f32.gmra.mrb[4].mxu0 %v19_v34  ;;  %2073 = vmatmul.mubr.f32.gmra.mrb[4].mxu1 %v117_v35  ;;  %v51_v34 = vld [vmem:[%s4040_s0 + $0x128] sm:$0xff]  ;;  %v149_v35 = vld [vmem:[%s4040_s0 + $0x438] sm:$0xff] }
  0x2d   :  { %1928 = vmatprep.mubr.f32.mxu0 %v20_v36  ;;  %2075 = vmatprep.mubr.f32.mxu1 %v118_v37  ;;  %v52_v36 = vld [vmem:[%s4040_s0 + $0x130] sm:$0xff]  ;;  %v150_v37 = vld [vmem:[%s4040_s0 + $0x440] sm:$0xff] }
  0x30   :  { %1929 = vmatmul.mubr.f32.gmra.mrb[6].mxu0 %v21_v38  ;;  %2076 = vmatmul.mubr.f32.gmra.mrb[6].mxu1 %v119_v39  ;;  %v53_v38 = vld [vmem:[%s4040_s0 + $0x138] sm:$0xff]  ;;  %v151_v39 = vld [vmem:[%s4040_s0 + $0x448] sm:$0xff] }
  0x31   :  { %1931 = vmatprep.mubr.f32.mxu0 %v22_v40  ;;  %2078 = vmatprep.mubr.f32.mxu1 %v120_v41  ;;  %v54_v40 = vld [vmem:[%s4040_s0 + $0x140] sm:$0xff]  ;;  %v152_v41 = vld [vmem:[%s4040_s0 + $0x450] sm:$0xff] }
  0x34   :  { %1932 = vmatmul.mubr.f32.gmra.mrb[8].mxu0 %v23_v42  ;;  %2079 = vmatmul.mubr.f32.gmra.mrb[8].mxu1 %v121_v43  ;;  %v55_v42 = vld [vmem:[%s4040_s0 + $0x148] sm:$0xff]  ;;  %v153_v43 = vld [vmem:[%s4040_s0 + $0x458] sm:$0xff] }
  0x35   :  { %1934 = vmatprep.mubr.f32.mxu0 %v24_v44  ;;  %2081 = vmatprep.mubr.f32.mxu1 %v122_v45  ;;  %v56_v44 = vld [vmem:[%s4040_s0 + $0x150] sm:$0xff]  ;;  %v154_v45 = vld [vmem:[%s4040_s0 + $0x460] sm:$0xff] }
  0x38   :  { %1935 = vmatmul.mubr.f32.gmra.mrb[10].mxu0 %v25_v46  ;;  %2082 = vmatmul.mubr.f32.gmra.mrb[10].mxu1 %v123_v47  ;;  %v57_v46 = vld [vmem:[%s4040_s0 + $0x158] sm:$0xff]  ;;  %v155_v47 = vld [vmem:[%s4040_s0 + $0x468] sm:$0xff] }
  0x39   :  { %1937 = vmatprep.mubr.f32.mxu0 %v26_v48  ;;  %2084 = vmatprep.mubr.f32.mxu1 %v124_v49  ;;  %v58_v48 = vld [vmem:[%s4040_s0 + $0x160] sm:$0xff]  ;;  %v156_v49 = vld [vmem:[%s4040_s0 + $0x470] sm:$0xff] }
  0x3c   :  { %1938 = vmatmul.mubr.f32.gmra.mrb[12].mxu0 %v27_v50  ;;  %2085 = vmatmul.mubr.f32.gmra.mrb[12].mxu1 %v125_v51  ;;  %v59_v50 = vld [vmem:[%s4040_s0 + $0x168] sm:$0xff]  ;;  %v157_v51 = vld [vmem:[%s4040_s0 + $0x478] sm:$0xff] }
  0x3d   :  { %1940 = vmatprep.mubr.f32.mxu0 %v28_v52  ;;  %2087 = vmatprep.mubr.f32.mxu1 %v126_v53  ;;  %v60_v52 = vld [vmem:[%s4040_s0 + $0x170] sm:$0xff]  ;;  %v158_v53 = vld [vmem:[%s4040_s0 + $0x480] sm:$0xff] }
  0x40   :  { %1941 = vmatmul.mubr.f32.gmra.mrb[14].mxu0 %v29_v54  ;;  %2088 = vmatmul.mubr.f32.gmra.mrb[14].mxu1 %v127_v55  ;;  %v61_v54 = vld [vmem:[%s4040_s0 + $0x178] sm:$0xff]  ;;  %v159_v55 = vld [vmem:[%s4040_s0 + $0x488] sm:$0xff] }
  0x41   :  { %1943 = vmatprep.mubr.f32.mxu0 %v30_v56  ;;  %2090 = vmatprep.mubr.f32.mxu1 %v128_v57  ;;  %v62_v56 = vld [vmem:[%s4040_s0 + $0x180] sm:$0xff]  ;;  %v160_v57 = vld [vmem:[%s4040_s0 + $0x490] sm:$0xff] }
  0x44   :  { %1944 = vmatmul.mubr.f32.gmra.mrb[16].mxu0 %v31_v58  ;;  %2091 = vmatmul.mubr.f32.gmra.mrb[16].mxu1 %v129_v59  ;;  %v63_v58 = vld [vmem:[%s4040_s0 + $0x188] sm:$0xff]  ;;  %v161_v59 = vld [vmem:[%s4040_s0 + $0x498] sm:$0xff] }
  0x45   :  { %1946 = vmatprep.mubr.f32.mxu0 %v32_v60  ;;  %2093 = vmatprep.mubr.f32.mxu1 %v130_v61  ;;  %v64_v60 = vld [vmem:[%s4040_s0 + $0x190] sm:$0xff]  ;;  %v162_v61 = vld [vmem:[%s4040_s0 + $0x4a0] sm:$0xff] }
  0x48   :  { %1947 = vmatmul.mubr.f32.gmra.mrb[18].mxu0 %v33_v62  ;;  %2094 = vmatmul.mubr.f32.gmra.mrb[18].mxu1 %v131_v63  ;;  %v65_v62 = vld [vmem:[%s4040_s0 + $0x198] sm:$0xff]  ;;  %v163_v63 = vld [vmem:[%s4040_s0 + $0x4a8] sm:$0xff] }
  0x49   :  { %1949 = vmatprep.mubr.f32.mxu0 %v34_v0  ;;  %2096 = vmatprep.mubr.f32.mxu1 %v132_v1  ;;  %v66_v0 = vld [vmem:[%s4040_s0 + $0x1a0] sm:$0xff]  ;;  %v164_v1 = vld [vmem:[%s4040_s0 + $0x4b0] sm:$0xff] }
  0x4c   :  { %1950 = vmatmul.mubr.f32.gmra.mrb[20].mxu0 %v35_v2  ;;  %2097 = vmatmul.mubr.f32.gmra.mrb[20].mxu1 %v133_v3  ;;  %v67_v2 = vld [vmem:[%s4040_s0 + $0x1a8] sm:$0xff]  ;;  %v165_v3 = vld [vmem:[%s4040_s0 + $0x4b8] sm:$0xff] }
  0x4d   :  { %1952 = vmatprep.mubr.f32.mxu0 %v36_v4  ;;  %2099 = vmatprep.mubr.f32.mxu1 %v134_v5  ;;  %v68_v4 = vld [vmem:[%s4040_s0 + $0x1b0] sm:$0xff]  ;;  %v166_v5 = vld [vmem:[%s4040_s0 + $0x4c0] sm:$0xff] }
  0x50   :  { %1953 = vmatmul.mubr.f32.gmra.mrb[22].mxu0 %v37_v6  ;;  %2100 = vmatmul.mubr.f32.gmra.mrb[22].mxu1 %v135_v7  ;;  %v69_v6 = vld [vmem:[%s4040_s0 + $0x1b8] sm:$0xff]  ;;  %v167_v7 = vld [vmem:[%s4040_s0 + $0x4c8] sm:$0xff] }
  0x51   :  { %1955 = vmatprep.mubr.f32.mxu0 %v38_v8  ;;  %2102 = vmatprep.mubr.f32.mxu1 %v136_v9  ;;  %v70_v8 = vld [vmem:[%s4040_s0 + $0x1c0] sm:$0xff]  ;;  %v168_v9 = vld [vmem:[%s4040_s0 + $0x4d0] sm:$0xff] }
  0x54   :  { %1956 = vmatmul.mubr.f32.gmra.mrb[24].mxu0 %v39_v10  ;;  %2103 = vmatmul.mubr.f32.gmra.mrb[24].mxu1 %v137_v11  ;;  %v71_v10 = vld [vmem:[%s4040_s0 + $0x1c8] sm:$0xff]  ;;  %v169_v11 = vld [vmem:[%s4040_s0 + $0x4d8] sm:$0xff] }
  0x55   :  { %1958 = vmatprep.mubr.f32.mxu0 %v40_v12  ;;  %2105 = vmatprep.mubr.f32.mxu1 %v138_v13  ;;  %v72_v12 = vld [vmem:[%s4040_s0 + $0x1d0] sm:$0xff]  ;;  %v170_v13 = vld [vmem:[%s4040_s0 + $0x4e0] sm:$0xff] }
  0x58   :  { %1959 = vmatmul.mubr.f32.gmra.mrb[26].mxu0 %v41_v14  ;;  %2106 = vmatmul.mubr.f32.gmra.mrb[26].mxu1 %v139_v15  ;;  %v73_v14 = vld [vmem:[%s4040_s0 + $0x1d8] sm:$0xff]  ;;  %v171_v15 = vld [vmem:[%s4040_s0 + $0x4e8] sm:$0xff] }
  0x59   :  { %1961 = vmatprep.mubr.f32.mxu0 %v42_v16  ;;  %2108 = vmatprep.mubr.f32.mxu1 %v140_v17  ;;  %v74_v16 = vld [vmem:[%s4040_s0 + $0x1e0] sm:$0xff]  ;;  %v172_v17 = vld [vmem:[%s4040_s0 + $0x4f0] sm:$0xff] }
  0x5c   :  { %1962 = vmatmul.mubr.f32.gmra.mrb[28].mxu0 %v43_v18  ;;  %2109 = vmatmul.mubr.f32.gmra.mrb[28].mxu1 %v141_v19  ;;  %v75_v18 = vld [vmem:[%s4040_s0 + $0x1e8] sm:$0xff]  ;;  %v173_v19 = vld [vmem:[%s4040_s0 + $0x4f8] sm:$0xff] }
  0x5d   :  { %1964 = vmatprep.mubr.f32.mxu0 %v44_v20  ;;  %2111 = vmatprep.mubr.f32.mxu1 %v142_v21  ;;  %v76_v20 = vld [vmem:[%s4040_s0 + $0x1f0] sm:$0xff]  ;;  %v174_v21 = vld [vmem:[%s4040_s0 + $0x500] sm:$0xff] }
  0x60   :  { %1965 = vmatmul.mubr.f32.gmra.mrb[30].mxu0 %v45_v22  ;;  %2112 = vmatmul.mubr.f32.gmra.mrb[30].mxu1 %v143_v23  ;;  %v77_v22 = vld [vmem:[%s4040_s0 + $0x1f8] sm:$0xff]  ;;  %v175_v23 = vld [vmem:[%s4040_s0 + $0x508] sm:$0xff] }
  0x61   :  { %1967 = vmatprep.mubr.f32.mxu0 %v46_v24  ;;  %2114 = vmatprep.mubr.f32.mxu1 %v144_v25  ;;  %v78_v24 = vld [vmem:[%s4040_s0 + $0x200] sm:$0xff]  ;;  %v176_v25 = vld [vmem:[%s4040_s0 + $0x510] sm:$0xff] }
  0x64   :  { %1968 = vmatmul.mubr.f32.gmra.mrb[32].mxu0 %v47_v26  ;;  %2115 = vmatmul.mubr.f32.gmra.mrb[32].mxu1 %v145_v27  ;;  %v79_v26 = vld [vmem:[%s4040_s0 + $0x208] sm:$0xff]  ;;  %v177_v27 = vld [vmem:[%s4040_s0 + $0x518] sm:$0xff] }
  0x65   :  { %1970 = vmatprep.mubr.f32.mxu0 %v48_v28  ;;  %2117 = vmatprep.mubr.f32.mxu1 %v146_v29  ;;  %v80_v28 = vld [vmem:[%s4040_s0 + $0x210] sm:$0xff]  ;;  %v178_v29 = vld [vmem:[%s4040_s0 + $0x520] sm:$0xff] }
  0x68   :  { %1971 = vmatmul.mubr.f32.gmra.mrb[34].mxu0 %v49_v30  ;;  %2118 = vmatmul.mubr.f32.gmra.mrb[34].mxu1 %v147_v31  ;;  %v81_v30 = vld [vmem:[%s4040_s0 + $0x218] sm:$0xff]  ;;  %v179_v31 = vld [vmem:[%s4040_s0 + $0x528] sm:$0xff] }
  0x69   :  { %1973 = vmatprep.mubr.f32.mxu0 %v50_v32  ;;  %2120 = vmatprep.mubr.f32.mxu1 %v148_v33  ;;  %v82_v32 = vld [vmem:[%s4040_s0 + $0x220] sm:$0xff]  ;;  %v180_v33 = vld [vmem:[%s4040_s0 + $0x530] sm:$0xff] }
  0x6c   :  { %1974 = vmatmul.mubr.f32.gmra.mrb[36].mxu0 %v51_v34  ;;  %2121 = vmatmul.mubr.f32.gmra.mrb[36].mxu1 %v149_v35  ;;  %v83_v34 = vld [vmem:[%s4040_s0 + $0x228] sm:$0xff]  ;;  %v181_v35 = vld [vmem:[%s4040_s0 + $0x538] sm:$0xff] }
  0x6d   :  { %1976 = vmatprep.mubr.f32.mxu0 %v52_v36  ;;  %2123 = vmatprep.mubr.f32.mxu1 %v150_v37  ;;  %v84_v36 = vld [vmem:[%s4040_s0 + $0x230] sm:$0xff]  ;;  %v182_v37 = vld [vmem:[%s4040_s0 + $0x540] sm:$0xff] }
  0x70   :  { %1977 = vmatmul.mubr.f32.gmra.mrb[38].mxu0 %v53_v38  ;;  %2124 = vmatmul.mubr.f32.gmra.mrb[38].mxu1 %v151_v39  ;;  %v85_v38 = vld [vmem:[%s4040_s0 + $0x238] sm:$0xff]  ;;  %v183_v39 = vld [vmem:[%s4040_s0 + $0x548] sm:$0xff] }
  0x71   :  { %1979 = vmatprep.mubr.f32.mxu0 %v54_v40  ;;  %2126 = vmatprep.mubr.f32.mxu1 %v152_v41  ;;  %v86_v40 = vld [vmem:[%s4040_s0 + $0x240] sm:$0xff]  ;;  %v184_v41 = vld [vmem:[%s4040_s0 + $0x550] sm:$0xff] }
  0x74   :  { %1980 = vmatmul.mubr.f32.gmra.mrb[40].mxu0 %v55_v42  ;;  %2127 = vmatmul.mubr.f32.gmra.mrb[40].mxu1 %v153_v43  ;;  %v87_v42 = vld [vmem:[%s4040_s0 + $0x248] sm:$0xff]  ;;  %v185_v43 = vld [vmem:[%s4040_s0 + $0x558] sm:$0xff] }
  0x75   :  { %1982 = vmatprep.mubr.f32.mxu0 %v56_v44  ;;  %2129 = vmatprep.mubr.f32.mxu1 %v154_v45  ;;  %v88_v44 = vld [vmem:[%s4040_s0 + $0x250] sm:$0xff]  ;;  %v186_v45 = vld [vmem:[%s4040_s0 + $0x560] sm:$0xff] }
  0x78   :  { %1983 = vmatmul.mubr.f32.gmra.mrb[42].mxu0 %v57_v46  ;;  %2130 = vmatmul.mubr.f32.gmra.mrb[42].mxu1 %v155_v47  ;;  %v89_v46 = vld [vmem:[%s4040_s0 + $0x258] sm:$0xff]  ;;  %v187_v47 = vld [vmem:[%s4040_s0 + $0x568] sm:$0xff] }
  0x79   :  { %1985 = vmatprep.mubr.f32.mxu0 %v58_v48  ;;  %2132 = vmatprep.mubr.f32.mxu1 %v156_v49  ;;  %v90_v48 = vld [vmem:[%s4040_s0 + $0x260] sm:$0xff]  ;;  %v188_v49 = vld [vmem:[%s4040_s0 + $0x570] sm:$0xff] }
  0x7c   :  { %1986 = vmatmul.mubr.f32.gmra.mrb[44].mxu0 %v59_v50  ;;  %2133 = vmatmul.mubr.f32.gmra.mrb[44].mxu1 %v157_v51  ;;  %v91_v50 = vld [vmem:[%s4040_s0 + $0x268] sm:$0xff]  ;;  %v189_v51 = vld [vmem:[%s4040_s0 + $0x578] sm:$0xff] }
  0x7d   :  { %1988 = vmatprep.mubr.f32.mxu0 %v60_v52  ;;  %2135 = vmatprep.mubr.f32.mxu1 %v158_v53  ;;  %v92_v52 = vld [vmem:[%s4040_s0 + $0x270] sm:$0xff]  ;;  %v190_v53 = vld [vmem:[%s4040_s0 + $0x580] sm:$0xff] }
  0x80   :  { %1989 = vmatmul.mubr.f32.gmra.mrb[46].mxu0 %v61_v54  ;;  %2136 = vmatmul.mubr.f32.gmra.mrb[46].mxu1 %v159_v55  ;;  %v93_v54 = vld [vmem:[%s4040_s0 + $0x278] sm:$0xff]  ;;  %v191_v55 = vld [vmem:[%s4040_s0 + $0x588] sm:$0xff] }
  0x81   :  { %1991 = vmatprep.mubr.f32.mxu0 %v62_v56  ;;  %2138 = vmatprep.mubr.f32.mxu1 %v160_v57  ;;  %v94_v56 = vld [vmem:[%s4040_s0 + $0x280] sm:$0xff]  ;;  %v192_v57 = vld [vmem:[%s4040_s0 + $0x590] sm:$0xff] }
  0x84   :  { %1992 = vmatmul.mubr.f32.gmra.mrb[48].mxu0 %v63_v58  ;;  %2139 = vmatmul.mubr.f32.gmra.mrb[48].mxu1 %v161_v59  ;;  %v95_v58 = vld [vmem:[%s4040_s0 + $0x288] sm:$0xff]  ;;  %v193_v59 = vld [vmem:[%s4040_s0 + $0x598] sm:$0xff] }
  0x85   :  { %1994 = vmatprep.mubr.f32.mxu0 %v64_v60  ;;  %2141 = vmatprep.mubr.f32.mxu1 %v162_v61  ;;  %v96_v60 = vld [vmem:[%s4040_s0 + $0x290] sm:$0xff]  ;;  %v194_v61 = vld [vmem:[%s4040_s0 + $0x5a0] sm:$0xff] }
  0x88   :  { %1995 = vmatmul.mubr.f32.gmra.mrb[50].mxu0 %v65_v62  ;;  %2142 = vmatmul.mubr.f32.gmra.mrb[50].mxu1 %v163_v63  ;;  %v97_v62 = vld [vmem:[%s4040_s0 + $0x298] sm:$0xff]  ;;  %v195_v63 = vld [vmem:[%s4040_s0 + $0x5a8] sm:$0xff] }
  0x89   :  { %1997 = vmatprep.mubr.f32.mxu0 %v66_v0  ;;  %2144 = vmatprep.mubr.f32.mxu1 %v164_v1  ;;  %v98_v0 = vld [vmem:[%s4040_s0 + $0x2a0] sm:$0xff]  ;;  %v196_v1 = vld [vmem:[%s4040_s0 + $0x5b0] sm:$0xff] }
  0x8c   :  { %1998 = vmatmul.mubr.f32.gmra.mrb[52].mxu0 %v67_v2  ;;  %2145 = vmatmul.mubr.f32.gmra.mrb[52].mxu1 %v165_v3  ;;  %v99_v2 = vld [vmem:[%s4040_s0 + $0x2a8] sm:$0xff]  ;;  %v197_v3 = vld [vmem:[%s4040_s0 + $0x5b8] sm:$0xff] }
  0x8d   :  { %2000 = vmatprep.mubr.f32.mxu0 %v68_v4  ;;  %2147 = vmatprep.mubr.f32.mxu1 %v166_v5  ;;  %v100_v4 = vld [vmem:[%s4040_s0 + $0x2b0] sm:$0xff]  ;;  %v198_v5 = vld [vmem:[%s4040_s0 + $0x5c0] sm:$0xff] }
  0x90   :  { %2001 = vmatmul.mubr.f32.gmra.mrb[54].mxu0 %v69_v6  ;;  %2148 = vmatmul.mubr.f32.gmra.mrb[54].mxu1 %v167_v7  ;;  %v101_v6 = vld [vmem:[%s4040_s0 + $0x2b8] sm:$0xff]  ;;  %v199_v7 = vld [vmem:[%s4040_s0 + $0x5c8] sm:$0xff] }
  0x91   :  { %2003 = vmatprep.mubr.f32.mxu0 %v70_v8  ;;  %2150 = vmatprep.mubr.f32.mxu1 %v168_v9  ;;  %v102_v8 = vld [vmem:[%s4040_s0 + $0x2c0] sm:$0xff]  ;;  %v200_v9 = vld [vmem:[%s4040_s0 + $0x5d0] sm:$0xff] }
  0x94   :  { %2004 = vmatmul.mubr.f32.gmra.mrb[56].mxu0 %v71_v10  ;;  %2151 = vmatmul.mubr.f32.gmra.mrb[56].mxu1 %v169_v11  ;;  %v103_v10 = vld [vmem:[%s4040_s0 + $0x2c8] sm:$0xff]  ;;  %v201_v11 = vld [vmem:[%s4040_s0 + $0x5d8] sm:$0xff] }
  0x95   :  { %2006 = vmatprep.mubr.f32.mxu0 %v72_v12  ;;  %2153 = vmatprep.mubr.f32.mxu1 %v170_v13  ;;  %v104_v12 = vld [vmem:[%s4040_s0 + $0x2d0] sm:$0xff]  ;;  %v202_v13 = vld [vmem:[%s4040_s0 + $0x5e0] sm:$0xff] }
  0x98   :  { %2007 = vmatmul.mubr.f32.gmra.mrb[58].mxu0 %v73_v14  ;;  %2154 = vmatmul.mubr.f32.gmra.mrb[58].mxu1 %v171_v15  ;;  %v105_v14 = vld [vmem:[%s4040_s0 + $0x2d8] sm:$0xff]  ;;  %v203_v15 = vld [vmem:[%s4040_s0 + $0x5e8] sm:$0xff] }
  0x99   :  { %2009 = vmatprep.mubr.f32.mxu0 %v74_v16  ;;  %2156 = vmatprep.mubr.f32.mxu1 %v172_v17  ;;  %v106_v16 = vld [vmem:[%s4040_s0 + $0x2e0] sm:$0xff]  ;;  %v204_v17 = vld [vmem:[%s4040_s0 + $0x5f0] sm:$0xff] }
  0x9c   :  { %2010 = vmatmul.mubr.f32.gmra.mrb[60].mxu0 %v75_v18  ;;  %2157 = vmatmul.mubr.f32.gmra.mrb[60].mxu1 %v173_v19  ;;  %v107_v18 = vld [vmem:[%s4040_s0 + $0x2e8] sm:$0xff]  ;;  %v205_v19 = vld [vmem:[%s4040_s0 + $0x5f8] sm:$0xff] }
  0x9d   :  { %2012 = vmatprep.mubr.f32.mxu0 %v76_v20  ;;  %2159 = vmatprep.mubr.f32.mxu1 %v174_v21  ;;  %v108_v20 = vld [vmem:[%s4040_s0 + $0x2f0] sm:$0xff]  ;;  %v206_v21 = vld [vmem:[%s4040_s0 + $0x600] sm:$0xff] }
  0xa0   :  { %2013 = vmatmul.mubr.f32.gmra.mrb[62].mxu0 %v77_v22  ;;  %2160 = vmatmul.mubr.f32.gmra.mrb[62].mxu1 %v175_v23  ;;  %v109_v22 = vld [vmem:[%s4040_s0 + $0x2f8] sm:$0xff]  ;;  %v207_v23 = vld [vmem:[%s4040_s0 + $0x608] sm:$0xff] }
  0xa1   :  { %2015 = vmatprep.mubr.f32.mxu0 %v78_v24  ;;  %2162 = vmatprep.mubr.f32.mxu1 %v176_v25  ;;  %v110_v24 = vld [vmem:[%s4040_s0 + $0x300] sm:$0xff]  ;;  %v208_v25 = vld [vmem:[%s4040_s0 + $0x610] sm:$0xff] }
  0xa4   :  { %2016 = vmatmul.mubr.f32.gmra.mrb[64].mxu0 %v79_v26  ;;  %2163 = vmatmul.mubr.f32.gmra.mrb[64].mxu1 %v177_v27  ;;  %v111_v26 = vld [vmem:[%s4040_s0 + $0x308] sm:$0xff]  ;;  %v209_v27 = vld [vmem:[%s4040_s0 + $0x618] sm:$0xff] }
  0xa5   :  { %2018 = vmatprep.mubr.f32.mxu0 %v80_v28  ;;  %2165 = vmatprep.mubr.f32.mxu1 %v178_v29 }
  0xa8   :  { %2019 = vmatmul.mubr.f32.gmra.mrb[66].mxu0 %v81_v30  ;;  %2166 = vmatmul.mubr.f32.gmra.mrb[66].mxu1 %v179_v31 }
  0xa9   :  { %2021 = vmatprep.mubr.f32.mxu0 %v82_v32  ;;  %2168 = vmatprep.mubr.f32.mxu1 %v180_v33 }
  0xac   :  { %2022 = vmatmul.mubr.f32.gmra.mrb[68].mxu0 %v83_v34  ;;  %2169 = vmatmul.mubr.f32.gmra.mrb[68].mxu1 %v181_v35 }
  0xad   :  { %2024 = vmatprep.mubr.f32.mxu0 %v84_v36  ;;  %2171 = vmatprep.mubr.f32.mxu1 %v182_v37 }
  0xb0   :  { %2025 = vmatmul.mubr.f32.gmra.mrb[70].mxu0 %v85_v38  ;;  %2172 = vmatmul.mubr.f32.gmra.mrb[70].mxu1 %v183_v39 }
  0xb1   :  { %2027 = vmatprep.mubr.f32.mxu0 %v86_v40  ;;  %2174 = vmatprep.mubr.f32.mxu1 %v184_v41 }
  0xb4   :  { %2028 = vmatmul.mubr.f32.gmra.mrb[72].mxu0 %v87_v42  ;;  %2175 = vmatmul.mubr.f32.gmra.mrb[72].mxu1 %v185_v43 }
  0xb5   :  { %2030 = vmatprep.mubr.f32.mxu0 %v88_v44  ;;  %2177 = vmatprep.mubr.f32.mxu1 %v186_v45 }
  0xb8   :  { %2031 = vmatmul.mubr.f32.gmra.mrb[74].mxu0 %v89_v46  ;;  %2178 = vmatmul.mubr.f32.gmra.mrb[74].mxu1 %v187_v47 }
  0xb9   :  { %2033 = vmatprep.mubr.f32.mxu0 %v90_v48  ;;  %2180 = vmatprep.mubr.f32.mxu1 %v188_v49 }
  0xbc   :  { %2034 = vmatmul.mubr.f32.gmra.mrb[76].mxu0 %v91_v50  ;;  %2181 = vmatmul.mubr.f32.gmra.mrb[76].mxu1 %v189_v51 }
  0xbd   :  { %2036 = vmatprep.mubr.f32.mxu0 %v92_v52  ;;  %2183 = vmatprep.mubr.f32.mxu1 %v190_v53 }
  0xc0   :  { %2037 = vmatmul.mubr.f32.gmra.mrb[78].mxu0 %v93_v54  ;;  %2184 = vmatmul.mubr.f32.gmra.mrb[78].mxu1 %v191_v55 }
  0xc1   :  { %2039 = vmatprep.mubr.f32.mxu0 %v94_v56  ;;  %2186 = vmatprep.mubr.f32.mxu1 %v192_v57 }
  0xc4   :  { %2040 = vmatmul.mubr.f32.gmra.mrb[80].mxu0 %v95_v58  ;;  %2187 = vmatmul.mubr.f32.gmra.mrb[80].mxu1 %v193_v59 }
  0xc5   :  { %2042 = vmatprep.mubr.f32.mxu0 %v96_v60  ;;  %2189 = vmatprep.mubr.f32.mxu1 %v194_v61 }
  0xc8   :  { %2043 = vmatmul.mubr.f32.gmra.mrb[82].mxu0 %v97_v62  ;;  %2190 = vmatmul.mubr.f32.gmra.mrb[82].mxu1 %v195_v63 }
  0xc9   :  { %2045 = vmatprep.mubr.f32.mxu0 %v98_v0  ;;  %2192 = vmatprep.mubr.f32.mxu1 %v196_v1 }
  0xcc   :  { %2046 = vmatmul.mubr.f32.gmra.mrb[84].mxu0 %v99_v2  ;;  %2193 = vmatmul.mubr.f32.gmra.mrb[84].mxu1 %v197_v3 }
  0xcd   :  { %2048 = vmatprep.mubr.f32.mxu0 %v100_v4  ;;  %2195 = vmatprep.mubr.f32.mxu1 %v198_v5 }
  0xd0   :  { %2049 = vmatmul.mubr.f32.gmra.mrb[86].mxu0 %v101_v6  ;;  %2196 = vmatmul.mubr.f32.gmra.mrb[86].mxu1 %v199_v7 }
  0xd1   :  { %2051 = vmatprep.mubr.f32.mxu0 %v102_v8  ;;  %2198 = vmatprep.mubr.f32.mxu1 %v200_v9 }
  0xd4   :  { %2052 = vmatmul.mubr.f32.gmra.mrb[88].mxu0 %v103_v10  ;;  %2199 = vmatmul.mubr.f32.gmra.mrb[88].mxu1 %v201_v11 }
  0xd5   :  { %2054 = vmatprep.mubr.f32.mxu0 %v104_v12  ;;  %2201 = vmatprep.mubr.f32.mxu1 %v202_v13 }
  0xd8   :  { %2055 = vmatmul.mubr.f32.gmra.mrb[90].mxu0 %v105_v14  ;;  %2202 = vmatmul.mubr.f32.gmra.mrb[90].mxu1 %v203_v15 }
  0xd9   :  { %2057 = vmatprep.mubr.f32.mxu0 %v106_v16  ;;  %2204 = vmatprep.mubr.f32.mxu1 %v204_v17 }
  0xdc   :  { %2058 = vmatmul.mubr.f32.gmra.mrb[92].mxu0 %v107_v18  ;;  %2205 = vmatmul.mubr.f32.gmra.mrb[92].mxu1 %v205_v19 }
  0xdd   :  { %2060 = vmatprep.mubr.f32.mxu0 %v108_v20  ;;  %2207 = vmatprep.mubr.f32.mxu1 %v206_v21 }
  0xe0   :  { %2061 = vmatmul.mubr.f32.gmra.mrb[94].mxu0 %v109_v22  ;;  %2208 = vmatmul.mubr.f32.gmra.mrb[94].mxu1 %v207_v23 }
  0xe1   :  { %2063 = vmatprep.mubr.f32.mxu0 %v110_v24  ;;  %2210 = vmatprep.mubr.f32.mxu1 %v208_v25  ;;  %v3041_v24 = vld [vmem:[%s4041_s2] ss:$0 sm:$0xff] }
  0xe4   :  { %2064 = vmatmul.mubr.f32.gmra.mrb[96].mxu0 %v111_v26  ;;  %2211 = vmatmul.mubr.f32.gmra.mrb[96].mxu1 %v209_v27 }
  0xf7   :  { %v2918_v28 = vpop.f32.mrb[0].mxu0  ;;  %v2920_v29 = vpop.f32.mrb[0].mxu1 }
  0xf8   :  { %v2922_v30 = vpop.f32.mrb[1].mxu0  ;;  %v2924_v31 = vpop.f32.mrb[1].mxu1 }
  0xfb   :  { %v2926_v32 = vpop.f32.mrb[2].mxu0  ;;  %v2928_v33 = vpop.f32.mrb[2].mxu1 }
  0xfc   :  { %v2930_v34 = vpop.f32.mrb[3].mxu0  ;;  %v2932_v35 = vpop.f32.mrb[3].mxu1 }
  0xff   :  { %v2934_v36 = vpop.f32.mrb[4].mxu0  ;;  %v2936_v37 = vpop.f32.mrb[4].mxu1 }
 0x100   :  { %v2938_v38 = vpop.f32.mrb[5].mxu0  ;;  %v2940_v39 = vpop.f32.mrb[5].mxu1 }
 0x103   :  { %v2942_v40 = vpop.f32.mrb[6].mxu0  ;;  %v2944_v41 = vpop.f32.mrb[6].mxu1 }
 0x104   :  { %v2946_v42 = vpop.f32.mrb[7].mxu0  ;;  %v2948_v43 = vpop.f32.mrb[7].mxu1 }
 0x107   :  { %v2950_v44 = vpop.f32.mrb[8].mxu0  ;;  %v2952_v45 = vpop.f32.mrb[8].mxu1 }
 0x108   :  { %v2954_v46 = vpop.f32.mrb[9].mxu0  ;;  %v2956_v47 = vpop.f32.mrb[9].mxu1 }
 0x10b   :  { %v2958_v48 = vpop.f32.mrb[10].mxu0  ;;  %v2960_v49 = vpop.f32.mrb[10].mxu1 }
 0x10c   :  { %v2962_v50 = vpop.f32.mrb[11].mxu0  ;;  %v2964_v51 = vpop.f32.mrb[11].mxu1 }
 0x10f   :  { %v2966_v52 = vpop.f32.mrb[12].mxu0  ;;  %v2968_v53 = vpop.f32.mrb[12].mxu1 }
 0x110   :  { %v2970_v54 = vpop.f32.mrb[13].mxu0  ;;  %v2972_v55 = vpop.f32.mrb[13].mxu1 }
 0x113   :  { %v2974_v56 = vpop.f32.mrb[14].mxu0  ;;  %v2976_v57 = vpop.f32.mrb[14].mxu1 }
 0x114   :  { %v2978_v58 = vpop.f32.mrb[15].mxu0  ;;  %v2980_v59 = vpop.f32.mrb[15].mxu1 }
 0x117   :  { %v2982_v60 = vpop.f32.mrb[16].mxu0  ;;  %v2984_v61 = vpop.f32.mrb[16].mxu1 }
 0x118   :  { %v2986_v62 = vpop.f32.mrb[17].mxu0  ;;  %v2988_v63 = vpop.f32.mrb[17].mxu1 }
 0x11b   :  { %v2990_v0 = vpop.f32.mrb[18].mxu0  ;;  %v2992_v1 = vpop.f32.mrb[18].mxu1 }
 0x11c   :  { %v2994_v2 = vpop.f32.mrb[19].mxu0  ;;  %v2996_v3 = vpop.f32.mrb[19].mxu1 }
 0x11f   :  { %v2998_v4 = vpop.f32.mrb[20].mxu0  ;;  %v3000_v5 = vpop.f32.mrb[20].mxu1 }
 0x120   :  { %v3002_v6 = vpop.f32.mrb[21].mxu0  ;;  %v3004_v7 = vpop.f32.mrb[21].mxu1 }
 0x123   :  { %v3006_v8 = vpop.f32.mrb[22].mxu0  ;;  %v3008_v9 = vpop.f32.mrb[22].mxu1 }
 0x124   :  { %v3010_v10 = vpop.f32.mrb[23].mxu0  ;;  %v3012_v11 = vpop.f32.mrb[23].mxu1 }
 0x127   :  { %v3014_v12 = vpop.f32.mrb[24].mxu0  ;;  %v3016_v13 = vpop.f32.mrb[24].mxu1 }
 0x128   :  { %v3018_v14 = vpop.f32.mrb[25].mxu0  ;;  %v3020_v15 = vpop.f32.mrb[25].mxu1 }
 0x12b   :  { %v3022_v16 = vpop.f32.mrb[26].mxu0  ;;  %v3024_v17 = vpop.f32.mrb[26].mxu1 }
 0x12c   :  { %v3026_v18 = vpop.f32.mrb[27].mxu0  ;;  %v3028_v19 = vpop.f32.mrb[27].mxu1 }
 0x12d   :  { %4082 = vst [vmem:[#allocation2_spill] sm:$0xff] %v3026_v18  ;;  %4083 = vst [vmem:[#allocation3_spill] sm:$0xff] %v3028_v19 }
 0x12f   :  { %v3030_v20 = vpop.f32.mrb[28].mxu0  ;;  %v3032_v21 = vpop.f32.mrb[28].mxu1 }
 0x130   :  { %4084 = vst [vmem:[#allocation4_spill] sm:$0xff] %v3030_v20  ;;  %4085 = vst [vmem:[#allocation5_spill] sm:$0xff] %v3032_v21  ;;  %v3034_v22 = vpop.f32.mrb[29].mxu0  ;;  %v3036_v23 = vpop.f32.mrb[29].mxu1  ;;  %v3053_v21 = vadd.f32 %v2918_v28, %v3041_v24  ;;  %v3073_v28 = vadd.f32 %v2928_v33, %v3041_v24 }
 0x131   :  { %4086 = vst [vmem:[#allocation6_spill] sm:$0xff] %v3034_v22  ;;  %4087 = vst [vmem:[#allocation7_spill] sm:$0xff] %v3036_v23  ;;  %v3057_v23 = vadd.f32 %v2920_v29, %v3041_v24  ;;  %v3061_v22 = vadd.f32 %v3041_v24, %v2922_v30  ;;  %v3077_v29 = vadd.f32 %v3041_v24, %v2930_v34 }
 0x132   :  { %4093 = vst [vmem:[#allocation13_spill] sm:$0xff] %v3073_v28  ;;  %v3130_v34 = vadd.f32 %v3041_v24, %v2946_v42  ;;  %v3151_v42 = vadd.f32 %v3041_v24, %v2954_v46  ;;  %v3167_v46 = vadd.f32 %v2960_v49, %v3041_v24  ;;  %v3181_v28 = vadd.f32 %v3041_v24, %v2964_v51 }
 0x133   :  { %v3043_v25 = vpop.f32.mrb[30].mxu0  ;;  %v3045_v26 = vpop.f32.mrb[30].mxu1  ;;  %v3185_v49 = vadd.f32 %v2966_v52, %v3041_v24  ;;  %v3202_v52 = vadd.f32 %v3041_v24, %v2970_v54  ;;  %v3216_v51 = vadd.f32 %v2976_v57, %v3041_v24 }
 0x134   :  { %4088 = vst [vmem:[#allocation8_spill] sm:$0xff] %v3043_v25  ;;  %4089 = vst [vmem:[#allocation9_spill] sm:$0xff] %v3045_v26  ;;  %v3047_v27 = vpop.f32.mrb[31].mxu0  ;;  %v3049_v19 = vpop.f32.mrb[31].mxu1  ;;  %v3065_v25 = vadd.f32 %v3041_v24, %v2924_v31  ;;  %v3085_v31 = vadd.f32 %v3041_v24, %v2932_v35  ;;  %v3120_v35 = vadd.f32 %v2944_v41, %v3041_v24 }
 0x135   :  { %4090 = vst [vmem:[#allocation10_spill] sm:$0xff] %v3047_v27  ;;  %4091 = vst [vmem:[#allocation11_spill] sm:$0xff] %v3049_v19  ;;  %v3069_v27 = vadd.f32 %v2926_v32, %v3041_v24  ;;  %v3089_v32 = vadd.f32 %v2934_v36, %v3041_v24  ;;  %v3106_v36 = vadd.f32 %v3041_v24, %v2938_v38 }
 0x136   :  { %4100 = vst [vmem:[#allocation20_spill] sm:$0xff] %v3120_v35  ;;  %4101 = vst [vmem:[#allocation21_spill] sm:$0xff] %v3130_v34  ;;  %v3206_v34 = vadd.f32 %v3041_v24, %v2972_v55  ;;  %v3243_v55 = vadd.f32 %v2984_v61, %v3041_v24 }
 0x137   :  { %4092 = vst [vmem:[#allocation12_spill] sm:$0xff] %v3069_v27  ;;  %v3079_v19 = vpop.f32.mrb[32].mxu0  ;;  %v3081_v30 = vpop.f32.mrb[32].mxu1  ;;  %4096 = vst [vmem:[#allocation16_spill] sm:$0xff] %v3089_v32  ;;  %v3143_v27 = vadd.f32 %v2950_v44, %v3041_v24  ;;  %v3157_v32 = vadd.f32 %v3041_v24, %v2956_v47  ;;  %v3161_v44 = vadd.f32 %v2958_v48, %v3041_v24 }
 0x138   :  { %4094 = vst [vmem:[#allocation14_spill] sm:$0xff] %v3079_v19  ;;  %4095 = vst [vmem:[#allocation15_spill] sm:$0xff] %v3081_v30  ;;  %v3091_v26 = vpop.f32.mrb[33].mxu0  ;;  %v3093_v33 = vpop.f32.mrb[33].mxu1  ;;  %v3100_v30 = vadd.f32 %v2936_v37, %v3041_v24  ;;  %v3116_v37 = vadd.f32 %v2942_v40, %v3041_v24  ;;  %v3134_v40 = vadd.f32 %v3041_v24, %v2948_v43 }
 0x139   :  { %4097 = vst [vmem:[#allocation17_spill] sm:$0xff] %v3093_v33  ;;  %v3110_v33 = vadd.f32 %v3041_v24, %v2940_v39  ;;  %v3147_v39 = vadd.f32 %v2952_v45, %v3041_v24  ;;  %4103 = vst [vmem:[#allocation23_spill] sm:$0xff] %v3161_v44  ;;  %v3171_v43 = vadd.f32 %v3041_v24, %v2962_v50 }
 0x13a   :  { %4098 = vst [vmem:[#allocation18_spill] sm:$0xff] %v3100_v30  ;;  %4099 = vst [vmem:[#allocation19_spill] sm:$0xff] %v3116_v37  ;;  %v3196_v48 = vadd.f32 %v2968_v53, %v3041_v24  ;;  %v3212_v53 = vadd.f32 %v2974_v56, %v3041_v24  ;;  %v3226_v37 = vadd.f32 %v3041_v24, %v2978_v58 }
 0x13b   :  { %v3122_v18 = vpop.f32.mrb[34].mxu0  ;;  %v3124_v38 = vpop.f32.mrb[34].mxu1  ;;  %4102 = vst [vmem:[#allocation22_spill] sm:$0xff] %v3134_v40  ;;  %4104 = vst [vmem:[#allocation24_spill] sm:$0xff] %v3167_v46  ;;  %v3230_v56 = vadd.f32 %v3041_v24, %v2980_v59  ;;  %v3239_v44 = vadd.f32 %v2982_v60, %v3041_v24  ;;  %v3247_v58 = vadd.f32 %v3041_v24, %v2986_v62 }
 0x13c   :  { %v3136_v20 = vpop.f32.mrb[35].mxu0  ;;  %v3138_v41 = vpop.f32.mrb[35].mxu1  ;;  %4105 = vst [vmem:[#allocation25_spill] sm:$0xff] %v3185_v49  ;;  %4106 = vst [vmem:[#allocation26_spill] sm:$0xff] %v3196_v48  ;;  %v3253_v49 = vadd.f32 %v3041_v24, %v2988_v63  ;;  %v3257_v60 = vadd.f32 %v2990_v0, %v3041_v24  ;;  %v3263_v62 = vadd.f32 %v2992_v1, %v3041_v24 }
 0x13d   :  { %4107 = vst [vmem:[#allocation27_spill] sm:$0xff] %v3212_v53  ;;  %4108 = vst [vmem:[#allocation28_spill] sm:$0xff] %v3216_v51  ;;  %v3267_v59 = vadd.f32 %v3041_v24, %v2994_v2  ;;  %v3277_v46 = vadd.f32 %v3041_v24, %v2996_v3  ;;  %v3281_v1 = vadd.f32 %v2998_v4, %v3041_v24 }
 0x13e   :  { %4109 = vst [vmem:[#allocation29_spill] sm:$0xff] %v3230_v56  ;;  %v3292_v0 = vadd.f32 %v3000_v5, %v3041_v24  ;;  %v3298_v4 = vadd.f32 %v3041_v24, %v3002_v6  ;;  %v3308_v5 = vadd.f32 %v3006_v8, %v3041_v24  ;;  %v3312_v3 = vadd.f32 %v3008_v9, %v3041_v24 }
 0x13f   :  { %v3173_v19 = vpop.f32.mrb[36].mxu0  ;;  %v3175_v47 = vpop.f32.mrb[36].mxu1  ;;  %4110 = vst [vmem:[#allocation30_spill] sm:$0xff] %v3281_v1  ;;  %v3322_v53 = vadd.f32 %v3041_v24, %v3010_v10  ;;  %v3326_v8 = vadd.f32 %v3041_v24, %v3012_v11  ;;  %v3343_v10 = vadd.f32 %v3041_v24, %v3018_v14  ;;  %v3359_v14 = vadd.f32 %v3024_v17, %v3041_v24  ;;  %v4129_v1 = vld [vmem:[#allocation3_spill] sm:$0xff] }
 0x140   :  { %v3187_v45 = vpop.f32.mrb[37].mxu0  ;;  %v3189_v50 = vpop.f32.mrb[37].mxu1  ;;  %4112 = vst [vmem:[#allocation32_spill] sm:$0xff] %v3292_v0  ;;  %4113 = vst [vmem:[#allocation33_spill] sm:$0xff] %v3308_v5  ;;  %v4140_v0 = vld [vmem:[#allocation8_spill] sm:$0xff] }
 0x141   :  { %4114 = vst [vmem:[#allocation34_spill] sm:$0xff] %v3312_v3  ;;  %4117 = vst [vmem:[#allocation37_spill] sm:$0xff] %v3322_v53 }
 0x142   :  { %4118 = vst [vmem:[#allocation38_spill] sm:$0xff] %v3326_v8  ;;  %4124 = vst [vmem:[#allocation44_spill] sm:$0xff] %v3359_v14 }
 0x143   :  { %v3218_v40 = vpop.f32.mrb[38].mxu0  ;;  %v3220_v54 = vpop.f32.mrb[38].mxu1 }
 0x144   :  { %v3232_v35 = vpop.f32.mrb[39].mxu0  ;;  %v3234_v57 = vpop.f32.mrb[39].mxu1 }
 0x147   :  { %v3269_v30 = vpop.f32.mrb[40].mxu0  ;;  %v3271_v63 = vpop.f32.mrb[40].mxu1 }
 0x148   :  { %v3283_v61 = vpop.f32.mrb[41].mxu0  ;;  %v3285_v2 = vpop.f32.mrb[41].mxu1 }
 0x149   :  { %4111 = vst [vmem:[#allocation31_spill] sm:$0xff] %v3285_v2  ;;  %v3302_v2 = vadd.f32 %v3041_v24, %v3004_v7  ;;  %v3339_v7 = vadd.f32 %v3016_v13, %v3041_v24  ;;  %v4130_v13 = vld [vmem:[#allocation4_spill] sm:$0xff] }
 0x14a   :  { %v3377_v17 = vadd.f32 %v4130_v13, %v3041_v24  ;;  %v4136_v13 = vld [vmem:[#allocation6_spill] sm:$0xff] }
 0x14b   :  { %v3314_v56 = vpop.f32.mrb[42].mxu0  ;;  %v3316_v6 = vpop.f32.mrb[42].mxu1  ;;  %4122 = vst [vmem:[#allocation42_spill] sm:$0xff] %v3339_v7  ;;  %v3394_v53 = vadd.f32 %v3041_v24, %v4136_v13 }
 0x14c   :  { %4115 = vst [vmem:[#allocation35_spill] sm:$0xff] %v3314_v56  ;;  %4116 = vst [vmem:[#allocation36_spill] sm:$0xff] %v3316_v6  ;;  %v3328_v51 = vpop.f32.mrb[43].mxu0  ;;  %v3330_v9 = vpop.f32.mrb[43].mxu1  ;;  %v3335_v6 = vadd.f32 %v3014_v12, %v3041_v24  ;;  %v3353_v12 = vadd.f32 %v3022_v16, %v3041_v24  ;;  %v3373_v56 = vadd.f32 %v3041_v24, %v4129_v1  ;;  %v4134_v16 = vld [vmem:[#allocation5_spill] sm:$0xff] }
 0x14d   :  { %4119 = vst [vmem:[#allocation39_spill] sm:$0xff] %v3328_v51  ;;  %4120 = vst [vmem:[#allocation40_spill] sm:$0xff] %v3330_v9  ;;  %v3349_v9 = vadd.f32 %v3041_v24, %v3020_v15  ;;  %v4125_v51 = vld [vmem:[#allocation2_spill] sm:$0xff]  ;;  %v3388_v5 = vadd.f32 %v4134_v16, %v3041_v24  ;;  %v3404_v16 = vadd.f32 %v4140_v0, %v3041_v24  ;;  %v4142_v1 = vld [vmem:[#allocation9_spill] sm:$0xff] }
 0x14e   :  { %4121 = vst [vmem:[#allocation41_spill] sm:$0xff] %v3335_v6  ;;  %4123 = vst [vmem:[#allocation43_spill] sm:$0xff] %v3353_v12  ;;  %v3363_v11 = vadd.f32 %v3041_v24, %v4125_v51  ;;  %v3408_v7 = vadd.f32 %v4142_v1, %v3041_v24  ;;  %v4146_v6 = vld [vmem:[#allocation10_spill] sm:$0xff] }
 0x14f   :  { %v3365_v48 = vpop.f32.mrb[44].mxu0  ;;  %v3367_v15 = vpop.f32.mrb[44].mxu1  ;;  %4131 = vst [vmem:[#allocation3_spill] sm:$0xff] %v3377_v17  ;;  %4135 = vst [vmem:[#allocation5_spill] sm:$0xff] %v3388_v5  ;;  %v4154_v17 = vld [vmem:[#allocation17_spill] sm:$0xff] }
 0x150   :  { %4126 = vst [vmem:[#allocation2_spill] sm:$0xff] %v3363_v11  ;;  %4127 = vst [vmem:[#allocation45_spill] sm:$0xff] %v3365_v48  ;;  %v3379_v3 = vpop.f32.mrb[45].mxu0  ;;  %v3381_v51 = vpop.f32.mrb[45].mxu1  ;;  %v4147_v48 = vld [vmem:[#allocation11_spill] sm:$0xff] }
 0x151   :  { %4128 = vst [vmem:[#allocation46_spill] sm:$0xff] %v3367_v15  ;;  %4132 = vst [vmem:[#allocation4_spill] sm:$0xff] %v3379_v3  ;;  %v4138_v3 = vld [vmem:[#allocation7_spill] sm:$0xff]  ;;  %v3418_v15 = vadd.f32 %v3041_v24, %v4146_v6  ;;  %v3422_v0 = vadd.f32 %v3041_v24, %v4147_v48  ;;  %v3439_v6 = vadd.f32 %v3041_v24, %v3091_v26 }
 0x152   :  { %4133 = vst [vmem:[#allocation47_spill] sm:$0xff] %v3381_v51  ;;  %4137 = vst [vmem:[#allocation6_spill] sm:$0xff] %v3394_v53  ;;  %v3398_v51 = vadd.f32 %v3041_v24, %v4138_v3  ;;  %v4152_v3 = vld [vmem:[#allocation15_spill] sm:$0xff]  ;;  %v3455_v26 = vadd.f32 %v3124_v38, %v3041_v24  ;;  %v3459_v48 = vadd.f32 %v3041_v24, %v3136_v20 }
 0x153   :  { %4141 = vst [vmem:[#allocation8_spill] sm:$0xff] %v3404_v16  ;;  %4143 = vst [vmem:[#allocation9_spill] sm:$0xff] %v3408_v7  ;;  %v3410_v8 = vpop.f32.mrb[46].mxu0  ;;  %v3412_v13 = vpop.f32.mrb[46].mxu1  ;;  %v3435_v12 = vadd.f32 %v4152_v3, %v3041_v24  ;;  %v3474_v53 = vadd.f32 %v3041_v24, %v3138_v41  ;;  %v3482_v38 = vadd.f32 %v3173_v19, %v3041_v24 }
 0x154   :  { %4139 = vst [vmem:[#allocation7_spill] sm:$0xff] %v3398_v51  ;;  %4144 = vst [vmem:[#allocation48_spill] sm:$0xff] %v3410_v8  ;;  %v3424_v14 = vpop.f32.mrb[47].mxu0  ;;  %v3426_v1 = vpop.f32.mrb[47].mxu1  ;;  %v3486_v7 = vadd.f32 %v3175_v47, %v3041_v24  ;;  %v4162_v51 = vmax.f32 %v3061_v22, 0.0  ;;  %v3497_v47 = vadd.f32 %v3041_v24, %v3187_v45 }
 0x155   :  { %4145 = vst [vmem:[#allocation49_spill] sm:$0xff] %v3412_v13  ;;  %4148 = vst [vmem:[#allocation10_spill] sm:$0xff] %v3424_v14  ;;  %v4150_v13 = vld [vmem:[#allocation14_spill] sm:$0xff] }
 0x156   :  { %4149 = vst [vmem:[#allocation11_spill] sm:$0xff] %v3426_v1  ;;  %v3431_v11 = vadd.f32 %v4150_v13, %v3041_v24  ;;  %4153 = vst [vmem:[#allocation15_spill] sm:$0xff] %v3435_v12  ;;  %v3445_v1 = vadd.f32 %v3041_v24, %v4154_v17  ;;  %v3449_v13 = vadd.f32 %v3122_v18, %v3041_v24 }
 0x157   :  { %4156 = vst [vmem:[#allocation50_spill] sm:$0xff] %v3455_v26  ;;  %v1993_v14 = vpop.f32.mrb[48].mxu0  ;;  %v2140_v5 = vpop.f32.mrb[48].mxu1  ;;  %4159 = vst [vmem:[#allocation53_spill] sm:$0xff] %v3474_v53 }
 0x158   :  { %4151 = vst [vmem:[#allocation14_spill] sm:$0xff] %v3431_v11  ;;  %4155 = vst [vmem:[#allocation17_spill] sm:$0xff] %v3449_v13  ;;  %v545_v18 = vadd.f32 %v1993_v14, %v3041_v24  ;;  %v1035_v8 = vadd.f32 %v2140_v5, %v3041_v24  ;;  %v3465_v16 = vpop.f32.mrb[49].mxu0  ;;  %v3467_v3 = vpop.f32.mrb[49].mxu1 }
 0x159   :  { %4157 = vst [vmem:[#allocation51_spill] sm:$0xff] %v3465_v16  ;;  %4158 = vst [vmem:[#allocation52_spill] sm:$0xff] %v3467_v3 }
 0x15a   :  { %v1327_v17 = vmax.f32 %v545_v18, 0.0  ;;  %v1425_v5 = vmax.f32 %v1035_v8, 0.0  ;;  %4160 = vst [vmem:[#allocation54_spill] sm:$0xff] %v3482_v38  ;;  %4161 = vst [vmem:[#allocation55_spill] sm:$0xff] %v3486_v7  ;;  %v4163_v18 = vmax.f32 %v3065_v25, 0.0  ;;  %v3503_v25 = vadd.f32 %v3041_v24, %v3189_v50 }
 0x15b   :  { %v1996_v41 = vpop.f32.mrb[50].mxu0  ;;  %v2143_v20 = vpop.f32.mrb[50].mxu1  ;;  %v4165_v50 = vmax.f32 %v3085_v31, 0.0 }
 0x15c   :  { %v1474_v12 = vmax.f32 %v4162_v51, %v1327_v17  ;;  %v1523_v8 = vmax.f32 %v4163_v18, %v1425_v5  ;;  %v555_v16 = vadd.f32 %v1996_v41, %v3041_v24  ;;  %v1045_v14 = vadd.f32 %v2143_v20, %v3041_v24  ;;  %v549_v3 = vpop.f32.mrb[51].mxu0  ;;  %v1039_v26 = vpop.f32.mrb[51].mxu1 }
 0x15d   :  { %v550_v13 = vadd.f32 %v3041_v24, %v549_v3  ;;  %v1040_v22 = vadd.f32 %v3041_v24, %v1039_v26  ;;  %v4164_v3 = vmax.f32 %v3077_v29, 0.0  ;;  %v4167_v20 = vmax.f32 %v3057_v23, 0.0 }
 0x15e   :  { %v1572_v51 = vmax.f32 %v1474_v12, %v1523_v8  ;;  %v1329_v17 = vmax.f32 %v555_v16, 0.0  ;;  %v1427_v5 = vmax.f32 %v1045_v14, 0.0  ;;  %v4168_v23 = vmax.f32 %v3106_v36, 0.0 }
 0x15f   :  { %v1328_v18 = vmax.f32 %v550_v13, 0.0  ;;  %v1426_v19 = vmax.f32 %v1040_v22, 0.0  ;;  %v1999_v11 = vpop.f32.mrb[52].mxu0  ;;  %v2146_v45 = vpop.f32.mrb[52].mxu1  ;;  %v4166_v13 = vmax.f32 %v3053_v21, 0.0 }
 0x160   :  { %1621 = vst [vmem:[%s4042_s3] sm:$0xff] %v1572_v51  ;;  %v1476_v26 = vmax.f32 %v4164_v3, %v1329_v17  ;;  %v1525_v12 = vmax.f32 %v4165_v50, %v1427_v5  ;;  %v565_v16 = vadd.f32 %v1999_v11, %v3041_v24  ;;  %v1055_v14 = vadd.f32 %v2146_v45, %v3041_v24  ;;  %v559_v8 = vpop.f32.mrb[53].mxu0  ;;  %v1049_v41 = vpop.f32.mrb[53].mxu1 }
 0x161   :  { %v1475_v22 = vmax.f32 %v4166_v13, %v1328_v18  ;;  %v1524_v7 = vmax.f32 %v4167_v20, %v1426_v19  ;;  %v560_v51 = vadd.f32 %v3041_v24, %v559_v8  ;;  %v1050_v29 = vadd.f32 %v3041_v24, %v1049_v41  ;;  %v4172_v13 = vld [vmem:[#allocation13_spill] sm:$0xff] }
 0x162   :  { %v1314_v17 = vmax.f32 %v3497_v47, 0.0  ;;  %v1574_v31 = vmax.f32 %v1476_v26, %v1525_v12  ;;  %v1331_v5 = vmax.f32 %v565_v16, 0.0  ;;  %v1429_v3 = vmax.f32 %v1055_v14, 0.0  ;;  %v4170_v16 = vld [vmem:[#allocation12_spill] sm:$0xff] }
 0x163   :  { %v1412_v11 = vmax.f32 %v3503_v25, 0.0  ;;  %v1573_v45 = vmax.f32 %v1475_v22, %v1524_v7  ;;  %v1330_v50 = vmax.f32 %v560_v51, 0.0  ;;  %v1428_v38 = vmax.f32 %v1050_v29, 0.0  ;;  %v2002_v53 = vpop.f32.mrb[54].mxu0  ;;  %v2149_v21 = vpop.f32.mrb[54].mxu1 }
 0x164   :  { %1623 = vst [vmem:[%s4042_s3 + $0x10] sm:$0xff] %v1574_v31  ;;  %v1478_v19 = vmax.f32 %v4168_v23, %v1331_v5  ;;  %v4169_v20 = vmax.f32 %v3110_v33, 0.0  ;;  %v575_v18 = vadd.f32 %v2002_v53, %v3041_v24  ;;  %v1065_v26 = vadd.f32 %v2149_v21, %v3041_v24  ;;  %v569_v12 = vpop.f32.mrb[55].mxu0  ;;  %v1059_v7 = vpop.f32.mrb[55].mxu1 }
 0x165   :  { %1622 = vst [vmem:[%s4042_s3 + $0x8] sm:$0xff] %v1573_v45  ;;  %v4171_v14 = vmax.f32 %v4170_v16, 0.0  ;;  %v4173_v22 = vmax.f32 %v4172_v13, 0.0  ;;  %v570_v51 = vadd.f32 %v3041_v24, %v569_v12  ;;  %v1060_v33 = vadd.f32 %v3041_v24, %v1059_v7  ;;  %v4176_v7 = vld [vmem:[#allocation22_spill] sm:$0xff] }
 0x166   :  { %v1527_v41 = vmax.f32 %v4169_v20, %v1429_v3  ;;  %v3544_v53 = vadd.f32 %v3218_v40, %v3041_v24  ;;  %v1333_v31 = vmax.f32 %v575_v18, 0.0  ;;  %v1431_v5 = vmax.f32 %v1065_v26, 0.0  ;;  %v4174_v20 = vld [vmem:[#allocation21_spill] sm:$0xff] }
 0x167   :  { %v1477_v8 = vmax.f32 %v4171_v14, %v1330_v50  ;;  %v1526_v36 = vmax.f32 %v4173_v22, %v1428_v38  ;;  %v3548_v3 = vadd.f32 %v3220_v54, %v3041_v24  ;;  %v1332_v50 = vmax.f32 %v570_v51, 0.0  ;;  %v2005_v23 = vpop.f32.mrb[56].mxu0  ;;  %v2152_v38 = vpop.f32.mrb[56].mxu1  ;;  %v4178_v14 = vld [vmem:[#allocation16_spill] sm:$0xff]  ;;  %v4180_v22 = vld [vmem:[#allocation18_spill] sm:$0xff] }
 0x168   :  { %v1576_v29 = vmax.f32 %v1478_v19, %v1527_v41  ;;  %v1430_v21 = vmax.f32 %v1060_v33, 0.0  ;;  %v4175_v12 = vmax.f32 %v4174_v20, 0.0  ;;  %v4177_v19 = vmax.f32 %v4176_v7, 0.0  ;;  %v579_v26 = vpop.f32.mrb[57].mxu0  ;;  %v1069_v16 = vpop.f32.mrb[57].mxu1 }
 0x169   :  { %v1575_v45 = vmax.f32 %v1477_v8, %v1526_v36  ;;  %v585_v18 = vadd.f32 %v2005_v23, %v3041_v24  ;;  %v1075_v54 = vadd.f32 %v2152_v38, %v3041_v24  ;;  %v4179_v8 = vmax.f32 %v4178_v14, 0.0 }
 0x16a   :  { %1625 = vst [vmem:[%s4042_s3 + $0x20] sm:$0xff] %v1576_v29  ;;  %v1480_v40 = vmax.f32 %v4175_v12, %v1333_v31  ;;  %v1529_v41 = vmax.f32 %v4177_v19, %v1431_v5  ;;  %v4181_v36 = vmax.f32 %v4180_v22, 0.0  ;;  %v580_v33 = vadd.f32 %v3041_v24, %v579_v26 }
 0x16b   :  { %1624 = vst [vmem:[%s4042_s3 + $0x18] sm:$0xff] %v1575_v45  ;;  %v1479_v13 = vmax.f32 %v4179_v8, %v1332_v50  ;;  %v1070_v29 = vadd.f32 %v3041_v24, %v1069_v16  ;;  %v3570_v31 = vadd.f32 %v3041_v24, %v3232_v35  ;;  %v1335_v23 = vmax.f32 %v585_v18, 0.0  ;;  %v2008_v7 = vpop.f32.mrb[58].mxu0  ;;  %v4184_v16 = vld [vmem:[#allocation19_spill] sm:$0xff] }
 0x16c   :  { %v1528_v51 = vmax.f32 %v4181_v36, %v1430_v21  ;;  %v1578_v5 = vmax.f32 %v1480_v40, %v1529_v41  ;;  %v1433_v38 = vmax.f32 %v1075_v54, 0.0  ;;  %v3574_v45 = vadd.f32 %v3041_v24, %v3234_v57  ;;  %v2155_v21 = vpop.f32.mrb[58].mxu1  ;;  %v589_v54 = vpop.f32.mrb[59].mxu0 }
 0x16d   :  { %v1334_v50 = vmax.f32 %v580_v33, 0.0  ;;  %v1432_v12 = vmax.f32 %v1070_v29, 0.0  ;;  %v4182_v19 = vmax.f32 %v3151_v42, 0.0  ;;  %v4183_v40 = vmax.f32 %v3157_v32, 0.0  ;;  %v1079_v26 = vpop.f32.mrb[59].mxu1 }
 0x16e   :  { %v1577_v20 = vmax.f32 %v1479_v13, %v1528_v51  ;;  %1627 = vst [vmem:[%s4042_s3 + $0x30] sm:$0xff] %v1578_v5  ;;  %v595_v18 = vadd.f32 %v2008_v7, %v3041_v24  ;;  %v1085_v57 = vadd.f32 %v2155_v21, %v3041_v24  ;;  %v4185_v14 = vmax.f32 %v4184_v16, 0.0  ;;  %v4186_v13 = vld [vmem:[#allocation20_spill] sm:$0xff] }
 0x16f   :  { %v1482_v35 = vmax.f32 %v4182_v19, %v1335_v23  ;;  %v1531_v41 = vmax.f32 %v4183_v40, %v1433_v38  ;;  %v4187_v22 = vmax.f32 %v4186_v13, 0.0  ;;  %v590_v36 = vadd.f32 %v3041_v24, %v589_v54  ;;  %v2011_v21 = vpop.f32.mrb[60].mxu0  ;;  %v2158_v19 = vpop.f32.mrb[60].mxu1 }
 0x170   :  { %1626 = vst [vmem:[%s4042_s3 + $0x28] sm:$0xff] %v1577_v20  ;;  %v1481_v8 = vmax.f32 %v4185_v14, %v1334_v50  ;;  %v1080_v32 = vadd.f32 %v3041_v24, %v1079_v26  ;;  %v1317_v51 = vmax.f32 %v3544_v53, 0.0  ;;  %v1337_v29 = vmax.f32 %v595_v18, 0.0  ;;  %v599_v18 = vpop.f32.mrb[61].mxu0 }
 0x171   :  { %v1530_v42 = vmax.f32 %v4187_v22, %v1432_v12  ;;  %v1580_v33 = vmax.f32 %v1482_v35, %v1531_v41  ;;  %v1435_v5 = vmax.f32 %v1085_v57, 0.0  ;;  %v1415_v23 = vmax.f32 %v3548_v3, 0.0  ;;  %v1089_v57 = vpop.f32.mrb[61].mxu1 }
 0x172   :  { %v1336_v7 = vmax.f32 %v590_v36, 0.0  ;;  %v1434_v20 = vmax.f32 %v1080_v32, 0.0  ;;  %v4188_v50 = vmax.f32 %v3171_v43, 0.0  ;;  %v4189_v40 = vmax.f32 %v3181_v28, 0.0 }
 0x173   :  { %v1579_v38 = vmax.f32 %v1481_v8, %v1530_v42  ;;  %1629 = vst [vmem:[%s4042_s3 + $0x40] sm:$0xff] %v1580_v33  ;;  %v605_v35 = vadd.f32 %v2011_v21, %v3041_v24  ;;  %v1095_v41 = vadd.f32 %v2158_v19, %v3041_v24  ;;  %v4190_v26 = vmax.f32 %v3143_v27, 0.0  ;;  %v2161_v27 = vpop.f32.mrb[62].mxu1 }
 0x174   :  { %v1484_v12 = vmax.f32 %v4188_v50, %v1337_v29  ;;  %v1533_v54 = vmax.f32 %v4189_v40, %v1435_v5  ;;  %v4191_v14 = vmax.f32 %v3147_v39, 0.0  ;;  %v600_v8 = vadd.f32 %v3041_v24, %v599_v18  ;;  %v1099_v40 = vpop.f32.mrb[63].mxu1  ;;  %v4196_v18 = vld [vmem:[#allocation24_spill] sm:$0xff] }
 0x175   :  { %1628 = vst [vmem:[%s4042_s3 + $0x38] sm:$0xff] %v1579_v38  ;;  %v1483_v16 = vmax.f32 %v4190_v26, %v1336_v7  ;;  %v1090_v28 = vadd.f32 %v3041_v24, %v1089_v57  ;;  %v1316_v13 = vmax.f32 %v3570_v31, 0.0  ;;  %v1339_v42 = vmax.f32 %v605_v35, 0.0  ;;  %v2014_v38 = vpop.f32.mrb[62].mxu0 }
 0x176   :  { %v1532_v43 = vmax.f32 %v4191_v14, %v1434_v20  ;;  %v1582_v22 = vmax.f32 %v1484_v12, %v1533_v54  ;;  %v1437_v36 = vmax.f32 %v1095_v41, 0.0  ;;  %v1414_v32 = vmax.f32 %v3574_v45, 0.0  ;;  %v609_v12 = vpop.f32.mrb[63].mxu0  ;;  %v4194_v54 = vld [vmem:[#allocation23_spill] sm:$0xff] }
 0x177   :  { %v1338_v29 = vmax.f32 %v600_v8, 0.0  ;;  %v1436_v5 = vmax.f32 %v1090_v28, 0.0  ;;  %v4192_v39 = vmax.f32 %v3202_v52, 0.0  ;;  %v4193_v20 = vmax.f32 %v3206_v34, 0.0 }
 0x178   :  { %v1581_v33 = vmax.f32 %v1483_v16, %v1532_v43  ;;  %1631 = vst [vmem:[%s4042_s3 + $0x50] sm:$0xff] %v1582_v22  ;;  %v615_v19 = vadd.f32 %v2014_v38, %v3041_v24  ;;  %v1105_v50 = vadd.f32 %v2161_v27, %v3041_v24  ;;  %v4195_v35 = vmax.f32 %v4194_v54, 0.0  ;;  %v4199_v38 = vld [vmem:[#allocation29_spill] sm:$0xff] }
 0x179   :  { %v1486_v7 = vmax.f32 %v4192_v39, %v1339_v42  ;;  %v1535_v21 = vmax.f32 %v4193_v20, %v1437_v36  ;;  %v4197_v57 = vmax.f32 %v4196_v18, 0.0  ;;  %v610_v26 = vadd.f32 %v3041_v24, %v609_v12 }
 0x17a   :  { %1630 = vst [vmem:[%s4042_s3 + $0x48] sm:$0xff] %v1581_v33  ;;  %v1485_v41 = vmax.f32 %v4195_v35, %v1338_v29  ;;  %v1100_v34 = vadd.f32 %v3041_v24, %v1099_v40  ;;  %v3636_v16 = vadd.f32 %v3269_v30, %v3041_v24  ;;  %v1341_v43 = vmax.f32 %v615_v19, 0.0  ;;  %v2017_v33 = vpop.f32.mrb[64].mxu0  ;;  %v2164_v29 = vpop.f32.mrb[64].mxu1  ;;  %v4201_v19 = vld [vmem:[#allocation25_spill] sm:$0xff]  ;;  %v4203_v40 = vld [vmem:[#allocation26_spill] sm:$0xff] }
 0x17b   :  { %v1534_v52 = vmax.f32 %v4197_v57, %v1436_v5  ;;  %v1584_v14 = vmax.f32 %v1486_v7, %v1535_v21  ;;  %v1439_v8 = vmax.f32 %v1105_v50, 0.0  ;;  %v3640_v28 = vadd.f32 %v3271_v63, %v3041_v24  ;;  %v619_v20 = vpop.f32.mrb[65].mxu0  ;;  %v1109_v21 = vpop.f32.mrb[65].mxu1 }
 0x17c   :  { %v1340_v42 = vmax.f32 %v610_v26, 0.0  ;;  %v1438_v36 = vmax.f32 %v1100_v34, 0.0  ;;  %v4198_v5 = vmax.f32 %v3226_v37, 0.0  ;;  %v4200_v27 = vmax.f32 %v4199_v38, 0.0  ;;  %v4205_v34 = vld [vmem:[#allocation31_spill] sm:$0xff] }
 0x17d   :  { %v1583_v22 = vmax.f32 %v1485_v41, %v1534_v52  ;;  %1633 = vst [vmem:[%s4042_s3 + $0x60] sm:$0xff] %v1584_v14  ;;  %v625_v7 = vadd.f32 %v2017_v33, %v3041_v24  ;;  %v1115_v63 = vadd.f32 %v2164_v29, %v3041_v24  ;;  %v4202_v50 = vmax.f32 %v4201_v19, 0.0 }
 0x17e   :  { %v1488_v30 = vmax.f32 %v4198_v5, %v1341_v43  ;;  %v1537_v39 = vmax.f32 %v4200_v27, %v1439_v8  ;;  %v4204_v54 = vmax.f32 %v4203_v40, 0.0  ;;  %v620_v35 = vadd.f32 %v3041_v24, %v619_v20 }
 0x17f   :  { %1632 = vst [vmem:[%s4042_s3 + $0x58] sm:$0xff] %v1583_v22  ;;  %v1487_v12 = vmax.f32 %v4202_v50, %v1340_v42  ;;  %v1110_v41 = vadd.f32 %v3041_v24, %v1109_v21  ;;  %v3662_v18 = vadd.f32 %v3041_v24, %v3283_v61  ;;  %v1343_v52 = vmax.f32 %v625_v7, 0.0  ;;  %v2020_v42 = vpop.f32.mrb[66].mxu0  ;;  %v4208_v7 = vld [vmem:[#allocation27_spill] sm:$0xff]  ;;  %v4210_v21 = vld [vmem:[#allocation28_spill] sm:$0xff] }
 0x180   :  { %v1536_v37 = vmax.f32 %v4204_v54, %v1438_v36  ;;  %v1586_v57 = vmax.f32 %v1488_v30, %v1537_v39  ;;  %v1441_v26 = vmax.f32 %v1115_v63, 0.0  ;;  %v3666_v14 = vadd.f32 %v3041_v24, %v4205_v34  ;;  %v2167_v36 = vpop.f32.mrb[66].mxu1  ;;  %v629_v27 = vpop.f32.mrb[67].mxu0 }
 0x181   :  { %v1342_v8 = vmax.f32 %v620_v35, 0.0  ;;  %v1440_v22 = vmax.f32 %v1110_v41, 0.0  ;;  %v4206_v33 = vmax.f32 %v3247_v58, 0.0  ;;  %v4207_v29 = vmax.f32 %v3253_v49, 0.0  ;;  %v1119_v39 = vpop.f32.mrb[67].mxu1 }
 0x182   :  { %v1585_v43 = vmax.f32 %v1487_v12, %v1536_v37  ;;  %1635 = vst [vmem:[%s4042_s3 + $0x70] sm:$0xff] %v1586_v57  ;;  %v635_v30 = vadd.f32 %v2020_v42, %v3041_v24  ;;  %v1125_v38 = vadd.f32 %v2167_v36, %v3041_v24  ;;  %v4209_v63 = vmax.f32 %v4208_v7, 0.0  ;;  %v2170_v34 = vpop.f32.mrb[68].mxu1 }
 0x183   :  { %v1490_v61 = vmax.f32 %v4206_v33, %v1343_v52  ;;  %v1539_v5 = vmax.f32 %v4207_v29, %v1441_v26  ;;  %v4211_v19 = vmax.f32 %v4210_v21, 0.0  ;;  %v630_v50 = vadd.f32 %v3041_v24, %v629_v27  ;;  %v2023_v26 = vpop.f32.mrb[68].mxu0  ;;  %v1129_v29 = vpop.f32.mrb[69].mxu1 }
 0x184   :  { %1634 = vst [vmem:[%s4042_s3 + $0x68] sm:$0xff] %v1585_v43  ;;  %v1489_v20 = vmax.f32 %v4209_v63, %v1342_v8  ;;  %v1120_v49 = vadd.f32 %v3041_v24, %v1119_v39  ;;  %v1319_v12 = vmax.f32 %v3636_v16, 0.0  ;;  %v1345_v54 = vmax.f32 %v635_v30, 0.0 }
 0x185   :  { %v1538_v58 = vmax.f32 %v4211_v19, %v1440_v22  ;;  %v1588_v40 = vmax.f32 %v1490_v61, %v1539_v5  ;;  %v1443_v37 = vmax.f32 %v1125_v38, 0.0  ;;  %v1417_v35 = vmax.f32 %v3640_v28, 0.0  ;;  %v639_v61 = vpop.f32.mrb[69].mxu0 }
 0x186   :  { %v1344_v57 = vmax.f32 %v630_v50, 0.0  ;;  %v1442_v52 = vmax.f32 %v1120_v49, 0.0  ;;  %v4212_v43 = vmax.f32 %v3267_v59, 0.0  ;;  %v4213_v22 = vmax.f32 %v3277_v46, 0.0  ;;  %v2026_v49 = vpop.f32.mrb[70].mxu0 }
 0x187   :  { %v1587_v41 = vmax.f32 %v1489_v20, %v1538_v58  ;;  %1637 = vst [vmem:[%s4042_s3 + $0x80] sm:$0xff] %v1588_v40  ;;  %v645_v36 = vadd.f32 %v2023_v26, %v3041_v24  ;;  %v1135_v33 = vadd.f32 %v2170_v34, %v3041_v24  ;;  %v4214_v5 = vmax.f32 %v3239_v44, 0.0  ;;  %v2173_v44 = vpop.f32.mrb[70].mxu1 }
 0x188   :  { %v1492_v8 = vmax.f32 %v4212_v43, %v1345_v54  ;;  %v1541_v42 = vmax.f32 %v4213_v22, %v1443_v37  ;;  %v4215_v38 = vmax.f32 %v3243_v55, 0.0  ;;  %v640_v27 = vadd.f32 %v3041_v24, %v639_v61  ;;  %v1139_v26 = vpop.f32.mrb[71].mxu1 }
 0x189   :  { %1636 = vst [vmem:[%s4042_s3 + $0x78] sm:$0xff] %v1587_v41  ;;  %v1491_v30 = vmax.f32 %v4214_v5, %v1344_v57  ;;  %v1130_v46 = vadd.f32 %v3041_v24, %v1129_v29  ;;  %v1318_v39 = vmax.f32 %v3662_v18, 0.0  ;;  %v1347_v63 = vmax.f32 %v645_v36, 0.0  ;;  %v4221_v5 = vld [vmem:[#allocation36_spill] sm:$0xff] }
 0x18a   :  { %v1540_v59 = vmax.f32 %v4215_v38, %v1442_v52  ;;  %v1590_v7 = vmax.f32 %v1492_v8, %v1541_v42  ;;  %v1445_v20 = vmax.f32 %v1135_v33, 0.0  ;;  %v1416_v21 = vmax.f32 %v3666_v14, 0.0  ;;  %v649_v52 = vpop.f32.mrb[71].mxu0  ;;  %v4220_v42 = vld [vmem:[#allocation35_spill] sm:$0xff] }
 0x18b   :  { %v1346_v58 = vmax.f32 %v640_v27, 0.0  ;;  %v1444_v50 = vmax.f32 %v1130_v46, 0.0  ;;  %v4216_v55 = vmax.f32 %v3298_v4, 0.0  ;;  %v4217_v54 = vmax.f32 %v3302_v2, 0.0  ;;  %v2176_v27 = vpop.f32.mrb[72].mxu1  ;;  %v4222_v46 = vld [vmem:[#allocation37_spill] sm:$0xff] }
 0x18c   :  { %v1589_v19 = vmax.f32 %v1491_v30, %v1540_v59  ;;  %1639 = vst [vmem:[%s4042_s3 + $0x90] sm:$0xff] %v1590_v7  ;;  %v655_v41 = vadd.f32 %v2026_v49, %v3041_v24  ;;  %v1145_v57 = vadd.f32 %v2173_v44, %v3041_v24  ;;  %v4218_v34 = vmax.f32 %v3257_v60, 0.0 }
 0x18d   :  { %v1494_v40 = vmax.f32 %v4216_v55, %v1347_v63  ;;  %v1543_v37 = vmax.f32 %v4217_v54, %v1445_v20  ;;  %v4219_v8 = vmax.f32 %v3263_v62, 0.0  ;;  %v650_v22 = vadd.f32 %v3041_v24, %v649_v52  ;;  %v2029_v62 = vpop.f32.mrb[72].mxu0  ;;  %v4224_v20 = vld [vmem:[#allocation38_spill] sm:$0xff]  ;;  %v1149_v55 = vpop.f32.mrb[73].mxu1 }
 0x18e   :  { %1638 = vst [vmem:[%s4042_s3 + $0x88] sm:$0xff] %v1589_v19  ;;  %v1493_v43 = vmax.f32 %v4218_v34, %v1346_v58  ;;  %v1140_v2 = vadd.f32 %v3041_v24, %v1139_v26  ;;  %v3728_v36 = vadd.f32 %v4220_v42, %v3041_v24  ;;  %v1349_v61 = vmax.f32 %v655_v41, 0.0  ;;  %v659_v44 = vpop.f32.mrb[73].mxu0  ;;  %v4228_v41 = vld [vmem:[#allocation32_spill] sm:$0xff] }
 0x18f   :  { %v1542_v4 = vmax.f32 %v4219_v8, %v1444_v50  ;;  %v1592_v33 = vmax.f32 %v1494_v40, %v1543_v37  ;;  %v1447_v29 = vmax.f32 %v1145_v57, 0.0  ;;  %v3732_v30 = vadd.f32 %v4221_v5, %v3041_v24  ;;  %v4226_v40 = vld [vmem:[#allocation30_spill] sm:$0xff]  ;;  %v4231_v42 = vld [vmem:[#allocation40_spill] sm:$0xff] }
 0x190   :  { %v1348_v38 = vmax.f32 %v650_v22, 0.0  ;;  %v1446_v59 = vmax.f32 %v1140_v2, 0.0  ;;  %v4223_v7 = vmax.f32 %v4222_v46, 0.0  ;;  %v4225_v19 = vmax.f32 %v4224_v20, 0.0 }
 0x191   :  { %v1591_v60 = vmax.f32 %v1493_v43, %v1542_v4  ;;  %1641 = vst [vmem:[%s4042_s3 + $0xa0] sm:$0xff] %v1592_v33  ;;  %v665_v50 = vadd.f32 %v2029_v62, %v3041_v24  ;;  %v1155_v49 = vadd.f32 %v2176_v27, %v3041_v24  ;;  %v4227_v54 = vmax.f32 %v4226_v40, 0.0  ;;  %v4230_v43 = vld [vmem:[#allocation39_spill] sm:$0xff] }
 0x192   :  { %v1496_v63 = vmax.f32 %v4223_v7, %v1349_v61  ;;  %v1545_v58 = vmax.f32 %v4225_v19, %v1447_v29  ;;  %v4229_v57 = vmax.f32 %v4228_v41, 0.0  ;;  %v660_v26 = vadd.f32 %v3041_v24, %v659_v44  ;;  %v4236_v44 = vld [vmem:[#allocation34_spill] sm:$0xff] }
 0x193   :  { %1640 = vst [vmem:[%s4042_s3 + $0x98] sm:$0xff] %v1591_v60  ;;  %v1495_v37 = vmax.f32 %v4227_v54, %v1348_v38  ;;  %v1150_v34 = vadd.f32 %v3041_v24, %v1149_v55  ;;  %v3754_v8 = vadd.f32 %v3041_v24, %v4230_v43  ;;  %v1351_v22 = vmax.f32 %v665_v50, 0.0  ;;  %v2032_v60 = vpop.f32.mrb[74].mxu0  ;;  %v2179_v38 = vpop.f32.mrb[74].mxu1 }
 0x194   :  { %v1544_v52 = vmax.f32 %v4229_v57, %v1446_v59  ;;  %v1594_v4 = vmax.f32 %v1496_v63, %v1545_v58  ;;  %v1449_v2 = vmax.f32 %v1155_v49, 0.0  ;;  %v3758_v33 = vadd.f32 %v3041_v24, %v4231_v42  ;;  %v669_v20 = vpop.f32.mrb[75].mxu0  ;;  %v1159_v19 = vpop.f32.mrb[75].mxu1  ;;  %v4234_v58 = vld [vmem:[#allocation33_spill] sm:$0xff] }
 0x195   :  { %v1350_v29 = vmax.f32 %v660_v26, 0.0  ;;  %v1448_v5 = vmax.f32 %v1150_v34, 0.0  ;;  %v4232_v59 = vmax.f32 %v3343_v10, 0.0  ;;  %v4233_v27 = vmax.f32 %v3349_v9, 0.0 }
 0x196   :  { %v1593_v61 = vmax.f32 %v1495_v37, %v1544_v52  ;;  %1643 = vst [vmem:[%s4042_s3 + $0xb0] sm:$0xff] %v1594_v4  ;;  %v675_v7 = vadd.f32 %v2032_v60, %v3041_v24  ;;  %v1165_v63 = vadd.f32 %v2179_v38, %v3041_v24  ;;  %v4235_v50 = vmax.f32 %v4234_v58, 0.0  ;;  %v2035_v4 = vpop.f32.mrb[76].mxu0 }
 0x197   :  { %v1498_v62 = vmax.f32 %v4232_v59, %v1351_v22  ;;  %v1547_v46 = vmax.f32 %v4233_v27, %v1449_v2  ;;  %v4237_v55 = vmax.f32 %v4236_v44, 0.0  ;;  %v670_v40 = vadd.f32 %v3041_v24, %v669_v20  ;;  %v2182_v22 = vpop.f32.mrb[76].mxu1  ;;  %v4238_v2 = vld [vmem:[#allocation2_spill] sm:$0xff]  ;;  %v679_v59 = vpop.f32.mrb[77].mxu0  ;;  %v4241_v27 = vld [vmem:[#allocation41_spill] sm:$0xff] }
 0x198   :  { %1642 = vst [vmem:[%s4042_s3 + $0xa8] sm:$0xff] %v1593_v61  ;;  %v1497_v49 = vmax.f32 %v4235_v50, %v1350_v29  ;;  %v1160_v9 = vadd.f32 %v3041_v24, %v1159_v19  ;;  %v1321_v54 = vmax.f32 %v3728_v36, 0.0  ;;  %v1353_v41 = vmax.f32 %v675_v7, 0.0 }
 0x199   :  { %v1546_v10 = vmax.f32 %v4237_v55, %v1448_v5  ;;  %v1596_v37 = vmax.f32 %v1498_v62, %v1547_v46  ;;  %v1451_v57 = vmax.f32 %v1165_v63, 0.0  ;;  %v1419_v52 = vmax.f32 %v3732_v30, 0.0  ;;  %v1169_v62 = vpop.f32.mrb[77].mxu1  ;;  %v4243_v63 = vld [vmem:[#allocation42_spill] sm:$0xff] }
 0x19a   :  { %v1352_v34 = vmax.f32 %v670_v40, 0.0  ;;  %v1450_v43 = vmax.f32 %v1160_v9, 0.0  ;;  %v4239_v42 = vmax.f32 %v4238_v2, 0.0  ;;  %v4240_v29 = vmax.f32 %v3373_v56, 0.0 }
 0x19b   :  { %v1595_v26 = vmax.f32 %v1497_v49, %v1546_v10  ;;  %1645 = vst [vmem:[%s4042_s3 + $0xc0] sm:$0xff] %v1596_v37  ;;  %v685_v60 = vadd.f32 %v2035_v4, %v3041_v24  ;;  %v1175_v38 = vadd.f32 %v2182_v22, %v3041_v24  ;;  %v4242_v46 = vmax.f32 %v4241_v27, 0.0  ;;  %v4247_v4 = vld [vmem:[#allocation7_spill] sm:$0xff] }
 0x19c   :  { %v1500_v61 = vmax.f32 %v4239_v42, %v1353_v41  ;;  %v1549_v5 = vmax.f32 %v4240_v29, %v1451_v57  ;;  %v4244_v20 = vmax.f32 %v4243_v63, 0.0  ;;  %v680_v58 = vadd.f32 %v3041_v24, %v679_v59  ;;  %v2038_v41 = vpop.f32.mrb[78].mxu0  ;;  %v2185_v57 = vpop.f32.mrb[78].mxu1 }
 0x19d   :  { %1644 = vst [vmem:[%s4042_s3 + $0xb8] sm:$0xff] %v1595_v26  ;;  %v1499_v7 = vmax.f32 %v4242_v46, %v1352_v34  ;;  %v1170_v56 = vadd.f32 %v3041_v24, %v1169_v62  ;;  %v1320_v50 = vmax.f32 %v3754_v8, 0.0  ;;  %v1355_v44 = vmax.f32 %v685_v60, 0.0  ;;  %v4245_v26 = vld [vmem:[#allocation6_spill] sm:$0xff]  ;;  %v689_v29 = vpop.f32.mrb[79].mxu0  ;;  %v4249_v60 = vld [vmem:[#allocation43_spill] sm:$0xff] }
 0x19e   :  { %v1548_v19 = vmax.f32 %v4244_v20, %v1450_v43  ;;  %v1598_v49 = vmax.f32 %v1500_v61, %v1549_v5  ;;  %v1453_v55 = vmax.f32 %v1175_v38, 0.0  ;;  %v1418_v10 = vmax.f32 %v3758_v33, 0.0  ;;  %v1179_v5 = vpop.f32.mrb[79].mxu1  ;;  %v4251_v62 = vld [vmem:[#allocation44_spill] sm:$0xff]  ;;  %v4253_v20 = vld [vmem:[#allocation45_spill] sm:$0xff] }
 0x19f   :  { %v1354_v9 = vmax.f32 %v680_v58, 0.0  ;;  %v1452_v37 = vmax.f32 %v1170_v56, 0.0  ;;  %v4246_v34 = vmax.f32 %v4245_v26, 0.0  ;;  %v4248_v22 = vmax.f32 %v4247_v4, 0.0  ;;  %v2188_v26 = vpop.f32.mrb[80].mxu1 }
 0x1a0   :  { %v1597_v40 = vmax.f32 %v1499_v7, %v1548_v19  ;;  %1647 = vst [vmem:[%s4042_s3 + $0xd0] sm:$0xff] %v1598_v49  ;;  %v695_v42 = vadd.f32 %v2038_v41, %v3041_v24  ;;  %v1185_v61 = vadd.f32 %v2185_v57, %v3041_v24  ;;  %v4250_v38 = vmax.f32 %v4249_v60, 0.0  ;;  %v2041_v57 = vpop.f32.mrb[80].mxu0 }
 0x1a1   :  { %v1502_v43 = vmax.f32 %v4246_v34, %v1355_v44  ;;  %v1551_v2 = vmax.f32 %v4248_v22, %v1453_v55  ;;  %v4252_v27 = vmax.f32 %v4251_v62, 0.0  ;;  %v690_v7 = vadd.f32 %v3041_v24, %v689_v29  ;;  %v3825_v44 = vld [vmem:[%s4041_s2] ss:$0 sm:$0xff]  ;;  %v4257_v29 = vld [vmem:[#allocation3_spill] sm:$0xff] }
 0x1a2   :  { %1646 = vst [vmem:[%s4042_s3 + $0xc8] sm:$0xff] %v1597_v40  ;;  %v1501_v59 = vmax.f32 %v4250_v38, %v1354_v9  ;;  %v1180_v63 = vadd.f32 %v3041_v24, %v1179_v5  ;;  %v3820_v19 = vadd.f32 %v4253_v20, %v3041_v24  ;;  %v1357_v56 = vmax.f32 %v695_v42, 0.0  ;;  %v4254_v55 = vld [vmem:[#allocation46_spill] sm:$0xff]  ;;  %v699_v42 = vpop.f32.mrb[81].mxu0  ;;  %v4259_v38 = vld [vmem:[#allocation5_spill] sm:$0xff] }
 0x1a3   :  { %v1550_v46 = vmax.f32 %v4252_v27, %v1452_v37  ;;  %v1600_v58 = vmax.f32 %v1502_v43, %v1551_v2  ;;  %v1455_v49 = vmax.f32 %v1185_v61, 0.0  ;;  %v3829_v40 = vadd.f32 %v3825_v44, %v4254_v55  ;;  %v1189_v61 = vpop.f32.mrb[81].mxu1  ;;  %v4261_v27 = vld [vmem:[#allocation4_spill] sm:$0xff] }
 0x1a4   :  { %v1356_v37 = vmax.f32 %v690_v7, 0.0  ;;  %v1454_v41 = vmax.f32 %v1180_v63, 0.0  ;;  %v4255_v24 = vmax.f32 %v3418_v15, 0.0  ;;  %v4256_v43 = vmax.f32 %v3422_v0, 0.0 }
 0x1a5   :  { %v1599_v9 = vmax.f32 %v1501_v59, %v1550_v46  ;;  %1649 = vst [vmem:[%s4042_s3 + $0xe0] sm:$0xff] %v1600_v58  ;;  %v705_v22 = vadd.f32 %v3825_v44, %v2041_v57  ;;  %v1195_v2 = vadd.f32 %v3825_v44, %v2188_v26  ;;  %v4258_v5 = vmax.f32 %v4257_v29, 0.0  ;;  %v4262_v58 = vld [vmem:[#allocation47_spill] sm:$0xff] }
 0x1a6   :  { %v1504_v34 = vmax.f32 %v4255_v24, %v1357_v56  ;;  %v1553_v4 = vmax.f32 %v4256_v43, %v1455_v49  ;;  %v4260_v59 = vmax.f32 %v4259_v38, 0.0  ;;  %v700_v62 = vadd.f32 %v3825_v44, %v699_v42  ;;  %v4265_v42 = vld [vmem:[#allocation8_spill] sm:$0xff] }
 0x1a7   :  { %1648 = vst [vmem:[%s4042_s3 + $0xd8] sm:$0xff] %v1599_v9  ;;  %v1503_v60 = vmax.f32 %v4258_v5, %v1356_v37  ;;  %v1190_v0 = vadd.f32 %v3825_v44, %v1189_v61  ;;  %v3851_v46 = vadd.f32 %v3825_v44, %v4261_v27  ;;  %v1359_v63 = vmax.f32 %v705_v22, 0.0  ;;  %v2044_v37 = vpop.f32.mrb[82].mxu0  ;;  %v4267_v5 = vld [vmem:[#allocation9_spill] sm:$0xff] }
 0x1a8   :  { %v1552_v15 = vmax.f32 %v4260_v59, %v1454_v41  ;;  %v1602_v7 = vmax.f32 %v1504_v34, %v1553_v4  ;;  %v1457_v20 = vmax.f32 %v1195_v2, 0.0  ;;  %v3855_v56 = vadd.f32 %v3825_v44, %v4262_v58  ;;  %v2191_v41 = vpop.f32.mrb[82].mxu1  ;;  %v709_v22 = vpop.f32.mrb[83].mxu0 }
 0x1a9   :  { %v1358_v55 = vmax.f32 %v700_v62, 0.0  ;;  %v1456_v9 = vmax.f32 %v1190_v0, 0.0  ;;  %v4263_v57 = vmax.f32 %v3439_v6, 0.0  ;;  %v4264_v24 = vmax.f32 %v3445_v1, 0.0  ;;  %v1199_v2 = vpop.f32.mrb[83].mxu1  ;;  %v2047_v58 = vpop.f32.mrb[84].mxu0 }
 0x1aa   :  { %v1601_v49 = vmax.f32 %v1503_v60, %v1552_v15  ;;  %1651 = vst [vmem:[%s4042_s3 + $0xf0] sm:$0xff] %v1602_v7  ;;  %v715_v43 = vadd.f32 %v3825_v44, %v2044_v37  ;;  %v1205_v4 = vadd.f32 %v3825_v44, %v2191_v41  ;;  %v4266_v61 = vmax.f32 %v4265_v42, 0.0  ;;  %v4270_v37 = vld [vmem:[#allocation53_spill] sm:$0xff]  ;;  %v4274_v42 = vld [vmem:[#allocation15_spill] sm:$0xff] }
 0x1ab   :  { %v1506_v26 = vmax.f32 %v4263_v57, %v1359_v63  ;;  %v1555_v34 = vmax.f32 %v4264_v24, %v1457_v20  ;;  %v4268_v60 = vmax.f32 %v4267_v5, 0.0  ;;  %v710_v38 = vadd.f32 %v3825_v44, %v709_v22 }
 0x1ac   :  { %1650 = vst [vmem:[%s4042_s3 + $0xe8] sm:$0xff] %v1601_v49  ;;  %v1505_v29 = vmax.f32 %v4266_v61, %v1358_v55  ;;  %v1200_v1 = vadd.f32 %v3825_v44, %v1199_v2  ;;  %v1323_v59 = vmax.f32 %v3820_v19, 0.0  ;;  %v1361_v62 = vmax.f32 %v715_v43, 0.0  ;;  %v2194_v49 = vpop.f32.mrb[84].mxu1 }
 0x1ad   :  { %v1554_v6 = vmax.f32 %v4268_v60, %v1456_v9  ;;  %v1604_v15 = vmax.f32 %v1506_v26, %v1555_v34  ;;  %v1459_v0 = vmax.f32 %v1205_v4, 0.0  ;;  %v1421_v27 = vmax.f32 %v3829_v40, 0.0  ;;  %v719_v34 = vpop.f32.mrb[85].mxu0  ;;  %v1209_v43 = vpop.f32.mrb[85].mxu1  ;;  %v4272_v4 = vld [vmem:[#allocation14_spill] sm:$0xff] }
 0x1ae   :  { %v1360_v63 = vmax.f32 %v710_v38, 0.0  ;;  %v1458_v20 = vmax.f32 %v1200_v1, 0.0  ;;  %v4269_v55 = vmax.f32 %v3459_v48, 0.0  ;;  %v4271_v41 = vmax.f32 %v4270_v37, 0.0 }
 0x1af   :  { %v1603_v7 = vmax.f32 %v1505_v29, %v1554_v6  ;;  %1653 = vst [vmem:[%s4042_s3 + $0x100] sm:$0xff] %v1604_v15  ;;  %v725_v26 = vadd.f32 %v3825_v44, %v2047_v58  ;;  %v1215_v24 = vadd.f32 %v3825_v44, %v2194_v49  ;;  %v4273_v22 = vmax.f32 %v4272_v4, 0.0  ;;  %v2050_v58 = vpop.f32.mrb[86].mxu0  ;;  %v2197_v49 = vpop.f32.mrb[86].mxu1 }
 0x1b0   :  { %v1508_v9 = vmax.f32 %v4269_v55, %v1361_v62  ;;  %v1557_v57 = vmax.f32 %v4271_v41, %v1459_v0  ;;  %v4275_v61 = vmax.f32 %v4274_v42, 0.0  ;;  %v720_v29 = vadd.f32 %v3825_v44, %v719_v34  ;;  %v729_v37 = vpop.f32.mrb[87].mxu0  ;;  %v1219_v41 = vpop.f32.mrb[87].mxu1  ;;  %v4278_v34 = vld [vmem:[#allocation50_spill] sm:$0xff] }
 0x1b1   :  { %1652 = vst [vmem:[%s4042_s3 + $0xf8] sm:$0xff] %v1603_v7  ;;  %v1507_v2 = vmax.f32 %v4273_v22, %v1360_v63  ;;  %v1210_v5 = vadd.f32 %v3825_v44, %v1209_v43  ;;  %v1322_v60 = vmax.f32 %v3851_v46, 0.0  ;;  %v1363_v38 = vmax.f32 %v725_v26, 0.0 }
 0x1b2   :  { %v1556_v48 = vmax.f32 %v4275_v61, %v1458_v20  ;;  %v1606_v6 = vmax.f32 %v1508_v9, %v1557_v57  ;;  %v1461_v1 = vmax.f32 %v1215_v24, 0.0  ;;  %v1420_v15 = vmax.f32 %v3855_v56, 0.0  ;;  %v4276_v57 = vld [vmem:[#allocation17_spill] sm:$0xff] }
 0x1b3   :  { %v1362_v0 = vmax.f32 %v720_v29, 0.0  ;;  %v1460_v7 = vmax.f32 %v1210_v5, 0.0  ;;  %v1510_v63 = vmax.f32 %v1314_v17, %v1363_v38  ;;  %v735_v55 = vadd.f32 %v3825_v44, %v2050_v58  ;;  %v4281_v61 = vld [vmem:[#allocation49_spill] sm:$0xff]  ;;  %v2053_v38 = vpop.f32.mrb[88].mxu0 }
 0x1b4   :  { %v1605_v62 = vmax.f32 %v1507_v2, %v1556_v48  ;;  %1655 = vst [vmem:[%s4042_s3 + $0x110] sm:$0xff] %v1606_v6  ;;  %v1559_v20 = vmax.f32 %v1412_v11, %v1461_v1  ;;  %v1225_v9 = vadd.f32 %v3825_v44, %v2197_v49  ;;  %v4277_v26 = vmax.f32 %v4276_v57, 0.0  ;;  %v4280_v11 = vld [vmem:[#allocation48_spill] sm:$0xff]  ;;  %v2200_v1 = vpop.f32.mrb[88].mxu1  ;;  %v739_v49 = vpop.f32.mrb[89].mxu0 }
 0x1b5   :  { %v4279_v43 = vmax.f32 %v4278_v34, 0.0  ;;  %v730_v17 = vadd.f32 %v3825_v44, %v729_v37  ;;  %v1220_v25 = vadd.f32 %v3825_v44, %v1219_v41  ;;  %v3917_v4 = vadd.f32 %v3825_v44, %v4280_v11  ;;  %v4284_v37 = vld [vmem:[#allocation55_spill] sm:$0xff] }
 0x1b6   :  { %1654 = vst [vmem:[%s4042_s3 + $0x108] sm:$0xff] %v1605_v62  ;;  %v1509_v24 = vmax.f32 %v4277_v26, %v1362_v0  ;;  %v1608_v22 = vmax.f32 %v1510_v63, %v1559_v20  ;;  %v1365_v2 = vmax.f32 %v735_v55, 0.0  ;;  %v1463_v42 = vmax.f32 %v1225_v9, 0.0  ;;  %v1229_v63 = vpop.f32.mrb[89].mxu1  ;;  %v4282_v20 = vld [vmem:[#allocation54_spill] sm:$0xff] }
 0x1b7   :  { %v1558_v47 = vmax.f32 %v4279_v43, %v1460_v7  ;;  %v3921_v48 = vadd.f32 %v3825_v44, %v4281_v61  ;;  %v1364_v5 = vmax.f32 %v730_v17, 0.0  ;;  %v1462_v6 = vmax.f32 %v1220_v25, 0.0  ;;  %v4287_v43 = vld [vmem:[#allocation11_spill] sm:$0xff] }
 0x1b8   :  { %1657 = vst [vmem:[%s4042_s3 + $0x120] sm:$0xff] %v1608_v22  ;;  %v1512_v62 = vmax.f32 %v1316_v13, %v1365_v2  ;;  %v1561_v0 = vmax.f32 %v1414_v32, %v1463_v42  ;;  %v745_v7 = vadd.f32 %v3825_v44, %v2053_v38  ;;  %v1235_v58 = vadd.f32 %v3825_v44, %v2200_v1  ;;  %v4286_v32 = vld [vmem:[#allocation10_spill] sm:$0xff]  ;;  %v2056_v22 = vpop.f32.mrb[90].mxu0  ;;  %v2203_v2 = vpop.f32.mrb[90].mxu1 }
 0x1b9   :  { %v1607_v29 = vmax.f32 %v1509_v24, %v1558_v47  ;;  %v4283_v55 = vmax.f32 %v4282_v20, 0.0  ;;  %v4285_v41 = vmax.f32 %v4284_v37, 0.0  ;;  %v740_v13 = vadd.f32 %v3825_v44, %v739_v49  ;;  %v1239_v38 = vpop.f32.mrb[91].mxu1 }
 0x1ba   :  { %v1230_v45 = vadd.f32 %v3825_v44, %v1229_v63  ;;  %v3943_v57 = vadd.f32 %v3825_v44, %v4286_v32  ;;  %v1610_v26 = vmax.f32 %v1512_v62, %v1561_v0  ;;  %v1367_v24 = vmax.f32 %v745_v7, 0.0  ;;  %v2206_v53 = vpop.f32.mrb[92].mxu1 }
 0x1bb   :  { %1656 = vst [vmem:[%s4042_s3 + $0x118] sm:$0xff] %v1607_v29  ;;  %v1511_v9 = vmax.f32 %v4283_v55, %v1364_v5  ;;  %v1560_v31 = vmax.f32 %v4285_v41, %v1462_v6  ;;  %v1465_v34 = vmax.f32 %v1235_v58, 0.0  ;;  %v3947_v47 = vadd.f32 %v3825_v44, %v4287_v43  ;;  %v749_v6 = vpop.f32.mrb[91].mxu0  ;;  %v1249_v41 = vpop.f32.mrb[93].mxu1 }
 0x1bc   :  { %v1366_v25 = vmax.f32 %v740_v13, 0.0  ;;  %v1464_v11 = vmax.f32 %v1230_v45, 0.0  ;;  %1659 = vst [vmem:[%s4042_s3 + $0x130] sm:$0xff] %v1610_v26  ;;  %v1514_v42 = vmax.f32 %v1318_v39, %v1367_v24  ;;  %v755_v29 = vadd.f32 %v3825_v44, %v2056_v22  ;;  %v2059_v55 = vpop.f32.mrb[92].mxu0 }
 0x1bd   :  { %v1609_v17 = vmax.f32 %v1511_v9, %v1560_v31  ;;  %v1563_v61 = vmax.f32 %v1416_v21, %v1465_v34  ;;  %v1245_v5 = vadd.f32 %v3825_v44, %v2203_v2  ;;  %v750_v39 = vadd.f32 %v3825_v44, %v749_v6  ;;  %v759_v37 = vpop.f32.mrb[93].mxu0 }
 0x1be   :  { %v1513_v1 = vmax.f32 %v1317_v51, %v1366_v25  ;;  %v1562_v18 = vmax.f32 %v1415_v23, %v1464_v11  ;;  %v1240_v14 = vadd.f32 %v3825_v44, %v1239_v38  ;;  %v1325_v21 = vmax.f32 %v3917_v4, 0.0  ;;  %v2062_v16 = vpop.f32.mrb[94].mxu0 }
 0x1bf   :  { %1658 = vst [vmem:[%s4042_s3 + $0x128] sm:$0xff] %v1609_v17  ;;  %v1612_v62 = vmax.f32 %v1514_v42, %v1563_v61  ;;  %v1369_v0 = vmax.f32 %v755_v29, 0.0  ;;  %v1467_v7 = vmax.f32 %v1245_v5, 0.0  ;;  %v1324_v58 = vmax.f32 %v3943_v57, 0.0  ;;  %v4288_v57 = vld [vmem:[#allocation51_spill] sm:$0xff]  ;;  %v769_v25 = vpop.f32.mrb[95].mxu0 }
 0x1c0   :  { %v1611_v49 = vmax.f32 %v1513_v1, %v1562_v18  ;;  %v1368_v63 = vmax.f32 %v750_v39, 0.0  ;;  %v1466_v20 = vmax.f32 %v1240_v14, 0.0  ;;  %v765_v23 = vadd.f32 %v3825_v44, %v2059_v55  ;;  %v2065_v18 = vpop.f32.mrb[96].mxu0 }
 0x1c1   :  { %1661 = vst [vmem:[%s4042_s3 + $0x140] sm:$0xff] %v1612_v62  ;;  %v1516_v3 = vmax.f32 %v1320_v50, %v1369_v0  ;;  %v1565_v51 = vmax.f32 %v1418_v10, %v1467_v7  ;;  %v1255_v9 = vadd.f32 %v3825_v44, %v2206_v53  ;;  %v760_v50 = vadd.f32 %v3825_v44, %v759_v37  ;;  %v779_v14 = vpop.f32.mrb[97].mxu0 }
 0x1c2   :  { %1660 = vst [vmem:[%s4042_s3 + $0x138] sm:$0xff] %v1611_v49  ;;  %v1515_v31 = vmax.f32 %v1319_v12, %v1368_v63  ;;  %v1564_v8 = vmax.f32 %v1417_v35, %v1466_v20  ;;  %v1250_v33 = vadd.f32 %v3825_v44, %v1249_v41  ;;  %v1422_v10 = vmax.f32 %v3947_v47, 0.0  ;;  %v2209_v12 = vpop.f32.mrb[94].mxu1 }
 0x1c3   :  { %v1614_v13 = vmax.f32 %v1516_v3, %v1565_v51  ;;  %v1371_v45 = vmax.f32 %v765_v23, 0.0  ;;  %v1469_v32 = vmax.f32 %v1255_v9, 0.0  ;;  %v540_v26 = vadd.f32 %v3825_v44, %v4288_v57  ;;  %v1259_v11 = vpop.f32.mrb[95].mxu1 }
 0x1c4   :  { %v1613_v24 = vmax.f32 %v1515_v31, %v1564_v8  ;;  %v1370_v34 = vmax.f32 %v760_v50, 0.0  ;;  %v1468_v43 = vmax.f32 %v1250_v33, 0.0  ;;  %v775_v47 = vadd.f32 %v3825_v44, %v2062_v16  ;;  %v2212_v36 = vpop.f32.mrb[96].mxu1 }
 0x1c5   :  { %1663 = vst [vmem:[%s4042_s3 + $0x150] sm:$0xff] %v1614_v13  ;;  %v1518_v28 = vmax.f32 %v1322_v60, %v1371_v45  ;;  %v1567_v35 = vmax.f32 %v1420_v15, %v1469_v32  ;;  %v1265_v17 = vadd.f32 %v3825_v44, %v2209_v12  ;;  %v770_v60 = vadd.f32 %v3825_v44, %v769_v25  ;;  %v4289_v15 = vld [vmem:[#allocation52_spill] sm:$0xff]  ;;  %v1269_v62 = vpop.f32.mrb[97].mxu1 }
 0x1c6   :  { %1662 = vst [vmem:[%s4042_s3 + $0x148] sm:$0xff] %v1613_v24  ;;  %v1517_v22 = vmax.f32 %v1321_v54, %v1370_v34  ;;  %v1566_v46 = vmax.f32 %v1419_v52, %v1468_v43  ;;  %v1260_v56 = vadd.f32 %v3825_v44, %v1259_v11  ;;  %v1030_v2 = vadd.f32 %v3825_v44, %v4289_v15 }
 0x1c7   :  { %v1616_v42 = vmax.f32 %v1518_v28, %v1567_v35  ;;  %v1373_v61 = vmax.f32 %v775_v47, 0.0  ;;  %v1471_v29 = vmax.f32 %v1265_v17, 0.0  ;;  %v1326_v5 = vmax.f32 %v540_v26, 0.0 }
 0x1c8   :  { %v1615_v6 = vmax.f32 %v1517_v22, %v1566_v46  ;;  %v1372_v38 = vmax.f32 %v770_v60, 0.0  ;;  %v1470_v1 = vmax.f32 %v1260_v56, 0.0  ;;  %v785_v52 = vadd.f32 %v3825_v44, %v2065_v18 }
 0x1c9   :  { %1665 = vst [vmem:[%s4042_s3 + $0x160] sm:$0xff] %v1616_v42  ;;  %v1520_v30 = vmax.f32 %v1324_v58, %v1373_v61  ;;  %v1569_v54 = vmax.f32 %v1422_v10, %v1471_v29  ;;  %v1275_v39 = vadd.f32 %v3825_v44, %v2212_v36  ;;  %v780_v49 = vadd.f32 %v3825_v44, %v779_v14 }
 0x1ca   :  { %1664 = vst [vmem:[%s4042_s3 + $0x158] sm:$0xff] %v1615_v6  ;;  %v1519_v0 = vmax.f32 %v1323_v59, %v1372_v38  ;;  %v1568_v7 = vmax.f32 %v1421_v27, %v1470_v1  ;;  %v1270_v58 = vadd.f32 %v3825_v44, %v1269_v62  ;;  %v1424_v63 = vmax.f32 %v1030_v2, 0.0 }
 0x1cb   :  { %v1618_v20 = vmax.f32 %v1520_v30, %v1569_v54  ;;  %v1375_v55 = vmax.f32 %v785_v52, 0.0  ;;  %v1473_v53 = vmax.f32 %v1275_v39, 0.0  ;;  %v1423_v3 = vmax.f32 %v3921_v48, 0.0 }
 0x1cc   :  { %v1617_v51 = vmax.f32 %v1519_v0, %v1568_v7  ;;  %v1374_v23 = vmax.f32 %v780_v49, 0.0  ;;  %v1472_v9 = vmax.f32 %v1270_v58, 0.0 }
 0x1cd   :  { %1667 = vst [vmem:[%s4042_s3 + $0x170] sm:$0xff] %v1618_v20  ;;  %v1522_v19 = vmax.f32 %v1326_v5, %v1375_v55  ;;  %v1571_v40 = vmax.f32 %v1424_v63, %v1473_v53 }
 0x1ce   :  { %1666 = vst [vmem:[%s4042_s3 + $0x168] sm:$0xff] %v1617_v51  ;;  %v1521_v44 = vmax.f32 %v1325_v21, %v1374_v23  ;;  %v1570_v59 = vmax.f32 %v1423_v3, %v1472_v9 }
 0x1cf   :  { %v1620_v27 = vmax.f32 %v1522_v19, %v1571_v40 }
 0x1d0   :  { %v1619_v37 = vmax.f32 %v1521_v44, %v1570_v59 }
 0x1d1   :  { %1669 = vst [vmem:[%s4042_s3 + $0x180] sm:$0xff] %v1620_v27 }
 0x1d2   :  { %1668 = vst [vmem:[%s4042_s3 + $0x178] sm:$0xff] %v1619_v37 }

// kernel: net_forward.3
= control target key start
LH: loop header
LB: loop body
LE: loop exit
PB: predicated region body
PF: predicated region fallthrough
CT: control target
= control target key end

     0   :  { %v8337_v0 = vmov 0.0|0.0   ;;  %vm5494_vm0 = vmmov 0   ;;  %s8327_s1 = inlined_call_operand.vmem [shape: f32[256,128], index: 1, kind: input, shape index: {}]   ;;  %s8328_s0 = inlined_call_operand.vmem [shape: f32[800,256], index: 0, kind: input, shape index: {}]   ;;  %s8329_s2 = inlined_call_operand.vmem [shape: f32[1,128], index: 2, kind: input, shape index: {}]   ;;  %s8330_s3 = inlined_call_operand.vmem [shape: f32[3200,128], index: 3, kind: input, shape index: {}]   ;;  %s8331_s5 = inlined_call_operand.vmem [shape: f32[128,128], index: 5, kind: input, shape index: {}]   ;;  %s8332_s7 = inlined_call_operand.vmem [shape: f32[128,128], index: 7, kind: input, shape index: {}]   ;;  %s8333_s4 = inlined_call_operand.vmem [shape: f32[1,128], index: 4, kind: input, shape index: {}]   ;;  %s8334_s6 = inlined_call_operand.vmem [shape: f32[1,128], index: 6, kind: input, shape index: {}]   ;;  %s8335_s8 = inlined_call_operand.vmem [shape: f32[1,128], index: 8, kind: input, shape index: {}]   ;;  %s8336_s9 = inlined_call_operand.vmem [shape: f32[8,128], index: 9, kind: output, shape index: {}]  }
   0x1   :  { %4793 = vmatprep.subr.bf16.mxu0 %v8337_v0  ;;  %v232_v1 = vld [vmem:[%s8327_s1] sm:$0xff]  ;;  %v233_v2 = vld [vmem:[%s8327_s1 + $0x8] sm:$0xff]  ;;  %v234_v3 = vld [vmem:[%s8327_s1 + $0x10] sm:$0xff]  ;;  %4841 = vmatprep.subr.bf16.mxu1 %v8337_v0 }
   0x2   :  { %v4794_v4 = vpack.c.bf16 %v233_v2, %v232_v1  ;;  %v235_v5 = vld [vmem:[%s8327_s1 + $0x18] sm:$0xff]  ;;  %v236_v7 = vld [vmem:[%s8327_s1 + $0x20] sm:$0xff]  ;;  %v237_v8 = vld [vmem:[%s8327_s1 + $0x28] sm:$0xff] }
   0x3   :  { %v4797_v6 = vpack.c.bf16 %v235_v5, %v234_v3  ;;  %v4800_v9 = vpack.c.bf16 %v237_v8, %v236_v7  ;;  %v238_v10 = vld [vmem:[%s8327_s1 + $0x30] sm:$0xff]  ;;  %v239_v11 = vld [vmem:[%s8327_s1 + $0x38] sm:$0xff]  ;;  %v33_v12 = vld [vmem:[%s8328_s0 + $0x8] sm:$0xff] }
   0x4   :  { %4795 = vmatpush1.bf16.msra.mxu0 %v4794_v4  ;;  %v4803_v13 = vpack.c.bf16 %v239_v11, %v238_v10  ;;  %335 = vmatprep.mubr.f32.mxu0 %v33_v12  ;;  %v240_v14 = vld [vmem:[%s8327_s1 + $0x40] sm:$0xff]  ;;  %v241_v15 = vld [vmem:[%s8327_s1 + $0x48] sm:$0xff]  ;;  %v242_v17 = vld [vmem:[%s8327_s1 + $0x50] sm:$0xff] }
   0x5   :  { %4796 = vmatprep.subr.bf16.mxu0 %v8337_v0  ;;  %v4806_v16 = vpack.c.bf16 %v241_v15, %v240_v14  ;;  %v243_v18 = vld [vmem:[%s8327_s1 + $0x58] sm:$0xff]  ;;  %v244_v20 = vld [vmem:[%s8327_s1 + $0x60] sm:$0xff]  ;;  %v245_v21 = vld [vmem:[%s8327_s1 + $0x68] sm:$0xff] }
   0x6   :  { %v4809_v19 = vpack.c.bf16 %v243_v18, %v242_v17  ;;  %v4812_v22 = vpack.c.bf16 %v245_v21, %v244_v20  ;;  %v246_v23 = vld [vmem:[%s8327_s1 + $0x70] sm:$0xff]  ;;  %v247_v24 = vld [vmem:[%s8327_s1 + $0x78] sm:$0xff]  ;;  %v248_v26 = vld [vmem:[%s8327_s1 + $0x80] sm:$0xff] }
   0x7   :  { %v4815_v25 = vpack.c.bf16 %v247_v24, %v246_v23  ;;  %v249_v27 = vld [vmem:[%s8327_s1 + $0x88] sm:$0xff]  ;;  %v250_v29 = vld [vmem:[%s8327_s1 + $0x90] sm:$0xff]  ;;  %v251_v30 = vld [vmem:[%s8327_s1 + $0x98] sm:$0xff] }
   0x8   :  { %4798 = vmatpush1.bf16.msra.mxu0 %v4797_v6  ;;  %v4818_v28 = vpack.c.bf16 %v249_v27, %v248_v26  ;;  %v4821_v31 = vpack.c.bf16 %v251_v30, %v250_v29  ;;  %v252_v32 = vld [vmem:[%s8327_s1 + $0xa0] sm:$0xff]  ;;  %v253_v33 = vld [vmem:[%s8327_s1 + $0xa8] sm:$0xff]  ;;  %v254_v35 = vld [vmem:[%s8327_s1 + $0xb0] sm:$0xff] }
   0x9   :  { %4799 = vmatprep.subr.bf16.mxu0 %v8337_v0  ;;  %v4824_v34 = vpack.c.bf16 %v253_v33, %v252_v32  ;;  %v255_v36 = vld [vmem:[%s8327_s1 + $0xb8] sm:$0xff]  ;;  %v256_v38 = vld [vmem:[%s8327_s1 + $0xc0] sm:$0xff]  ;;  %v257_v39 = vld [vmem:[%s8327_s1 + $0xc8] sm:$0xff] }
   0xa   :  { %v4827_v37 = vpack.c.bf16 %v255_v36, %v254_v35  ;;  %v4830_v40 = vpack.c.bf16 %v257_v39, %v256_v38  ;;  %v258_v41 = vld [vmem:[%s8327_s1 + $0xd0] sm:$0xff]  ;;  %v259_v42 = vld [vmem:[%s8327_s1 + $0xd8] sm:$0xff]  ;;  %v260_v44 = vld [vmem:[%s8327_s1 + $0xe0] sm:$0xff] }
   0xb   :  { %v4833_v43 = vpack.c.bf16 %v259_v42, %v258_v41  ;;  %v261_v45 = vld [vmem:[%s8327_s1 + $0xe8] sm:$0xff]  ;;  %v262_v47 = vld [vmem:[%s8327_s1 + $0xf0] sm:$0xff]  ;;  %v263_v48 = vld [vmem:[%s8327_s1 + $0xf8] sm:$0xff] }
   0xc   :  { %4801 = vmatpush1.bf16.msra.mxu0 %v4800_v9  ;;  %v4836_v46 = vpack.c.bf16 %v261_v45, %v260_v44  ;;  %v4839_v49 = vpack.c.bf16 %v263_v48, %v262_v47  ;;  %v32_v50 = vld [vmem:[%s8328_s0] sm:$0xff]  ;;  %v35_v51 = vld [vmem:[%s8328_s0 + $0x18] sm:$0xff]  ;;  %v34_v52 = vld [vmem:[%s8328_s0 + $0x10] sm:$0xff] }
   0xd   :  { %4802 = vmatprep.subr.bf16.mxu0 %v8337_v0  ;;  %v37_v53 = vld [vmem:[%s8328_s0 + $0x28] sm:$0xff]  ;;  %v36_v54 = vld [vmem:[%s8328_s0 + $0x20] sm:$0xff]  ;;  %v39_v55 = vld [vmem:[%s8328_s0 + $0x38] sm:$0xff] }
   0xe   :  { %v38_v56 = vld [vmem:[%s8328_s0 + $0x30] sm:$0xff]  ;;  %v41_v57 = vld [vmem:[%s8328_s0 + $0x48] sm:$0xff]  ;;  %v40_v58 = vld [vmem:[%s8328_s0 + $0x40] sm:$0xff] }
   0xf   :  { %v43_v59 = vld [vmem:[%s8328_s0 + $0x58] sm:$0xff]  ;;  %v42_v60 = vld [vmem:[%s8328_s0 + $0x50] sm:$0xff]  ;;  %v45_v61 = vld [vmem:[%s8328_s0 + $0x68] sm:$0xff] }
  0x10   :  { %4804 = vmatpush1.bf16.msra.mxu0 %v4803_v13  ;;  %v44_v62 = vld [vmem:[%s8328_s0 + $0x60] sm:$0xff]  ;;  %v47_v63 = vld [vmem:[%s8328_s0 + $0x78] sm:$0xff]  ;;  %v46_v1 = vld [vmem:[%s8328_s0 + $0x70] sm:$0xff] }
  0x11   :  { %4805 = vmatprep.subr.bf16.mxu0 %v8337_v0  ;;  %v49_v2 = vld [vmem:[%s8328_s0 + $0x88] sm:$0xff]  ;;  %v48_v3 = vld [vmem:[%s8328_s0 + $0x80] sm:$0xff]  ;;  %v51_v4 = vld [vmem:[%s8328_s0 + $0x98] sm:$0xff] }
  0x12   :  { %v50_v5 = vld [vmem:[%s8328_s0 + $0x90] sm:$0xff]  ;;  %v53_v6 = vld [vmem:[%s8328_s0 + $0xa8] sm:$0xff]  ;;  %v52_v7 = vld [vmem:[%s8328_s0 + $0xa0] sm:$0xff] }
  0x13   :  { %v55_v8 = vld [vmem:[%s8328_s0 + $0xb8] sm:$0xff]  ;;  %v54_v9 = vld [vmem:[%s8328_s0 + $0xb0] sm:$0xff]  ;;  %v57_v10 = vld [vmem:[%s8328_s0 + $0xc8] sm:$0xff] }
  0x14   :  { %4807 = vmatpush1.bf16.msra.mxu0 %v4806_v16  ;;  %v56_v11 = vld [vmem:[%s8328_s0 + $0xc0] sm:$0xff]  ;;  %v59_v12 = vld [vmem:[%s8328_s0 + $0xd8] sm:$0xff]  ;;  %v58_v13 = vld [vmem:[%s8328_s0 + $0xd0] sm:$0xff] }
  0x15   :  { %4808 = vmatprep.subr.bf16.mxu0 %v8337_v0  ;;  %v61_v14 = vld [vmem:[%s8328_s0 + $0xe8] sm:$0xff]  ;;  %v60_v15 = vld [vmem:[%s8328_s0 + $0xe0] sm:$0xff]  ;;  %v63_v16 = vld [vmem:[%s8328_s0 + $0xf8] sm:$0xff] }
  0x16   :  { %v62_v17 = vld [vmem:[%s8328_s0 + $0xf0] sm:$0xff]  ;;  %v65_v18 = vld [vmem:[%s8328_s0 + $0x108] sm:$0xff]  ;;  %v67_v20 = vld [vmem:[%s8328_s0 + $0x118] sm:$0xff] }
  0x17   :  { %v66_v21 = vld [vmem:[%s8328_s0 + $0x110] sm:$0xff]  ;;  %v68_v23 = vld [vmem:[%s8328_s0 + $0x120] sm:$0xff]  ;;  %v71_v24 = vld [vmem:[%s8328_s0 + $0x138] sm:$0xff] }
  0x18   :  { %4810 = vmatpush1.bf16.msra.mxu0 %v4809_v19  ;;  %v64_v19 = vld [vmem:[%s8328_s0 + $0x100] sm:$0xff]  ;;  %v73_v26 = vld [vmem:[%s8328_s0 + $0x148] sm:$0xff]  ;;  %v74_v29 = vld [vmem:[%s8328_s0 + $0x150] sm:$0xff] }
  0x19   :  { %4811 = vmatprep.subr.bf16.mxu0 %v8337_v0  ;;  %v72_v27 = vld [vmem:[%s8328_s0 + $0x140] sm:$0xff]  ;;  %v77_v30 = vld [vmem:[%s8328_s0 + $0x168] sm:$0xff]  ;;  %v79_v32 = vld [vmem:[%s8328_s0 + $0x178] sm:$0xff] }
  0x1a   :  { %v78_v33 = vld [vmem:[%s8328_s0 + $0x170] sm:$0xff]  ;;  %v80_v35 = vld [vmem:[%s8328_s0 + $0x180] sm:$0xff]  ;;  %v83_v36 = vld [vmem:[%s8328_s0 + $0x198] sm:$0xff] }
  0x1b   :  { %v85_v38 = vld [vmem:[%s8328_s0 + $0x1a8] sm:$0xff]  ;;  %v84_v39 = vld [vmem:[%s8328_s0 + $0x1a0] sm:$0xff]  ;;  %v86_v41 = vld [vmem:[%s8328_s0 + $0x1b0] sm:$0xff] }
  0x1c   :  { %4813 = vmatpush1.bf16.msra.mxu0 %v4812_v22  ;;  %v69_v22 = vld [vmem:[%s8328_s0 + $0x128] sm:$0xff]  ;;  %v91_v44 = vld [vmem:[%s8328_s0 + $0x1d8] sm:$0xff]  ;;  %v90_v45 = vld [vmem:[%s8328_s0 + $0x1d0] sm:$0xff] }
  0x1d   :  { %4814 = vmatprep.subr.bf16.mxu0 %v8337_v0  ;;  %v89_v42 = vld [vmem:[%s8328_s0 + $0x1c8] sm:$0xff]  ;;  %v92_v47 = vld [vmem:[%s8328_s0 + $0x1e0] sm:$0xff]  ;;  %v95_v48 = vld [vmem:[%s8328_s0 + $0x1f8] sm:$0xff] }
  0x20   :  { %4816 = vmatpush1.bf16.msra.mxu0 %v4815_v25  ;;  %v70_v25 = vld [vmem:[%s8328_s0 + $0x130] sm:$0xff] }
  0x21   :  { %4817 = vmatprep.subr.bf16.mxu0 %v8337_v0 }
  0x24   :  { %4819 = vmatpush1.bf16.msra.mxu0 %v4818_v28  ;;  %v75_v28 = vld [vmem:[%s8328_s0 + $0x158] sm:$0xff] }
  0x25   :  { %4820 = vmatprep.subr.bf16.mxu0 %v8337_v0 }
  0x28   :  { %4822 = vmatpush1.bf16.msra.mxu0 %v4821_v31  ;;  %v76_v31 = vld [vmem:[%s8328_s0 + $0x160] sm:$0xff] }
  0x29   :  { %4823 = vmatprep.subr.bf16.mxu0 %v8337_v0 }
  0x2c   :  { %4825 = vmatpush1.bf16.msra.mxu0 %v4824_v34  ;;  %v81_v34 = vld [vmem:[%s8328_s0 + $0x188] sm:$0xff] }
  0x2d   :  { %4826 = vmatprep.subr.bf16.mxu0 %v8337_v0 }
  0x30   :  { %4828 = vmatpush1.bf16.msra.mxu0 %v4827_v37  ;;  %v82_v37 = vld [vmem:[%s8328_s0 + $0x190] sm:$0xff] }
  0x31   :  { %4829 = vmatprep.subr.bf16.mxu0 %v8337_v0 }
  0x34   :  { %4831 = vmatpush1.bf16.msra.mxu0 %v4830_v40  ;;  %v87_v40 = vld [vmem:[%s8328_s0 + $0x1b8] sm:$0xff] }
  0x35   :  { %4832 = vmatprep.subr.bf16.mxu0 %v8337_v0 }
  0x38   :  { %4834 = vmatpush1.bf16.msra.mxu0 %v4833_v43  ;;  %v88_v43 = vld [vmem:[%s8328_s0 + $0x1c0] sm:$0xff] }
  0x39   :  { %4835 = vmatprep.subr.bf16.mxu0 %v8337_v0 }
  0x3c   :  { %4837 = vmatpush1.bf16.msra.mxu0 %v4836_v46  ;;  %v93_v46 = vld [vmem:[%s8328_s0 + $0x1e8] sm:$0xff] }
  0x3d   :  { %4838 = vmatprep.subr.bf16.mxu0 %v8337_v0 }
  0x40   :  { %4840 = vmatpush1.bf16.msra.mxu0 %v4839_v49  ;;  %v94_v49 = vld [vmem:[%s8328_s0 + $0x1f0] sm:$0xff] }
  0x41   :  { %5177 = vmatprep.subr.bf16.mxu0 %v8337_v0 }
  0x43   :  { %336 = vmatmul.mubr.f32.vlgmr.msra.gmra.mrb[0].mxu0 %v32_v50  ;;  %v97_v50 = vld [vmem:[%s8328_s0 + $0x208] sm:$0xff] }
  0x44   :  { %340 = vmatprep.mubr.f32.mxu0 %v35_v51  ;;  %v96_v51 = vld [vmem:[%s8328_s0 + $0x200] sm:$0xff] }
  0x47   :  { %341 = vmatmul.mubr.f32.gmra.mrb[2].mxu0 %v34_v52  ;;  %v99_v52 = vld [vmem:[%s8328_s0 + $0x218] sm:$0xff] }
  0x48   :  { %345 = vmatprep.mubr.f32.mxu0 %v37_v53  ;;  %v98_v53 = vld [vmem:[%s8328_s0 + $0x210] sm:$0xff] }
  0x4b   :  { %346 = vmatmul.mubr.f32.gmra.mrb[4].mxu0 %v36_v54  ;;  %v101_v54 = vld [vmem:[%s8328_s0 + $0x228] sm:$0xff] }
  0x4c   :  { %350 = vmatprep.mubr.f32.mxu0 %v39_v55  ;;  %v100_v55 = vld [vmem:[%s8328_s0 + $0x220] sm:$0xff] }
  0x4f   :  { %351 = vmatmul.mubr.f32.gmra.mrb[6].mxu0 %v38_v56  ;;  %v103_v56 = vld [vmem:[%s8328_s0 + $0x238] sm:$0xff] }
  0x50   :  { %355 = vmatprep.mubr.f32.mxu0 %v41_v57  ;;  %v102_v57 = vld [vmem:[%s8328_s0 + $0x230] sm:$0xff] }
  0x53   :  { %356 = vmatmul.mubr.f32.gmra.mrb[8].mxu0 %v40_v58  ;;  %v105_v58 = vld [vmem:[%s8328_s0 + $0x248] sm:$0xff] }
  0x54   :  { %360 = vmatprep.mubr.f32.mxu0 %v43_v59  ;;  %v104_v59 = vld [vmem:[%s8328_s0 + $0x240] sm:$0xff] }
  0x57   :  { %361 = vmatmul.mubr.f32.gmra.mrb[10].mxu0 %v42_v60  ;;  %v107_v60 = vld [vmem:[%s8328_s0 + $0x258] sm:$0xff] }
  0x58   :  { %365 = vmatprep.mubr.f32.mxu0 %v45_v61  ;;  %v106_v61 = vld [vmem:[%s8328_s0 + $0x250] sm:$0xff] }
  0x5b   :  { %366 = vmatmul.mubr.f32.gmra.mrb[12].mxu0 %v44_v62  ;;  %v109_v62 = vld [vmem:[%s8328_s0 + $0x268] sm:$0xff] }
  0x5c   :  { %370 = vmatprep.mubr.f32.mxu0 %v47_v63  ;;  %v108_v63 = vld [vmem:[%s8328_s0 + $0x260] sm:$0xff] }
  0x5f   :  { %371 = vmatmul.mubr.f32.gmra.mrb[14].mxu0 %v46_v1  ;;  %v111_v1 = vld [vmem:[%s8328_s0 + $0x278] sm:$0xff] }
  0x60   :  { %375 = vmatprep.mubr.f32.mxu0 %v49_v2  ;;  %v110_v2 = vld [vmem:[%s8328_s0 + $0x270] sm:$0xff] }
  0x63   :  { %376 = vmatmul.mubr.f32.gmra.mrb[16].mxu0 %v48_v3  ;;  %v113_v3 = vld [vmem:[%s8328_s0 + $0x288] sm:$0xff] }
  0x64   :  { %380 = vmatprep.mubr.f32.mxu0 %v51_v4  ;;  %v112_v4 = vld [vmem:[%s8328_s0 + $0x280] sm:$0xff] }
  0x67   :  { %381 = vmatmul.mubr.f32.gmra.mrb[18].mxu0 %v50_v5  ;;  %v115_v5 = vld [vmem:[%s8328_s0 + $0x298] sm:$0xff] }
  0x68   :  { %385 = vmatprep.mubr.f32.mxu0 %v53_v6  ;;  %v114_v6 = vld [vmem:[%s8328_s0 + $0x290] sm:$0xff] }
  0x6b   :  { %386 = vmatmul.mubr.f32.gmra.mrb[20].mxu0 %v52_v7  ;;  %v117_v7 = vld [vmem:[%s8328_s0 + $0x2a8] sm:$0xff] }
  0x6c   :  { %390 = vmatprep.mubr.f32.mxu0 %v55_v8  ;;  %v116_v8 = vld [vmem:[%s8328_s0 + $0x2a0] sm:$0xff] }
  0x6f   :  { %391 = vmatmul.mubr.f32.gmra.mrb[22].mxu0 %v54_v9  ;;  %v119_v9 = vld [vmem:[%s8328_s0 + $0x2b8] sm:$0xff] }
  0x70   :  { %395 = vmatprep.mubr.f32.mxu0 %v57_v10  ;;  %v118_v10 = vld [vmem:[%s8328_s0 + $0x2b0] sm:$0xff] }
  0x73   :  { %396 = vmatmul.mubr.f32.gmra.mrb[24].mxu0 %v56_v11  ;;  %v121_v11 = vld [vmem:[%s8328_s0 + $0x2c8] sm:$0xff] }
  0x74   :  { %400 = vmatprep.mubr.f32.mxu0 %v59_v12  ;;  %v120_v12 = vld [vmem:[%s8328_s0 + $0x2c0] sm:$0xff] }
  0x77   :  { %401 = vmatmul.mubr.f32.gmra.mrb[26].mxu0 %v58_v13  ;;  %v123_v13 = vld [vmem:[%s8328_s0 + $0x2d8] sm:$0xff] }
  0x78   :  { %405 = vmatprep.mubr.f32.mxu0 %v61_v14  ;;  %v122_v14 = vld [vmem:[%s8328_s0 + $0x2d0] sm:$0xff] }
  0x7b   :  { %406 = vmatmul.mubr.f32.gmra.mrb[28].mxu0 %v60_v15  ;;  %v125_v15 = vld [vmem:[%s8328_s0 + $0x2e8] sm:$0xff] }
  0x7c   :  { %410 = vmatprep.mubr.f32.mxu0 %v63_v16  ;;  %v124_v16 = vld [vmem:[%s8328_s0 + $0x2e0] sm:$0xff] }
  0x7f   :  { %411 = vmatmul.mubr.f32.gmra.mrb[30].mxu0 %v62_v17  ;;  %v127_v17 = vld [vmem:[%s8328_s0 + $0x2f8] sm:$0xff] }
  0x80   :  { %415 = vmatprep.mubr.f32.mxu0 %v65_v18  ;;  %v126_v18 = vld [vmem:[%s8328_s0 + $0x2f0] sm:$0xff] }
  0x83   :  { %416 = vmatmul.mubr.f32.gmra.mrb[32].mxu0 %v64_v19  ;;  %v129_v19 = vld [vmem:[%s8328_s0 + $0x308] sm:$0xff] }
  0x84   :  { %420 = vmatprep.mubr.f32.mxu0 %v67_v20  ;;  %v128_v20 = vld [vmem:[%s8328_s0 + $0x300] sm:$0xff] }
  0x87   :  { %421 = vmatmul.mubr.f32.gmra.mrb[34].mxu0 %v66_v21  ;;  %v131_v21 = vld [vmem:[%s8328_s0 + $0x318] sm:$0xff] }
  0x88   :  { %425 = vmatprep.mubr.f32.mxu0 %v69_v22  ;;  %v130_v22 = vld [vmem:[%s8328_s0 + $0x310] sm:$0xff] }
  0x8b   :  { %426 = vmatmul.mubr.f32.gmra.mrb[36].mxu0 %v68_v23  ;;  %v133_v23 = vld [vmem:[%s8328_s0 + $0x328] sm:$0xff] }
  0x8c   :  { %430 = vmatprep.mubr.f32.mxu0 %v71_v24  ;;  %v132_v24 = vld [vmem:[%s8328_s0 + $0x320] sm:$0xff] }
  0x8f   :  { %431 = vmatmul.mubr.f32.gmra.mrb[38].mxu0 %v70_v25  ;;  %v135_v25 = vld [vmem:[%s8328_s0 + $0x338] sm:$0xff] }
  0x90   :  { %435 = vmatprep.mubr.f32.mxu0 %v73_v26  ;;  %v134_v26 = vld [vmem:[%s8328_s0 + $0x330] sm:$0xff] }
  0x93   :  { %436 = vmatmul.mubr.f32.gmra.mrb[40].mxu0 %v72_v27  ;;  %v137_v27 = vld [vmem:[%s8328_s0 + $0x348] sm:$0xff] }
  0x94   :  { %440 = vmatprep.mubr.f32.mxu0 %v75_v28  ;;  %v136_v28 = vld [vmem:[%s8328_s0 + $0x340] sm:$0xff] }
  0x97   :  { %441 = vmatmul.mubr.f32.gmra.mrb[42].mxu0 %v74_v29  ;;  %v139_v29 = vld [vmem:[%s8328_s0 + $0x358] sm:$0xff] }
  0x98   :  { %445 = vmatprep.mubr.f32.mxu0 %v77_v30  ;;  %v138_v30 = vld [vmem:[%s8328_s0 + $0x350] sm:$0xff] }
  0x9b   :  { %446 = vmatmul.mubr.f32.gmra.mrb[44].mxu0 %v76_v31  ;;  %v141_v31 = vld [vmem:[%s8328_s0 + $0x368] sm:$0xff] }
  0x9c   :  { %450 = vmatprep.mubr.f32.mxu0 %v79_v32 }
  0x9f   :  { %451 = vmatmul.mubr.f32.gmra.mrb[46].mxu0 %v78_v33 }
  0xa0   :  { %455 = vmatprep.mubr.f32.mxu0 %v81_v34  ;;  %v140_v34 = vld [vmem:[%s8328_s0 + $0x360] sm:$0xff] }
  0xa3   :  { %456 = vmatmul.mubr.f32.gmra.mrb[48].mxu0 %v80_v35  ;;  %v143_v35 = vld [vmem:[%s8328_s0 + $0x378] sm:$0xff] }
  0xa4   :  { %460 = vmatprep.mubr.f32.mxu0 %v83_v36 }
  0xa7   :  { %461 = vmatmul.mubr.f32.gmra.mrb[50].mxu0 %v82_v37 }
  0xa8   :  { %465 = vmatprep.mubr.f32.mxu0 %v85_v38  ;;  %v142_v38 = vld [vmem:[%s8328_s0 + $0x370] sm:$0xff] }
  0xab   :  { %466 = vmatmul.mubr.f32.gmra.mrb[52].mxu0 %v84_v39  ;;  %v145_v39 = vld [vmem:[%s8328_s0 + $0x388] sm:$0xff] }
  0xac   :  { %470 = vmatprep.mubr.f32.mxu0 %v87_v40 }
  0xaf   :  { %471 = vmatmul.mubr.f32.gmra.mrb[54].mxu0 %v86_v41 }
  0xb0   :  { %475 = vmatprep.mubr.f32.mxu0 %v89_v42  ;;  %v144_v42 = vld [vmem:[%s8328_s0 + $0x380] sm:$0xff] }
  0xb3   :  { %476 = vmatmul.mubr.f32.gmra.mrb[56].mxu0 %v88_v43  ;;  %v147_v43 = vld [vmem:[%s8328_s0 + $0x398] sm:$0xff] }
  0xb4   :  { %480 = vmatprep.mubr.f32.mxu0 %v91_v44 }
  0xb7   :  { %481 = vmatmul.mubr.f32.gmra.mrb[58].mxu0 %v90_v45 }
  0xb8   :  { %485 = vmatprep.mubr.f32.mxu0 %v93_v46  ;;  %v146_v46 = vld [vmem:[%s8328_s0 + $0x390] sm:$0xff] }
  0xbb   :  { %486 = vmatmul.mubr.f32.gmra.mrb[60].mxu0 %v92_v47  ;;  %v149_v47 = vld [vmem:[%s8328_s0 + $0x3a8] sm:$0xff] }
  0xbc   :  { %490 = vmatprep.mubr.f32.mxu0 %v95_v48 }
  0xbf   :  { %491 = vmatmul.mubr.f32.gmra.mrb[62].mxu0 %v94_v49 }
  0xc0   :  { %495 = vmatprep.mubr.f32.mxu0 %v97_v50  ;;  %v148_v50 = vld [vmem:[%s8328_s0 + $0x3a0] sm:$0xff] }
  0xc3   :  { %496 = vmatmul.mubr.f32.gmra.mrb[64].mxu0 %v96_v51  ;;  %v151_v51 = vld [vmem:[%s8328_s0 + $0x3b8] sm:$0xff] }
  0xc4   :  { %500 = vmatprep.mubr.f32.mxu0 %v99_v52 }
  0xc7   :  { %501 = vmatmul.mubr.f32.gmra.mrb[66].mxu0 %v98_v53 }
  0xc8   :  { %505 = vmatprep.mubr.f32.mxu0 %v101_v54  ;;  %v150_v54 = vld [vmem:[%s8328_s0 + $0x3b0] sm:$0xff] }
  0xcb   :  { %506 = vmatmul.mubr.f32.gmra.mrb[68].mxu0 %v100_v55  ;;  %v153_v55 = vld [vmem:[%s8328_s0 + $0x3c8] sm:$0xff] }
  0xcc   :  { %510 = vmatprep.mubr.f32.mxu0 %v103_v56 }
  0xcf   :  { %511 = vmatmul.mubr.f32.gmra.mrb[70].mxu0 %v102_v57 }
  0xd0   :  { %515 = vmatprep.mubr.f32.mxu0 %v105_v58  ;;  %v152_v58 = vld [vmem:[%s8328_s0 + $0x3c0] sm:$0xff] }
  0xd3   :  { %516 = vmatmul.mubr.f32.gmra.mrb[72].mxu0 %v104_v59  ;;  %v155_v59 = vld [vmem:[%s8328_s0 + $0x3d8] sm:$0xff] }
  0xd4   :  { %520 = vmatprep.mubr.f32.mxu0 %v107_v60 }
  0xd7   :  { %521 = vmatmul.mubr.f32.gmra.mrb[74].mxu0 %v106_v61 }
  0xd8   :  { %525 = vmatprep.mubr.f32.mxu0 %v109_v62  ;;  %v154_v62 = vld [vmem:[%s8328_s0 + $0x3d0] sm:$0xff] }
  0xdb   :  { %526 = vmatmul.mubr.f32.gmra.mrb[76].mxu0 %v108_v63  ;;  %v157_v63 = vld [vmem:[%s8328_s0 + $0x3e8] sm:$0xff] }
  0xdc   :  { %530 = vmatprep.mubr.f32.mxu0 %v111_v1 }
  0xdf   :  { %531 = vmatmul.mubr.f32.gmra.mrb[78].mxu0 %v110_v2 }
  0xe0   :  { %535 = vmatprep.mubr.f32.mxu0 %v113_v3  ;;  %v156_v3 = vld [vmem:[%s8328_s0 + $0x3e0] sm:$0xff] }
  0xe3   :  { %536 = vmatmul.mubr.f32.gmra.mrb[80].mxu0 %v112_v4  ;;  %v159_v4 = vld [vmem:[%s8328_s0 + $0x3f8] sm:$0xff] }
  0xe4   :  { %540 = vmatprep.mubr.f32.mxu0 %v115_v5 }
  0xe7   :  { %541 = vmatmul.mubr.f32.gmra.mrb[82].mxu0 %v114_v6 }
  0xe8   :  { %545 = vmatprep.mubr.f32.mxu0 %v117_v7  ;;  %v158_v7 = vld [vmem:[%s8328_s0 + $0x3f0] sm:$0xff] }
  0xeb   :  { %546 = vmatmul.mubr.f32.gmra.mrb[84].mxu0 %v116_v8  ;;  %v161_v8 = vld [vmem:[%s8328_s0 + $0x408] sm:$0xff] }
  0xec   :  { %550 = vmatprep.mubr.f32.mxu0 %v119_v9 }
  0xef   :  { %551 = vmatmul.mubr.f32.gmra.mrb[86].mxu0 %v118_v10 }
  0xf0   :  { %555 = vmatprep.mubr.f32.mxu0 %v121_v11  ;;  %v160_v11 = vld [vmem:[%s8328_s0 + $0x400] sm:$0xff] }
  0xf3   :  { %556 = vmatmul.mubr.f32.gmra.mrb[88].mxu0 %v120_v12  ;;  %v163_v12 = vld [vmem:[%s8328_s0 + $0x418] sm:$0xff] }
  0xf4   :  { %560 = vmatprep.mubr.f32.mxu0 %v123_v13 }
  0xf7   :  { %561 = vmatmul.mubr.f32.gmra.mrb[90].mxu0 %v122_v14 }
  0xf8   :  { %565 = vmatprep.mubr.f32.mxu0 %v125_v15  ;;  %v162_v15 = vld [vmem:[%s8328_s0 + $0x410] sm:$0xff] }
  0xfb   :  { %566 = vmatmul.mubr.f32.gmra.mrb[92].mxu0 %v124_v16  ;;  %v165_v16 = vld [vmem:[%s8328_s0 + $0x428] sm:$0xff] }
  0xfc   :  { %570 = vmatprep.mubr.f32.mxu0 %v127_v17 }
  0xff   :  { %571 = vmatmul.mubr.f32.gmra.mrb[94].mxu0 %v126_v18 }
 0x100   :  { %575 = vmatprep.mubr.f32.mxu0 %v129_v19  ;;  %v164_v19 = vld [vmem:[%s8328_s0 + $0x420] sm:$0xff] }
 0x103   :  { %576 = vmatmul.mubr.f32.gmra.mrb[96].mxu0 %v128_v20  ;;  %v167_v20 = vld [vmem:[%s8328_s0 + $0x438] sm:$0xff] }
 0x104   :  { %580 = vmatprep.mubr.f32.mxu0 %v131_v21 }
 0x107   :  { %581 = vmatmul.mubr.f32.gmra.mrb[98].mxu0 %v130_v22 }
 0x108   :  { %585 = vmatprep.mubr.f32.mxu0 %v133_v23  ;;  %v166_v23 = vld [vmem:[%s8328_s0 + $0x430] sm:$0xff] }
 0x10b   :  { %586 = vmatmul.mubr.f32.gmra.mrb[100].mxu0 %v132_v24  ;;  %v169_v24 = vld [vmem:[%s8328_s0 + $0x448] sm:$0xff] }
 0x10c   :  { %590 = vmatprep.mubr.f32.mxu0 %v135_v25 }
 0x10f   :  { %591 = vmatmul.mubr.f32.gmra.mrb[102].mxu0 %v134_v26 }
 0x110   :  { %595 = vmatprep.mubr.f32.mxu0 %v137_v27  ;;  %v168_v27 = vld [vmem:[%s8328_s0 + $0x440] sm:$0xff] }
 0x113   :  { %596 = vmatmul.mubr.f32.gmra.mrb[104].mxu0 %v136_v28  ;;  %v171_v28 = vld [vmem:[%s8328_s0 + $0x458] sm:$0xff] }
 0x114   :  { %600 = vmatprep.mubr.f32.mxu0 %v139_v29 }
 0x116   :  { %v5987_v32 = vpop.f32.mrb[0].mxu0 }
 0x117   :  { %v339_v33 = vpop.f32.mrb[1].mxu0  ;;  %601 = vmatmul.mubr.f32.gmra.mrb[106].mxu0 %v138_v30 }
 0x118   :  { %605 = vmatprep.mubr.f32.mxu0 %v141_v31  ;;  %v170_v31 = vld [vmem:[%s8328_s0 + $0x450] sm:$0xff]  ;;  %v173_v33 = vld [vmem:[%s8328_s0 + $0x468] sm:$0xff] }
 0x11a   :  { %v5995_v36 = vpop.f32.mrb[2].mxu0 }
 0x11b   :  { %v344_v37 = vpop.f32.mrb[3].mxu0  ;;  %606 = vmatmul.mubr.f32.gmra.mrb[108].mxu0 %v140_v34 }
 0x11c   :  { %610 = vmatprep.mubr.f32.mxu0 %v143_v35  ;;  %v172_v37 = vld [vmem:[%s8328_s0 + $0x460] sm:$0xff] }
 0x11e   :  { %v6003_v40 = vpop.f32.mrb[4].mxu0 }
 0x11f   :  { %v349_v41 = vpop.f32.mrb[5].mxu0  ;;  %611 = vmatmul.mubr.f32.gmra.mrb[110].mxu0 %v142_v38  ;;  %v175_v38 = vld [vmem:[%s8328_s0 + $0x478] sm:$0xff] }
 0x120   :  { %615 = vmatprep.mubr.f32.mxu0 %v145_v39 }
 0x122   :  { %v6011_v44 = vpop.f32.mrb[6].mxu0 }
 0x123   :  { %v354_v45 = vpop.f32.mrb[7].mxu0  ;;  %616 = vmatmul.mubr.f32.gmra.mrb[112].mxu0 %v144_v42  ;;  %v174_v42 = vld [vmem:[%s8328_s0 + $0x470] sm:$0xff] }
 0x124   :  { %620 = vmatprep.mubr.f32.mxu0 %v147_v43  ;;  %v177_v43 = vld [vmem:[%s8328_s0 + $0x488] sm:$0xff] }
 0x126   :  { %v6019_v48 = vpop.f32.mrb[8].mxu0 }
 0x127   :  { %v359_v49 = vpop.f32.mrb[9].mxu0  ;;  %621 = vmatmul.mubr.f32.gmra.mrb[114].mxu0 %v146_v46 }
 0x128   :  { %625 = vmatprep.mubr.f32.mxu0 %v149_v47  ;;  %v176_v47 = vld [vmem:[%s8328_s0 + $0x480] sm:$0xff]  ;;  %v179_v49 = vld [vmem:[%s8328_s0 + $0x498] sm:$0xff] }
 0x12a   :  { %v6027_v52 = vpop.f32.mrb[10].mxu0 }
 0x12b   :  { %v364_v53 = vpop.f32.mrb[11].mxu0  ;;  %626 = vmatmul.mubr.f32.gmra.mrb[116].mxu0 %v148_v50 }
 0x12c   :  { %630 = vmatprep.mubr.f32.mxu0 %v151_v51  ;;  %v178_v53 = vld [vmem:[%s8328_s0 + $0x490] sm:$0xff] }
 0x12e   :  { %v6035_v56 = vpop.f32.mrb[12].mxu0 }
 0x12f   :  { %v369_v57 = vpop.f32.mrb[13].mxu0  ;;  %631 = vmatmul.mubr.f32.gmra.mrb[118].mxu0 %v150_v54  ;;  %v181_v54 = vld [vmem:[%s8328_s0 + $0x4a8] sm:$0xff] }
 0x130   :  { %635 = vmatprep.mubr.f32.mxu0 %v153_v55 }
 0x132   :  { %v6043_v60 = vpop.f32.mrb[14].mxu0 }
 0x133   :  { %v374_v61 = vpop.f32.mrb[15].mxu0  ;;  %636 = vmatmul.mubr.f32.gmra.mrb[120].mxu0 %v152_v58  ;;  %v180_v58 = vld [vmem:[%s8328_s0 + $0x4a0] sm:$0xff] }
 0x134   :  { %640 = vmatprep.mubr.f32.mxu0 %v155_v59  ;;  %v183_v59 = vld [vmem:[%s8328_s0 + $0x4b8] sm:$0xff] }
 0x136   :  { %v6051_v1 = vpop.f32.mrb[16].mxu0 }
 0x137   :  { %v379_v2 = vpop.f32.mrb[17].mxu0  ;;  %641 = vmatmul.mubr.f32.gmra.mrb[122].mxu0 %v154_v62 }
 0x138   :  { %645 = vmatprep.mubr.f32.mxu0 %v157_v63  ;;  %v182_v63 = vld [vmem:[%s8328_s0 + $0x4b0] sm:$0xff]  ;;  %v185_v2 = vld [vmem:[%s8328_s0 + $0x4c8] sm:$0xff] }
 0x13a   :  { %v6059_v5 = vpop.f32.mrb[18].mxu0 }
 0x13b   :  { %v384_v6 = vpop.f32.mrb[19].mxu0  ;;  %646 = vmatmul.mubr.f32.gmra.mrb[124].mxu0 %v156_v3 }
 0x13c   :  { %650 = vmatprep.mubr.f32.mxu0 %v159_v4  ;;  %v184_v6 = vld [vmem:[%s8328_s0 + $0x4c0] sm:$0xff] }
 0x13e   :  { %v6067_v9 = vpop.f32.mrb[20].mxu0 }
 0x13f   :  { %v389_v10 = vpop.f32.mrb[21].mxu0  ;;  %651 = vmatmul.mubr.f32.gmra.mrb[126].mxu0 %v158_v7  ;;  %v187_v7 = vld [vmem:[%s8328_s0 + $0x4d8] sm:$0xff] }
 0x140   :  { %655 = vmatprep.mubr.f32.mxu0 %v161_v8 }
 0x142   :  { %v6075_v13 = vpop.f32.mrb[22].mxu0 }
 0x143   :  { %v394_v14 = vpop.f32.mrb[23].mxu0  ;;  %656 = vmatmul.mubr.f32.gmra.mrb[128].mxu0 %v160_v11  ;;  %v186_v11 = vld [vmem:[%s8328_s0 + $0x4d0] sm:$0xff] }
 0x144   :  { %660 = vmatprep.mubr.f32.mxu0 %v163_v12  ;;  %v189_v12 = vld [vmem:[%s8328_s0 + $0x4e8] sm:$0xff]  ;;  %v6182_v14 = vld [vmem:[%s8329_s2] ss:$0 sm:$0xff] }
 0x146   :  { %v6083_v17 = vpop.f32.mrb[24].mxu0 }
 0x147   :  { %v399_v18 = vpop.f32.mrb[25].mxu0  ;;  %661 = vmatmul.mubr.f32.gmra.mrb[130].mxu0 %v162_v15 }
 0x148   :  { %665 = vmatprep.mubr.f32.mxu0 %v165_v16  ;;  %v188_v18 = vld [vmem:[%s8328_s0 + $0x4e0] sm:$0xff] }
 0x14a   :  { %v6091_v21 = vpop.f32.mrb[26].mxu0 }
 0x14b   :  { %v404_v22 = vpop.f32.mrb[27].mxu0  ;;  %666 = vmatmul.mubr.f32.gmra.mrb[132].mxu0 %v164_v19  ;;  %v338_v19 = vadd.f32 %v6182_v14, %v5987_v32  ;;  %v193_v32 = vld [vmem:[%s8328_s0 + $0x508] sm:$0xff] }
 0x14c   :  { %670 = vmatprep.mubr.f32.mxu0 %v167_v20  ;;  %v191_v20 = vld [vmem:[%s8328_s0 + $0x4f8] sm:$0xff] }
 0x14e   :  { %v6099_v25 = vpop.f32.mrb[28].mxu0 }
 0x14f   :  { %v409_v26 = vpop.f32.mrb[29].mxu0  ;;  %671 = vmatmul.mubr.f32.gmra.mrb[134].mxu0 %v166_v23 }
 0x150   :  { %675 = vmatprep.mubr.f32.mxu0 %v169_v24  ;;  %v190_v26 = vld [vmem:[%s8328_s0 + $0x4f0] sm:$0xff] }
 0x152   :  { %v6107_v29 = vpop.f32.mrb[30].mxu0 }
 0x153   :  { %v414_v30 = vpop.f32.mrb[31].mxu0  ;;  %676 = vmatmul.mubr.f32.gmra.mrb[136].mxu0 %v168_v27  ;;  %v836_v27 = vmax.f32 %v338_v19, 0.0  ;;  %v198_v19 = vld [vmem:[%s8328_s0 + $0x530] sm:$0xff] }
 0x154   :  { %680 = vmatprep.mubr.f32.mxu0 %v171_v28  ;;  %v343_v28 = vadd.f32 %v6182_v14, %v5995_v36  ;;  %v348_v36 = vadd.f32 %v6182_v14, %v6003_v40  ;;  %v353_v40 = vadd.f32 %v6182_v14, %v6011_v44  ;;  %v358_v44 = vadd.f32 %v6182_v14, %v6019_v48 }
 0x155   :  { %v363_v48 = vadd.f32 %v6182_v14, %v6027_v52  ;;  %v368_v52 = vadd.f32 %v6182_v14, %v6035_v56  ;;  %v373_v56 = vadd.f32 %v6182_v14, %v6043_v60  ;;  %v378_v60 = vadd.f32 %v6182_v14, %v6051_v1 }
 0x156   :  { %v6115_v34 = vpop.f32.mrb[32].mxu0  ;;  %v383_v1 = vadd.f32 %v6182_v14, %v6059_v5  ;;  %v388_v5 = vadd.f32 %v6182_v14, %v6067_v9  ;;  %v393_v9 = vadd.f32 %v6182_v14, %v6075_v13  ;;  %v398_v13 = vadd.f32 %v6182_v14, %v6083_v17  ;;  %v1027_v17 = vld [vmem:[%s8330_s3 + $0x80] sm:$0xff] }
 0x157   :  { %v419_v35 = vpop.f32.mrb[33].mxu0  ;;  %681 = vmatmul.mubr.f32.gmra.mrb[138].mxu0 %v170_v31 }
 0x158   :  { %685 = vmatprep.mubr.f32.mxu0 %v173_v33 }
 0x15a   :  { %v6123_v39 = vpop.f32.mrb[34].mxu0 }
 0x15b   :  { %v424_v41 = vpop.f32.mrb[35].mxu0  ;;  %686 = vmatmul.mubr.f32.gmra.mrb[140].mxu0 %v172_v37 }
 0x15c   :  { %690 = vmatprep.mubr.f32.mxu0 %v175_v38  ;;  %v192_v38 = vld [vmem:[%s8328_s0 + $0x500] sm:$0xff]  ;;  %v837_v41 = vmax.f32 %v343_v28, 0.0 }
 0x15e   :  { %v6131_v45 = vpop.f32.mrb[36].mxu0 }
 0x15f   :  { %v429_v46 = vpop.f32.mrb[37].mxu0  ;;  %691 = vmatmul.mubr.f32.gmra.mrb[142].mxu0 %v174_v42 }
 0x160   :  { %695 = vmatprep.mubr.f32.mxu0 %v177_v43  ;;  %v195_v43 = vld [vmem:[%s8328_s0 + $0x518] sm:$0xff] }
 0x162   :  { %v6139_v50 = vpop.f32.mrb[38].mxu0 }
 0x163   :  { %v434_v51 = vpop.f32.mrb[39].mxu0  ;;  %696 = vmatmul.mubr.f32.gmra.mrb[144].mxu0 %v176_v47 }
 0x164   :  { %700 = vmatprep.mubr.f32.mxu0 %v179_v49 }
 0x166   :  { %v6147_v55 = vpop.f32.mrb[40].mxu0 }
 0x167   :  { %v439_v57 = vpop.f32.mrb[41].mxu0  ;;  %701 = vmatmul.mubr.f32.gmra.mrb[146].mxu0 %v178_v53  ;;  %v194_v53 = vld [vmem:[%s8328_s0 + $0x510] sm:$0xff] }
 0x168   :  { %705 = vmatprep.mubr.f32.mxu0 %v181_v54  ;;  %v838_v54 = vmax.f32 %v348_v36, 0.0 }
 0x16a   :  { %v6155_v61 = vpop.f32.mrb[42].mxu0 }
 0x16b   :  { %v444_v62 = vpop.f32.mrb[43].mxu0  ;;  %706 = vmatmul.mubr.f32.gmra.mrb[148].mxu0 %v180_v58  ;;  %v197_v58 = vld [vmem:[%s8328_s0 + $0x528] sm:$0xff] }
 0x16c   :  { %710 = vmatprep.mubr.f32.mxu0 %v183_v59 }
 0x16e   :  { %v6163_v3 = vpop.f32.mrb[44].mxu0 }
 0x16f   :  { %v449_v4 = vpop.f32.mrb[45].mxu0  ;;  %711 = vmatmul.mubr.f32.gmra.mrb[150].mxu0 %v182_v63 }
 0x170   :  { %715 = vmatprep.mubr.f32.mxu0 %v185_v2  ;;  %v196_v4 = vld [vmem:[%s8328_s0 + $0x520] sm:$0xff] }
 0x172   :  { %v6171_v8 = vpop.f32.mrb[46].mxu0 }
 0x173   :  { %v454_v10 = vpop.f32.mrb[47].mxu0  ;;  %716 = vmatmul.mubr.f32.gmra.mrb[152].mxu0 %v184_v6  ;;  %v839_v6 = vmax.f32 %v353_v40, 0.0 }
 0x174   :  { %720 = vmatprep.mubr.f32.mxu0 %v187_v7  ;;  %v199_v10 = vld [vmem:[%s8328_s0 + $0x538] sm:$0xff] }
 0x176   :  { %v6184_v15 = vpop.f32.mrb[48].mxu0 }
 0x177   :  { %v459_v16 = vpop.f32.mrb[49].mxu0  ;;  %721 = vmatmul.mubr.f32.gmra.mrb[154].mxu0 %v186_v11 }
 0x178   :  { %725 = vmatprep.mubr.f32.mxu0 %v189_v12 }
 0x17a   :  { %v462_v22 = vpop.f32.mrb[50].mxu0 }
 0x17b   :  { %v463_v23 = vadd.f32 %v6182_v14, %v462_v22  ;;  %v464_v24 = vpop.f32.mrb[51].mxu0  ;;  %726 = vmatmul.mubr.f32.gmra.mrb[156].mxu0 %v188_v18 }
 0x17c   :  { %730 = vmatprep.mubr.f32.mxu0 %v191_v20  ;;  %v840_v20 = vmax.f32 %v358_v44, 0.0 }
 0x17d   :  { %v861_v30 = vmax.f32 %v463_v23, 0.0  ;;  %v201_v23 = vld [vmem:[%s8328_s0 + $0x548] sm:$0xff] }
 0x17e   :  { %v467_v31 = vpop.f32.mrb[52].mxu0 }
 0x17f   :  { %v6203_v33 = vmax.f32 %v836_v27, %v861_v30  ;;  %v468_v35 = vadd.f32 %v6182_v14, %v467_v31  ;;  %v469_v37 = vpop.f32.mrb[53].mxu0  ;;  %731 = vmatmul.mubr.f32.gmra.mrb[158].mxu0 %v190_v26  ;;  %v200_v30 = vld [vmem:[%s8328_s0 + $0x540] sm:$0xff] }
 0x180   :  { %735 = vmatprep.mubr.f32.mxu0 %v193_v32  ;;  %v841_v32 = vmax.f32 %v363_v48, 0.0 }
 0x181   :  { %v862_v42 = vmax.f32 %v468_v35, 0.0  ;;  %v203_v35 = vld [vmem:[%s8328_s0 + $0x558] sm:$0xff] }
 0x182   :  { %v472_v46 = vpop.f32.mrb[54].mxu0 }
 0x183   :  { %v6214_v47 = vmax.f32 %v837_v41, %v862_v42  ;;  %v473_v49 = vadd.f32 %v6182_v14, %v472_v46  ;;  %v474_v51 = vpop.f32.mrb[55].mxu0  ;;  %736 = vmatmul.mubr.f32.gmra.mrb[160].mxu0 %v192_v38  ;;  %v202_v42 = vld [vmem:[%s8328_s0 + $0x550] sm:$0xff] }
 0x184   :  { %740 = vmatprep.mubr.f32.mxu0 %v195_v43  ;;  %v842_v43 = vmax.f32 %v368_v52, 0.0 }
 0x185   :  { %v863_v57 = vmax.f32 %v473_v49, 0.0  ;;  %v205_v49 = vld [vmem:[%s8328_s0 + $0x568] sm:$0xff] }
 0x186   :  { %v477_v59 = vpop.f32.mrb[56].mxu0 }
 0x187   :  { %v6225_v62 = vmax.f32 %v838_v54, %v863_v57  ;;  %v478_v63 = vadd.f32 %v6182_v14, %v477_v59  ;;  %v479_v2 = vpop.f32.mrb[57].mxu0  ;;  %741 = vmatmul.mubr.f32.gmra.mrb[162].mxu0 %v194_v53  ;;  %v204_v57 = vld [vmem:[%s8328_s0 + $0x560] sm:$0xff] }
 0x188   :  { %745 = vmatprep.mubr.f32.mxu0 %v197_v58  ;;  %v843_v58 = vmax.f32 %v373_v56, 0.0 }
 0x189   :  { %v864_v7 = vmax.f32 %v478_v63, 0.0  ;;  %v207_v63 = vld [vmem:[%s8328_s0 + $0x578] sm:$0xff] }
 0x18a   :  { %v482_v11 = vpop.f32.mrb[58].mxu0 }
 0x18b   :  { %v6236_v12 = vmax.f32 %v839_v6, %v864_v7  ;;  %v483_v16 = vadd.f32 %v6182_v14, %v482_v11  ;;  %v484_v18 = vpop.f32.mrb[59].mxu0  ;;  %746 = vmatmul.mubr.f32.gmra.mrb[164].mxu0 %v196_v4  ;;  %v206_v7 = vld [vmem:[%s8328_s0 + $0x570] sm:$0xff] }
 0x18c   :  { %750 = vmatprep.mubr.f32.mxu0 %v199_v10  ;;  %v844_v10 = vmax.f32 %v378_v60, 0.0 }
 0x18d   :  { %v865_v22 = vmax.f32 %v483_v16, 0.0  ;;  %v209_v16 = vld [vmem:[%s8328_s0 + $0x588] sm:$0xff] }
 0x18e   :  { %v487_v24 = vpop.f32.mrb[60].mxu0 }
 0x18f   :  { %v6247_v26 = vmax.f32 %v840_v20, %v865_v22  ;;  %v488_v27 = vadd.f32 %v6182_v14, %v487_v24  ;;  %v489_v28 = vpop.f32.mrb[61].mxu0  ;;  %751 = vmatmul.mubr.f32.gmra.mrb[166].mxu0 %v198_v19  ;;  %v208_v22 = vld [vmem:[%s8328_s0 + $0x580] sm:$0xff] }
 0x190   :  { %755 = vmatprep.mubr.f32.mxu0 %v201_v23  ;;  %v845_v23 = vmax.f32 %v383_v1, 0.0 }
 0x191   :  { %v866_v31 = vmax.f32 %v488_v27, 0.0  ;;  %v211_v27 = vld [vmem:[%s8328_s0 + $0x598] sm:$0xff] }
 0x192   :  { %v492_v37 = vpop.f32.mrb[62].mxu0 }
 0x193   :  { %v6258_v38 = vmax.f32 %v841_v32, %v866_v31  ;;  %v493_v41 = vadd.f32 %v6182_v14, %v492_v37  ;;  %v494_v36 = vpop.f32.mrb[63].mxu0  ;;  %756 = vmatmul.mubr.f32.gmra.mrb[168].mxu0 %v200_v30  ;;  %v210_v31 = vld [vmem:[%s8328_s0 + $0x590] sm:$0xff] }
 0x194   :  { %760 = vmatprep.mubr.f32.mxu0 %v203_v35  ;;  %v846_v35 = vmax.f32 %v388_v5, 0.0 }
 0x195   :  { %v867_v46 = vmax.f32 %v493_v41, 0.0  ;;  %v213_v41 = vld [vmem:[%s8328_s0 + $0x5a8] sm:$0xff] }
 0x196   :  { %v497_v51 = vpop.f32.mrb[64].mxu0 }
 0x197   :  { %v6269_v53 = vmax.f32 %v842_v43, %v867_v46  ;;  %v498_v54 = vadd.f32 %v6182_v14, %v497_v51  ;;  %v499_v40 = vpop.f32.mrb[65].mxu0  ;;  %761 = vmatmul.mubr.f32.gmra.mrb[170].mxu0 %v202_v42  ;;  %v212_v46 = vld [vmem:[%s8328_s0 + $0x5a0] sm:$0xff] }
 0x198   :  { %765 = vmatprep.mubr.f32.mxu0 %v205_v49  ;;  %v847_v49 = vmax.f32 %v393_v9, 0.0  ;;  %v1032_v9 = vld [vmem:[%s8330_s3 + $0xa8] sm:$0xff] }
 0x199   :  { %v868_v59 = vmax.f32 %v498_v54, 0.0  ;;  %v215_v54 = vld [vmem:[%s8328_s0 + $0x5b8] sm:$0xff] }
 0x19a   :  { %v502_v2 = vpop.f32.mrb[66].mxu0 }
 0x19b   :  { %v6280_v4 = vmax.f32 %v843_v58, %v868_v59  ;;  %v503_v6 = vadd.f32 %v6182_v14, %v502_v2  ;;  %v504_v44 = vpop.f32.mrb[67].mxu0  ;;  %766 = vmatmul.mubr.f32.gmra.mrb[172].mxu0 %v204_v57  ;;  %v214_v59 = vld [vmem:[%s8328_s0 + $0x5b0] sm:$0xff]  ;;  %v848_v2 = vmax.f32 %v398_v13, 0.0 }
 0x19c   :  { %770 = vmatprep.mubr.f32.mxu0 %v207_v63  ;;  %v1028_v63 = vld [vmem:[%s8330_s3 + $0x88] sm:$0xff] }
 0x19d   :  { %v869_v11 = vmax.f32 %v503_v6, 0.0  ;;  %v403_v6 = vadd.f32 %v6182_v14, %v6091_v21  ;;  %v1029_v21 = vld [vmem:[%s8330_s3 + $0x90] sm:$0xff] }
 0x19e   :  { %v507_v18 = vpop.f32.mrb[68].mxu0 }
 0x19f   :  { %v6291_v19 = vmax.f32 %v844_v10, %v869_v11  ;;  %v508_v20 = vadd.f32 %v6182_v14, %v507_v18  ;;  %v509_v48 = vpop.f32.mrb[69].mxu0  ;;  %771 = vmatmul.mubr.f32.gmra.mrb[174].mxu0 %v206_v7  ;;  %v217_v7 = vld [vmem:[%s8328_s0 + $0x5c8] sm:$0xff]  ;;  %v4842_v10 = vpack.c.bf16 %v1028_v63, %v1027_v17  ;;  %v223_v17 = vld [vmem:[%s8328_s0 + $0x5f8] sm:$0xff] }
 0x1a0   :  { %775 = vmatprep.mubr.f32.mxu0 %v209_v16  ;;  %v1030_v48 = vld [vmem:[%s8330_s3 + $0x98] sm:$0xff] }
 0x1a1   :  { %v870_v24 = vmax.f32 %v508_v20, 0.0  ;;  %4843 = vmatpush3.bf16.msra.mxu1 %v4842_v10  ;;  %v216_v20 = vld [vmem:[%s8328_s0 + $0x5c0] sm:$0xff]  ;;  %v222_v10 = vld [vmem:[%s8328_s0 + $0x5f0] sm:$0xff] }
 0x1a2   :  { %v512_v28 = vpop.f32.mrb[70].mxu0  ;;  %4844 = vmatprep.subr.bf16.mxu1 %v8337_v0 }
 0x1a3   :  { %v6302_v30 = vmax.f32 %v845_v23, %v870_v24  ;;  %v513_v32 = vadd.f32 %v6182_v14, %v512_v28  ;;  %v514_v52 = vpop.f32.mrb[71].mxu0  ;;  %776 = vmatmul.mubr.f32.gmra.mrb[176].mxu0 %v208_v22  ;;  %v849_v22 = vmax.f32 %v403_v6, 0.0  ;;  %v408_v23 = vadd.f32 %v6182_v14, %v6099_v25  ;;  %v219_v24 = vld [vmem:[%s8328_s0 + $0x5d8] sm:$0xff]  ;;  %v1031_v25 = vld [vmem:[%s8330_s3 + $0xa0] sm:$0xff] }
 0x1a4   :  { %780 = vmatprep.mubr.f32.mxu0 %v211_v27  ;;  %v4845_v27 = vpack.c.bf16 %v1030_v48, %v1029_v21  ;;  %v225_v21 = vld [vmem:[%s8328_s0 + $0x608] sm:$0xff] }
 0x1a5   :  { %v871_v37 = vmax.f32 %v513_v32, 0.0 }
 0x1a6   :  { %v517_v36 = vpop.f32.mrb[72].mxu0  ;;  %4846 = vmatpush3.bf16.msra.mxu1 %v4845_v27  ;;  %v224_v27 = vld [vmem:[%s8328_s0 + $0x600] sm:$0xff] }
 0x1a7   :  { %v6313_v42 = vmax.f32 %v846_v35, %v871_v37  ;;  %v518_v43 = vadd.f32 %v6182_v14, %v517_v36  ;;  %v519_v56 = vpop.f32.mrb[73].mxu0  ;;  %781 = vmatmul.mubr.f32.gmra.mrb[178].mxu0 %v210_v31  ;;  %v218_v35 = vld [vmem:[%s8328_s0 + $0x5d0] sm:$0xff]  ;;  %4847 = vmatprep.subr.bf16.mxu1 %v8337_v0  ;;  %v850_v37 = vmax.f32 %v408_v23, 0.0 }
 0x1a8   :  { %785 = vmatprep.mubr.f32.mxu0 %v213_v41  ;;  %v413_v41 = vadd.f32 %v6182_v14, %v6107_v29  ;;  %v4848_v56 = vpack.c.bf16 %v1032_v9, %v1031_v25  ;;  %v1033_v29 = vld [vmem:[%s8330_s3 + $0xb0] sm:$0xff]  ;;  %v227_v25 = vld [vmem:[%s8328_s0 + $0x618] sm:$0xff] }
 0x1a9   :  { %v872_v51 = vmax.f32 %v518_v43, 0.0  ;;  %v221_v43 = vld [vmem:[%s8328_s0 + $0x5e8] sm:$0xff] }
 0x1aa   :  { %v522_v40 = vpop.f32.mrb[74].mxu0  ;;  %4849 = vmatpush3.bf16.msra.mxu1 %v4848_v56  ;;  %v226_v56 = vld [vmem:[%s8328_s0 + $0x610] sm:$0xff] }
 0x1ab   :  { %v6324_v57 = vmax.f32 %v847_v49, %v872_v51  ;;  %v523_v58 = vadd.f32 %v6182_v14, %v522_v40  ;;  %v524_v60 = vpop.f32.mrb[75].mxu0  ;;  %786 = vmatmul.mubr.f32.gmra.mrb[180].mxu0 %v212_v46  ;;  %4850 = vmatprep.subr.bf16.mxu1 %v8337_v0  ;;  %v1034_v40 = vld [vmem:[%s8330_s3 + $0xb8] sm:$0xff] }
 0x1ac   :  { %790 = vmatprep.mubr.f32.mxu0 %v215_v54  ;;  %v220_v54 = vld [vmem:[%s8328_s0 + $0x5e0] sm:$0xff]  ;;  %v418_v60 = vadd.f32 %v6182_v14, %v6115_v34  ;;  %v4851_v63 = vpack.c.bf16 %v1034_v40, %v1033_v29  ;;  %v229_v29 = vld [vmem:[%s8328_s0 + $0x628] sm:$0xff] }
 0x1ad   :  { %v873_v44 = vmax.f32 %v523_v58, 0.0  ;;  %v851_v58 = vmax.f32 %v413_v41, 0.0  ;;  %v1035_v34 = vld [vmem:[%s8330_s3 + $0xc0] sm:$0xff] }
 0x1ae   :  { %v527_v1 = vpop.f32.mrb[76].mxu0  ;;  %4852 = vmatpush3.bf16.msra.mxu1 %v4851_v63  ;;  %v438_v63 = vadd.f32 %v6182_v14, %v6147_v55  ;;  %v231_v55 = vld [vmem:[%s8328_s0 + $0x638] sm:$0xff] }
 0x1af   :  { %v6341_v11 = vmax.f32 %v848_v2, %v873_v44  ;;  %v528_v16 = vadd.f32 %v6182_v14, %v527_v1  ;;  %v529_v18 = vpop.f32.mrb[77].mxu0  ;;  %791 = vmatmul.mubr.f32.gmra.mrb[182].mxu0 %v214_v59  ;;  %4853 = vmatprep.subr.bf16.mxu1 %v8337_v0  ;;  %v1036_v1 = vld [vmem:[%s8330_s3 + $0xc8] sm:$0xff] }
 0x1b0   :  { %795 = vmatprep.mubr.f32.mxu0 %v217_v7  ;;  %v423_v18 = vadd.f32 %v6182_v14, %v6123_v39  ;;  %v4854_v48 = vpack.c.bf16 %v1036_v1, %v1035_v34  ;;  %v1037_v39 = vld [vmem:[%s8330_s3 + $0xd0] sm:$0xff] }
 0x1b1   :  { %v874_v5 = vmax.f32 %v528_v16, 0.0  ;;  %v852_v16 = vmax.f32 %v418_v60, 0.0 }
 0x1b2   :  { %v532_v28 = vpop.f32.mrb[78].mxu0  ;;  %4855 = vmatpush3.bf16.msra.mxu1 %v4854_v48  ;;  %v230_v48 = vld [vmem:[%s8328_s0 + $0x630] sm:$0xff] }
 0x1b3   :  { %v6359_v32 = vmax.f32 %v849_v22, %v874_v5  ;;  %v533_v52 = vadd.f32 %v6182_v14, %v532_v28  ;;  %v534_v31 = vpop.f32.mrb[79].mxu0  ;;  %796 = vmatmul.mubr.f32.gmra.mrb[184].mxu0 %v216_v20  ;;  %4856 = vmatprep.subr.bf16.mxu1 %v8337_v0  ;;  %v1038_v28 = vld [vmem:[%s8330_s3 + $0xd8] sm:$0xff] }
 0x1b4   :  { %800 = vmatprep.mubr.f32.mxu0 %v219_v24  ;;  %v428_v31 = vadd.f32 %v6182_v14, %v6131_v45  ;;  %v4857_v9 = vpack.c.bf16 %v1038_v28, %v1037_v39  ;;  %v1039_v45 = vld [vmem:[%s8330_s3 + $0xe0] sm:$0xff] }
 0x1b5   :  { %v875_v36 = vmax.f32 %v533_v52, 0.0  ;;  %v853_v52 = vmax.f32 %v423_v18, 0.0 }
 0x1b6   :  { %v537_v46 = vpop.f32.mrb[80].mxu0  ;;  %4858 = vmatpush3.bf16.msra.mxu1 %v4857_v9 }
 0x1b7   :  { %v6377_v49 = vmax.f32 %v850_v37, %v875_v36  ;;  %v538_v13 = vadd.f32 %v6182_v14, %v537_v46  ;;  %v539_v51 = vpop.f32.mrb[81].mxu0  ;;  %801 = vmatmul.mubr.f32.gmra.mrb[186].mxu0 %v218_v35  ;;  %4859 = vmatprep.subr.bf16.mxu1 %v8337_v0  ;;  %v1040_v46 = vld [vmem:[%s8330_s3 + $0xe8] sm:$0xff] }
 0x1b8   :  { %805 = vmatprep.mubr.f32.mxu0 %v221_v43  ;;  %v433_v51 = vadd.f32 %v6182_v14, %v6139_v50  ;;  %v4860_v40 = vpack.c.bf16 %v1040_v46, %v1039_v45  ;;  %v228_v50 = vld [vmem:[%s8328_s0 + $0x620] sm:$0xff] }
 0x1b9   :  { %v876_v59 = vmax.f32 %v538_v13, 0.0  ;;  %v854_v13 = vmax.f32 %v428_v31, 0.0 }
 0x1ba   :  { %v542_v2 = vpop.f32.mrb[82].mxu0  ;;  %4861 = vmatpush3.bf16.msra.mxu1 %v4860_v40 }
 0x1bb   :  { %v6395_v6 = vmax.f32 %v851_v58, %v876_v59  ;;  %v543_v44 = vadd.f32 %v6182_v14, %v542_v2  ;;  %v544_v7 = vpop.f32.mrb[83].mxu0  ;;  %806 = vmatmul.mubr.f32.gmra.mrb[188].mxu0 %v220_v54  ;;  %4862 = vmatprep.subr.bf16.mxu1 %v8337_v0  ;;  %v1041_v2 = vld [vmem:[%s8330_s3 + $0xf0] sm:$0xff] }
 0x1bc   :  { %810 = vmatprep.mubr.f32.mxu0 %v223_v17  ;;  %v855_v7 = vmax.f32 %v433_v51, 0.0 }
 0x1bd   :  { %v877_v20 = vmax.f32 %v543_v44, 0.0  ;;  %v1042_v44 = vld [vmem:[%s8330_s3 + $0xf8] sm:$0xff] }
 0x1be   :  { %v547_v22 = vpop.f32.mrb[84].mxu0  ;;  %v4863_v34 = vpack.c.bf16 %v1042_v44, %v1041_v2 }
 0x1bf   :  { %v6413_v23 = vmax.f32 %v852_v16, %v877_v20  ;;  %v548_v5 = vadd.f32 %v6182_v14, %v547_v22  ;;  %v549_v24 = vpop.f32.mrb[85].mxu0  ;;  %811 = vmatmul.mubr.f32.gmra.mrb[190].mxu0 %v222_v10  ;;  %v443_v22 = vadd.f32 %v6182_v14, %v6155_v61  ;;  %v448_v61 = vadd.f32 %v6182_v14, %v6163_v3 }
 0x1c0   :  { %815 = vmatprep.mubr.f32.mxu0 %v225_v21  ;;  %4864 = vmatpush3.bf16.msra.mxu1 %v4863_v34  ;;  %v856_v21 = vmax.f32 %v438_v63, 0.0  ;;  %v458_v3 = vadd.f32 %v6182_v14, %v6184_v15  ;;  %v2228_v15 = vld [vmem:[%s8330_s3 + $0x708] sm:$0xff] }
 0x1c1   :  { %v878_v35 = vmax.f32 %v548_v5, 0.0  ;;  %4865 = vmatprep.subr.bf16.mxu1 %v8337_v0  ;;  %v857_v31 = vmax.f32 %v443_v22, 0.0 }
 0x1c2   :  { %v552_v37 = vpop.f32.mrb[86].mxu0 }
 0x1c3   :  { %v6431_v41 = vmax.f32 %v853_v52, %v878_v35  ;;  %v553_v36 = vadd.f32 %v6182_v14, %v552_v37  ;;  %v554_v43 = vpop.f32.mrb[87].mxu0  ;;  %816 = vmatmul.mubr.f32.gmra.mrb[192].mxu0 %v224_v27  ;;  %v8339_v27 = vmov 0.0  }
 0x1c4   :  { %820 = vmatprep.mubr.f32.mxu0 %v227_v25  ;;  %3880 = vmatprep.mubr.msk.f32.mxu1 %vm5494_vm0, %v8339_v27  ;;  %v858_v43 = vmax.f32 %v448_v61, 0.0  ;;  %v2233_v61 = vld [vmem:[%s8330_s3 + $0x730] sm:$0xff] }
 0x1c5   :  { %v879_v54 = vmax.f32 %v553_v36, 0.0 }
 0x1c6   :  { %v557_v58 = vpop.f32.mrb[88].mxu0 }
 0x1c7   :  { %v6449_v60 = vmax.f32 %v854_v13, %v879_v54  ;;  %v558_v59 = vadd.f32 %v6182_v14, %v557_v58  ;;  %v559_v17 = vpop.f32.mrb[89].mxu0  ;;  %821 = vmatmul.mubr.f32.gmra.mrb[194].mxu0 %v226_v56  ;;  %v453_v56 = vadd.f32 %v6182_v14, %v6171_v8 }
 0x1c8   :  { %825 = vmatprep.mubr.f32.mxu0 %v229_v29 }
 0x1c9   :  { %v880_v10 = vmax.f32 %v558_v59, 0.0  ;;  %v859_v29 = vmax.f32 %v453_v56, 0.0 }
 0x1ca   :  { %v562_v1 = vpop.f32.mrb[90].mxu0 }
 0x1cb   :  { %v6467_v16 = vmax.f32 %v855_v7, %v880_v10  ;;  %v563_v18 = vadd.f32 %v6182_v14, %v562_v1  ;;  %v564_v20 = vpop.f32.mrb[91].mxu0  ;;  %826 = vmatmul.mubr.f32.gmra.mrb[196].mxu0 %v228_v50  ;;  %v860_v50 = vmax.f32 %v458_v3, 0.0  ;;  %v2227_v10 = vld [vmem:[%s8330_s3 + $0x700] sm:$0xff]  ;;  %v2238_v3 = vld [vmem:[%s8330_s3 + $0x758] sm:$0xff] }
 0x1cc   :  { %830 = vmatprep.mubr.f32.mxu0 %v231_v55  ;;  %v5178_v34 = vpack.c.bf16 %v2228_v15, %v2227_v10  ;;  %v2241_v10 = vld [vmem:[%s8330_s3 + $0x770] sm:$0xff] }
 0x1cd   :  { %v881_v5 = vmax.f32 %v563_v18, 0.0  ;;  %v2229_v18 = vld [vmem:[%s8330_s3 + $0x710] sm:$0xff] }
 0x1ce   :  { %v567_v24 = vpop.f32.mrb[92].mxu0  ;;  %5179 = vmatpush3.bf16.msra.mxu0 %v5178_v34  ;;  %v2242_v34 = vld [vmem:[%s8330_s3 + $0x778] sm:$0xff] }
 0x1cf   :  { %v6478_v39 = vmax.f32 %v856_v21, %v881_v5  ;;  %v568_v28 = vadd.f32 %v6182_v14, %v567_v24  ;;  %v569_v52 = vpop.f32.mrb[93].mxu0  ;;  %831 = vmatmul.mubr.f32.gmra.mrb[198].mxu0 %v230_v48  ;;  %5180 = vmatprep.subr.bf16.mxu0 %v8337_v0  ;;  %v2230_v21 = vld [vmem:[%s8330_s3 + $0x718] sm:$0xff]  ;;  %v2231_v5 = vld [vmem:[%s8330_s3 + $0x720] sm:$0xff] }
 0x1d0   :  { %4370 = vmatprep.mubr.msk.f32.mxu0 %vm5494_vm0, %v8339_v27  ;;  %v5181_v22 = vpack.c.bf16 %v2230_v21, %v2229_v18  ;;  %v5199_v18 = vpack.c.bf16 %v2242_v34, %v2241_v10 }
 0x1d1   :  { %v882_v35 = vmax.f32 %v568_v28, 0.0  ;;  %v2232_v28 = vld [vmem:[%s8330_s3 + $0x728] sm:$0xff] }
 0x1d2   :  { %v572_v25 = vpop.f32.mrb[94].mxu0  ;;  %5182 = vmatpush3.bf16.msra.mxu0 %v5181_v22 }
 0x1d3   :  { %v6485_v9 = vmax.f32 %v857_v31, %v882_v35  ;;  %v573_v37 = vadd.f32 %v6182_v14, %v572_v25  ;;  %v574_v36 = vpop.f32.mrb[95].mxu0  ;;  %5183 = vmatprep.subr.bf16.mxu0 %v8337_v0  ;;  %v5184_v31 = vpack.c.bf16 %v2232_v28, %v2231_v5  ;;  %v2234_v25 = vld [vmem:[%s8330_s3 + $0x738] sm:$0xff] }
 0x1d4   :  { %v5187_v36 = vpack.c.bf16 %v2234_v25, %v2233_v61 }
 0x1d5   :  { %v883_v45 = vmax.f32 %v573_v37, 0.0 }
 0x1d6   :  { %v577_v46 = vpop.f32.mrb[96].mxu0  ;;  %5185 = vmatpush3.bf16.msra.mxu0 %v5184_v31 }
 0x1d7   :  { %v6490_v13 = vmax.f32 %v858_v43, %v883_v45  ;;  %v578_v51 = vadd.f32 %v6182_v14, %v577_v46  ;;  %v579_v54 = vpop.f32.mrb[97].mxu0  ;;  %5186 = vmatprep.subr.bf16.mxu0 %v8337_v0  ;;  %v2235_v43 = vld [vmem:[%s8330_s3 + $0x740] sm:$0xff]  ;;  %v2236_v45 = vld [vmem:[%s8330_s3 + $0x748] sm:$0xff] }
 0x1d8   :  { %v2237_v54 = vld [vmem:[%s8330_s3 + $0x750] sm:$0xff] }
 0x1d9   :  { %v884_v40 = vmax.f32 %v578_v51, 0.0  ;;  %v5190_v51 = vpack.c.bf16 %v2236_v45, %v2235_v43 }
 0x1da   :  { %v582_v58 = vpop.f32.mrb[98].mxu0  ;;  %5188 = vmatpush3.bf16.msra.mxu0 %v5187_v36 }
 0x1db   :  { %v6495_v59 = vmax.f32 %v859_v29, %v884_v40  ;;  %v583_v17 = vadd.f32 %v6182_v14, %v582_v58  ;;  %v584_v63 = vpop.f32.mrb[99].mxu0  ;;  %5189 = vmatprep.subr.bf16.mxu0 %v8337_v0  ;;  %v5193_v58 = vpack.c.bf16 %v2238_v3, %v2237_v54 }
 0x1dd   :  { %v885_v8 = vmax.f32 %v583_v17, 0.0  ;;  %v2239_v17 = vld [vmem:[%s8330_s3 + $0x760] sm:$0xff] }
 0x1de   :  { %v6498_v2 = vpop.f32.mrb[100].mxu0  ;;  %5191 = vmatpush3.bf16.msra.mxu0 %v5190_v51 }
 0x1df   :  { %v6500_v44 = vmax.f32 %v860_v50, %v885_v8  ;;  %v589_v7 = vpop.f32.mrb[101].mxu0  ;;  %5192 = vmatprep.subr.bf16.mxu0 %v8337_v0  ;;  %v2240_v50 = vld [vmem:[%s8330_s3 + $0x768] sm:$0xff] }
 0x1e0   :  { %v5196_v7 = vpack.c.bf16 %v2240_v50, %v2239_v17 }
 0x1e1   :  { %8343 = vst [vmem:[#allocation2_spill] sm:$0xff] %v6500_v44  ;;  %v1014_v44 = vld [vmem:[%s8330_s3 + $0x18] sm:$0xff] }
 0x1e2   :  { %v6508_v55 = vpop.f32.mrb[102].mxu0  ;;  %5194 = vmatpush3.bf16.msra.mxu0 %v5193_v58 }
 0x1e3   :  { %v594_v1 = vpop.f32.mrb[103].mxu0  ;;  %5195 = vmatprep.subr.bf16.mxu0 %v8337_v0 }
 0x1e6   :  { %v6514_v20 = vpop.f32.mrb[104].mxu0  ;;  %5197 = vmatpush3.bf16.msra.mxu0 %v5196_v7 }
 0x1e7   :  { %v599_v48 = vpop.f32.mrb[105].mxu0  ;;  %5198 = vmatprep.subr.bf16.mxu0 %v8337_v0 }
 0x1ea   :  { %v6522_v24 = vpop.f32.mrb[106].mxu0  ;;  %5200 = vmatpush3.bf16.msra.mxu0 %v5199_v18 }
 0x1eb   :  { %v604_v52 = vpop.f32.mrb[107].mxu0  ;;  %5225 = vmatprep.subr.bf16.mxu0 %v8337_v0 }
 0x1ee   :  { %v6531_v35 = vpop.f32.mrb[108].mxu0 }
 0x1ef   :  { %v609_v37 = vpop.f32.mrb[109].mxu0 }
 0x1f2   :  { %v6540_v56 = vpop.f32.mrb[110].mxu0 }
 0x1f3   :  { %v614_v46 = vpop.f32.mrb[111].mxu0 }
 0x1f6   :  { %v6549_v29 = vpop.f32.mrb[112].mxu0 }
 0x1f7   :  { %v619_v40 = vpop.f32.mrb[113].mxu0 }
 0x1fa   :  { %v6558_v63 = vpop.f32.mrb[114].mxu0 }
 0x1fb   :  { %v624_v8 = vpop.f32.mrb[115].mxu0 }
 0x1fe   :  { %v6567_v15 = vpop.f32.mrb[116].mxu0 }
 0x1ff   :  { %v629_v1 = vpop.f32.mrb[117].mxu0 }
 0x202   :  { %v6573_v21 = vpop.f32.mrb[118].mxu0 }
 0x203   :  { %v634_v48 = vpop.f32.mrb[119].mxu0 }
 0x206   :  { %v6576_v22 = vpop.f32.mrb[120].mxu0 }
 0x207   :  { %v639_v5 = vpop.f32.mrb[121].mxu0 }
 0x20a   :  { %v6578_v28 = vpop.f32.mrb[122].mxu0 }
 0x20b   :  { %v644_v52 = vpop.f32.mrb[123].mxu0 }
 0x20e   :  { %v6580_v31 = vpop.f32.mrb[124].mxu0 }
 0x20f   :  { %v649_v61 = vpop.f32.mrb[125].mxu0 }
 0x212   :  { %v6582_v25 = vpop.f32.mrb[126].mxu0 }
 0x213   :  { %v654_v37 = vpop.f32.mrb[127].mxu0 }
 0x216   :  { %v6584_v36 = vpop.f32.mrb[128].mxu0 }
 0x217   :  { %v659_v43 = vpop.f32.mrb[129].mxu0 }
 0x218   :  { %v588_v43 = vadd.f32 %v6182_v14, %v6498_v2  ;;  %v1013_v2 = vld [vmem:[%s8330_s3 + $0x10] sm:$0xff] }
 0x21a   :  { %v6586_v45 = vpop.f32.mrb[130].mxu0 }
 0x21b   :  { %v664_v46 = vpop.f32.mrb[131].mxu0 }
 0x21e   :  { %v6588_v51 = vpop.f32.mrb[132].mxu0 }
 0x21f   :  { %v669_v54 = vpop.f32.mrb[133].mxu0 }
 0x222   :  { %v6590_v3 = vpop.f32.mrb[134].mxu0 }
 0x223   :  { %v674_v40 = vpop.f32.mrb[135].mxu0 }
 0x226   :  { %v6592_v58 = vpop.f32.mrb[136].mxu0 }
 0x227   :  { %v679_v17 = vpop.f32.mrb[137].mxu0 }
 0x228   :  { %v886_v17 = vmax.f32 %v588_v43, 0.0  ;;  %v1011_v43 = vld [vmem:[%s8330_s3] sm:$0xff] }
 0x22a   :  { %v6594_v50 = vpop.f32.mrb[138].mxu0 }
 0x22b   :  { %v684_v8 = vpop.f32.mrb[139].mxu0 }
 0x22c   :  { %v593_v8 = vadd.f32 %v6182_v14, %v6508_v55  ;;  %v1012_v55 = vld [vmem:[%s8330_s3 + $0x8] sm:$0xff] }
 0x22e   :  { %v6596_v7 = vpop.f32.mrb[140].mxu0  ;;  %v887_v27 = vmax.f32 %v593_v8, 0.0  ;;  %v4866_v8 = vpack.c.bf16 %v1012_v55, %v1011_v43  ;;  %v8344_v55 = vmov 0.0  }
 0x22f   :  { %v689_v10 = vpop.f32.mrb[141].mxu0 }
 0x232   :  { %v6598_v34 = vpop.f32.mrb[142].mxu0 }
 0x233   :  { %v694_v1 = vpop.f32.mrb[143].mxu0 }
 0x236   :  { %v6600_v18 = vpop.f32.mrb[144].mxu0 }
 0x237   :  { %v699_v48 = vpop.f32.mrb[145].mxu0 }
 0x23a   :  { %v6602_v5 = vpop.f32.mrb[146].mxu0 }
 0x23b   :  { %v704_v52 = vpop.f32.mrb[147].mxu0 }
 0x23e   :  { %v6604_v61 = vpop.f32.mrb[148].mxu0 }
 0x23f   :  { %v709_v37 = vpop.f32.mrb[149].mxu0 }
 0x240   :  { %v598_v37 = vadd.f32 %v6182_v14, %v6514_v20  ;;  %v603_v20 = vadd.f32 %v6182_v14, %v6522_v24  ;;  %v4869_v24 = vpack.c.bf16 %v1014_v44, %v1013_v2  ;;  %v1016_v44 = vld [vmem:[%s8330_s3 + $0x28] sm:$0xff] }
 0x242   :  { %v712_v46 = vpop.f32.mrb[150].mxu0 }
 0x243   :  { %v713_v54 = vadd.f32 %v6182_v14, %v712_v46  ;;  %v714_v40 = vpop.f32.mrb[151].mxu0 }
 0x245   :  { %v911_v10 = vmax.f32 %v713_v54, 0.0 }
 0x246   :  { %v717_v1 = vpop.f32.mrb[152].mxu0 }
 0x247   :  { %v6611_v48 = vmax.f32 %v886_v17, %v911_v10  ;;  %v718_v52 = vadd.f32 %v6182_v14, %v717_v1  ;;  %v719_v0 = vpop.f32.mrb[153].mxu0  ;;  %v888_v10 = vmax.f32 %v598_v37, 0.0 }
 0x249   :  { %v912_v46 = vmax.f32 %v718_v52, 0.0 }
 0x24a   :  { %v722_v54 = vpop.f32.mrb[154].mxu0 }
 0x24b   :  { %v962_v40 = vmax.f32 %v887_v27, %v912_v46  ;;  %v723_v0 = vadd.f32 %v6182_v14, %v722_v54  ;;  %v724_v17 = vpop.f32.mrb[155].mxu0  ;;  %v608_v54 = vadd.f32 %v6182_v14, %v6531_v35 }
 0x24c   :  { %v8345_v17 = vmov 0.0|0.0  }
 0x24d   :  { %v913_v1 = vmax.f32 %v723_v0, 0.0  ;;  %v987_v52 = vmax.f32 %v6214_v47, %v962_v40  ;;  %v889_v47 = vmax.f32 %v603_v20, 0.0 }
 0x24e   :  { %v727_v27 = vpop.f32.mrb[156].mxu0 }
 0x24f   :  { %v6634_v46 = vmax.f32 %v888_v10, %v913_v1  ;;  %v728_v43 = vadd.f32 %v6182_v14, %v727_v27  ;;  %3881 = vmatmul.mubr.f32.vlgmr.msra.gmra.mrb[0].mxu1 %v987_v52  ;;  %v729_v37 = vpop.f32.mrb[157].mxu0  ;;  %v1015_v10 = vld [vmem:[%s8330_s3 + $0x20] sm:$0xff]  ;;  %v890_v52 = vmax.f32 %v608_v54, 0.0  ;;  %v613_v27 = vadd.f32 %v6182_v14, %v6540_v56 }
 0x250   :  { %4867 = vmatpush3.bf16.msra.mxu1 %v4866_v8  ;;  %3915 = vmatprep.mubr.msk.f32.mxu1 %vm5494_vm0, %v8344_v55  ;;  %v4872_v1 = vpack.c.bf16 %v1016_v44, %v1015_v10 }
 0x251   :  { %v914_v0 = vmax.f32 %v728_v43, 0.0  ;;  %4868 = vmatprep.subr.bf16.mxu1 %v8345_v17 }
 0x252   :  { %v732_v2 = vpop.f32.mrb[158].mxu0 }
 0x253   :  { %v6650_v8 = vmax.f32 %v889_v47, %v914_v0  ;;  %v733_v20 = vadd.f32 %v6182_v14, %v732_v2  ;;  %v734_v35 = vpop.f32.mrb[159].mxu0  ;;  %v1017_v47 = vld [vmem:[%s8330_s3 + $0x30] sm:$0xff]  ;;  %v1018_v0 = vld [vmem:[%s8330_s3 + $0x38] sm:$0xff]  ;;  %v891_v2 = vmax.f32 %v613_v27, 0.0 }
 0x254   :  { %4870 = vmatpush3.bf16.msra.mxu1 %v4869_v24  ;;  %v4875_v44 = vpack.c.bf16 %v1018_v0, %v1017_v47 }
 0x255   :  { %v915_v37 = vmax.f32 %v733_v20, 0.0  ;;  %4871 = vmatprep.subr.bf16.mxu1 %v8345_v17  ;;  %v618_v20 = vadd.f32 %v6182_v14, %v6549_v29 }
 0x256   :  { %v737_v24 = vpop.f32.mrb[160].mxu0 }
 0x257   :  { %v6664_v10 = vmax.f32 %v890_v52, %v915_v37  ;;  %v738_v54 = vadd.f32 %v6182_v14, %v737_v24  ;;  %v739_v56 = vpop.f32.mrb[161].mxu0  ;;  %v1019_v52 = vld [vmem:[%s8330_s3 + $0x40] sm:$0xff]  ;;  %v1020_v37 = vld [vmem:[%s8330_s3 + $0x48] sm:$0xff]  ;;  %v892_v24 = vmax.f32 %v618_v20, 0.0 }
 0x258   :  { %4873 = vmatpush3.bf16.msra.mxu1 %v4872_v1  ;;  %v4878_v0 = vpack.c.bf16 %v1020_v37, %v1019_v52 }
 0x259   :  { %v916_v43 = vmax.f32 %v738_v54, 0.0  ;;  %4874 = vmatprep.subr.bf16.mxu1 %v8345_v17  ;;  %v623_v54 = vadd.f32 %v6182_v14, %v6558_v63 }
 0x25a   :  { %v742_v1 = vpop.f32.mrb[162].mxu0 }
 0x25b   :  { %v6678_v47 = vmax.f32 %v891_v2, %v916_v43  ;;  %v743_v27 = vadd.f32 %v6182_v14, %v742_v1  ;;  %v744_v29 = vpop.f32.mrb[163].mxu0  ;;  %v1021_v43 = vld [vmem:[%s8330_s3 + $0x50] sm:$0xff]  ;;  %v1022_v2 = vld [vmem:[%s8330_s3 + $0x58] sm:$0xff]  ;;  %v893_v1 = vmax.f32 %v623_v54, 0.0 }
 0x25c   :  { %4876 = vmatpush3.bf16.msra.mxu1 %v4875_v44  ;;  %v4881_v37 = vpack.c.bf16 %v1022_v2, %v1021_v43 }
 0x25d   :  { %v917_v35 = vmax.f32 %v743_v27, 0.0  ;;  %4877 = vmatprep.subr.bf16.mxu1 %v8345_v17  ;;  %v628_v27 = vadd.f32 %v6182_v14, %v6567_v15 }
 0x25e   :  { %v747_v44 = vpop.f32.mrb[164].mxu0 }
 0x25f   :  { %v6692_v52 = vmax.f32 %v892_v24, %v917_v35  ;;  %v748_v20 = vadd.f32 %v6182_v14, %v747_v44  ;;  %v749_v63 = vpop.f32.mrb[165].mxu0  ;;  %v1023_v35 = vld [vmem:[%s8330_s3 + $0x60] sm:$0xff]  ;;  %v1024_v24 = vld [vmem:[%s8330_s3 + $0x68] sm:$0xff]  ;;  %v894_v44 = vmax.f32 %v628_v27, 0.0 }
 0x260   :  { %4879 = vmatpush3.bf16.msra.mxu1 %v4878_v0  ;;  %v4884_v2 = vpack.c.bf16 %v1024_v24, %v1023_v35 }
 0x261   :  { %v918_v56 = vmax.f32 %v748_v20, 0.0  ;;  %4880 = vmatprep.subr.bf16.mxu1 %v8345_v17  ;;  %v633_v20 = vadd.f32 %v6182_v14, %v6573_v21 }
 0x262   :  { %v752_v0 = vpop.f32.mrb[166].mxu0 }
 0x263   :  { %v6706_v43 = vmax.f32 %v893_v1, %v918_v56  ;;  %v753_v54 = vadd.f32 %v6182_v14, %v752_v0  ;;  %v754_v15 = vpop.f32.mrb[167].mxu0  ;;  %v1025_v56 = vld [vmem:[%s8330_s3 + $0x70] sm:$0xff]  ;;  %v1026_v1 = vld [vmem:[%s8330_s3 + $0x78] sm:$0xff]  ;;  %v895_v0 = vmax.f32 %v633_v20, 0.0 }
 0x264   :  { %4882 = vmatpush3.bf16.msra.mxu1 %v4881_v37  ;;  %v4887_v24 = vpack.c.bf16 %v1026_v1, %v1025_v56 }
 0x265   :  { %v919_v29 = vmax.f32 %v753_v54, 0.0  ;;  %4883 = vmatprep.subr.bf16.mxu1 %v8345_v17  ;;  %v6726_v54 = vld [vmem:[%s8329_s2] ss:$0 sm:$0xff] }
 0x266   :  { %v757_v37 = vpop.f32.mrb[168].mxu0  ;;  %v638_v15 = vadd.f32 %v6726_v54, %v6576_v22 }
 0x267   :  { %v6720_v35 = vmax.f32 %v894_v44, %v919_v29  ;;  %v758_v27 = vadd.f32 %v6182_v14, %v757_v37  ;;  %v759_v21 = vpop.f32.mrb[169].mxu0  ;;  %v1183_v14 = vld [vmem:[%s8330_s3 + $0x100] sm:$0xff]  ;;  %v1184_v29 = vld [vmem:[%s8330_s3 + $0x108] sm:$0xff]  ;;  %v643_v37 = vadd.f32 %v6726_v54, %v6578_v28  ;;  %v8346_v28 = vmax.f32 %v6203_v33, %v6611_v48 }
 0x268   :  { %4885 = vmatpush3.bf16.msra.mxu1 %v4884_v2  ;;  %v4890_v56 = vpack.c.bf16 %v1184_v29, %v1183_v14  ;;  %v896_v1 = vmax.f32 %v638_v15, 0.0  ;;  %v1187_v33 = vld [vmem:[%s8330_s3 + $0x120] sm:$0xff]  ;;  %v1188_v48 = vld [vmem:[%s8330_s3 + $0x128] sm:$0xff] }
 0x269   :  { %v920_v40 = vmax.f32 %v758_v27, 0.0  ;;  %4886 = vmatprep.subr.bf16.mxu1 %v8345_v17  ;;  %v668_v27 = vadd.f32 %v6726_v54, %v6588_v51 }
 0x26a   :  { %v762_v2 = vpop.f32.mrb[170].mxu0 }
 0x26b   :  { %v6739_v44 = vmax.f32 %v895_v0, %v920_v40  ;;  %v763_v20 = vadd.f32 %v6726_v54, %v762_v2  ;;  %v764_v22 = vpop.f32.mrb[171].mxu0  ;;  %v1185_v40 = vld [vmem:[%s8330_s3 + $0x110] sm:$0xff]  ;;  %v1186_v0 = vld [vmem:[%s8330_s3 + $0x118] sm:$0xff] }
 0x26c   :  { %4888 = vmatpush3.bf16.msra.mxu1 %v4887_v24  ;;  %v4893_v2 = vpack.c.bf16 %v1186_v0, %v1185_v40  ;;  %v648_v22 = vadd.f32 %v6726_v54, %v6580_v31  ;;  %v4896_v0 = vpack.c.bf16 %v1188_v48, %v1187_v33 }
 0x26d   :  { %v921_v21 = vmax.f32 %v763_v20, 0.0  ;;  %4889 = vmatprep.subr.bf16.mxu1 %v8345_v17  ;;  %v897_v20 = vmax.f32 %v643_v37, 0.0 }
 0x26e   :  { %v767_v24 = vpop.f32.mrb[172].mxu0 }
 0x26f   :  { %v6753_v14 = vmax.f32 %v896_v1, %v921_v21  ;;  %v768_v15 = vadd.f32 %v6726_v54, %v767_v24  ;;  %3916 = vmatmul.mubr.f32.vlgmr.msra.gmra.mrb[2].mxu1 %v8346_v28  ;;  %v769_v29 = vpop.f32.mrb[173].mxu0  ;;  %v898_v24 = vmax.f32 %v648_v22, 0.0 }
 0x270   :  { %4891 = vmatpush3.bf16.msra.mxu1 %v4890_v56  ;;  %3950 = vmatprep.mubr.msk.f32.mxu1 %vm5494_vm0, %v8344_v55 }
 0x271   :  { %v922_v21 = vmax.f32 %v768_v15, 0.0  ;;  %4892 = vmatprep.subr.bf16.mxu1 %v8345_v17  ;;  %v653_v15 = vadd.f32 %v6726_v54, %v6582_v25 }
 0x272   :  { %v772_v56 = vpop.f32.mrb[174].mxu0 }
 0x273   :  { %v6772_v40 = vmax.f32 %v897_v20, %v922_v21  ;;  %v773_v37 = vadd.f32 %v6726_v54, %v772_v56  ;;  %v774_v31 = vpop.f32.mrb[175].mxu0  ;;  %v1189_v20 = vld [vmem:[%s8330_s3 + $0x130] sm:$0xff]  ;;  %v1190_v21 = vld [vmem:[%s8330_s3 + $0x138] sm:$0xff]  ;;  %v899_v56 = vmax.f32 %v653_v15, 0.0 }
 0x274   :  { %4894 = vmatpush3.bf16.msra.mxu1 %v4893_v2  ;;  %v4899_v48 = vpack.c.bf16 %v1190_v21, %v1189_v20 }
 0x275   :  { %v923_v29 = vmax.f32 %v773_v37, 0.0  ;;  %4895 = vmatprep.subr.bf16.mxu1 %v8345_v17  ;;  %v658_v37 = vadd.f32 %v6726_v54, %v6584_v36 }
 0x276   :  { %v777_v2 = vpop.f32.mrb[176].mxu0 }
 0x277   :  { %v6786_v33 = vmax.f32 %v898_v24, %v923_v29  ;;  %v778_v22 = vadd.f32 %v6726_v54, %v777_v2  ;;  %v779_v25 = vpop.f32.mrb[177].mxu0  ;;  %v1191_v24 = vld [vmem:[%s8330_s3 + $0x140] sm:$0xff]  ;;  %v1192_v29 = vld [vmem:[%s8330_s3 + $0x148] sm:$0xff]  ;;  %v1193_v2 = vld [vmem:[%s8330_s3 + $0x150] sm:$0xff] }
 0x278   :  { %4897 = vmatpush3.bf16.msra.mxu1 %v4896_v0  ;;  %v4902_v21 = vpack.c.bf16 %v1192_v29, %v1191_v24  ;;  %v663_v25 = vadd.f32 %v6726_v54, %v6586_v45 }
 0x279   :  { %v924_v28 = vmax.f32 %v778_v22, 0.0  ;;  %4898 = vmatprep.subr.bf16.mxu1 %v8345_v17  ;;  %v900_v22 = vmax.f32 %v658_v37, 0.0 }
 0x27a   :  { %v782_v0 = vpop.f32.mrb[178].mxu0  ;;  %v901_v31 = vmax.f32 %v663_v25, 0.0 }
 0x27b   :  { %v6800_v20 = vmax.f32 %v899_v56, %v924_v28  ;;  %v783_v15 = vadd.f32 %v6726_v54, %v782_v0  ;;  %v784_v36 = vpop.f32.mrb[179].mxu0  ;;  %v1194_v28 = vld [vmem:[%s8330_s3 + $0x158] sm:$0xff]  ;;  %v2402_v56 = vld [vmem:[%s8330_s3 + $0x808] sm:$0xff] }
 0x27c   :  { %4900 = vmatpush3.bf16.msra.mxu1 %v4899_v48  ;;  %v2401_v48 = vld [vmem:[%s8330_s3 + $0x800] sm:$0xff]  ;;  %v4905_v0 = vpack.c.bf16 %v1194_v28, %v1193_v2  ;;  %v2404_v2 = vld [vmem:[%s8330_s3 + $0x818] sm:$0xff] }
 0x27d   :  { %8347 = vst [vmem:[#allocation3_spill] sm:$0xff] %v6800_v20  ;;  %v925_v1 = vmax.f32 %v783_v15, 0.0  ;;  %4901 = vmatprep.subr.bf16.mxu1 %v8345_v17  ;;  %v5226_v15 = vpack.c.bf16 %v2402_v56, %v2401_v48  ;;  %v1195_v36 = vld [vmem:[%s8330_s3 + $0x160] sm:$0xff]  ;;  %v1197_v56 = vld [vmem:[%s8330_s3 + $0x170] sm:$0xff] }
 0x27e   :  { %v787_v37 = vpop.f32.mrb[180].mxu0 }
 0x27f   :  { %v975_v45 = vmax.f32 %v900_v22, %v925_v1  ;;  %v788_v24 = vadd.f32 %v6726_v54, %v787_v37  ;;  %v789_v29 = vpop.f32.mrb[181].mxu0  ;;  %v1196_v1 = vld [vmem:[%s8330_s3 + $0x168] sm:$0xff]  ;;  %v902_v37 = vmax.f32 %v668_v27, 0.0 }
 0x280   :  { %4903 = vmatpush3.bf16.msra.mxu1 %v4902_v21  ;;  %v2403_v21 = vld [vmem:[%s8330_s3 + $0x810] sm:$0xff]  ;;  %v4908_v28 = vpack.c.bf16 %v1196_v1, %v1195_v36 }
 0x281   :  { %v1000_v63 = vmax.f32 %v6377_v49, %v975_v45  ;;  %v926_v20 = vmax.f32 %v788_v24, 0.0  ;;  %4904 = vmatprep.subr.bf16.mxu1 %v8345_v17  ;;  %v5229_v48 = vpack.c.bf16 %v2404_v2, %v2403_v21  ;;  %v673_v45 = vadd.f32 %v6726_v54, %v6590_v3  ;;  %v2405_v24 = vld [vmem:[%s8330_s3 + $0x820] sm:$0xff]  ;;  %v2406_v3 = vld [vmem:[%s8330_s3 + $0x828] sm:$0xff] }
 0x282   :  { %v792_v22 = vpop.f32.mrb[182].mxu0  ;;  %v5232_v1 = vpack.c.bf16 %v2406_v3, %v2405_v24  ;;  %v1270_v21 = vld [vmem:[%s8330_s3 + $0x180] sm:$0xff]  ;;  %v1272_v3 = vld [vmem:[%s8330_s3 + $0x190] sm:$0xff] }
 0x283   :  { %v6837_v25 = vmax.f32 %v901_v31, %v926_v20  ;;  %v793_v49 = vadd.f32 %v6726_v54, %v792_v22  ;;  %4371 = vmatmul.mubr.f32.vlgmr.msra.gmra.mrb[200].mxu0 %v1000_v63  ;;  %v794_v51 = vpop.f32.mrb[183].mxu0  ;;  %v1198_v63 = vld [vmem:[%s8330_s3 + $0x178] sm:$0xff]  ;;  %v903_v2 = vmax.f32 %v673_v45, 0.0  ;;  %v678_v22 = vadd.f32 %v6726_v54, %v6592_v58 }
 0x284   :  { %4906 = vmatpush3.bf16.msra.mxu1 %v4905_v0  ;;  %5227 = vmatpush3.bf16.msra.mxu0 %v5226_v15  ;;  %v4911_v36 = vpack.c.bf16 %v1198_v63, %v1197_v56  ;;  %v2408_v58 = vld [vmem:[%s8330_s3 + $0x838] sm:$0xff] }
 0x285   :  { %v1001_v31 = vmax.f32 %v6395_v6, %v6837_v25  ;;  %v927_v20 = vmax.f32 %v793_v49, 0.0  ;;  %4907 = vmatprep.subr.bf16.mxu1 %v8345_v17  ;;  %5228 = vmatprep.subr.bf16.mxu0 %v8345_v17  ;;  %v2494_v6 = vld [vmem:[%s8330_s3 + $0x8b0] sm:$0xff]  ;;  %v2495_v25 = vld [vmem:[%s8330_s3 + $0x8b8] sm:$0xff] }
 0x286   :  { %v797_v27 = vpop.f32.mrb[184].mxu0  ;;  %4440 = vmatprep.mubr.msk.f32.mxu0 %vm5494_vm0, %v8344_v55 }
 0x287   :  { %v6860_v29 = vmax.f32 %v902_v37, %v927_v20  ;;  %v798_v0 = vadd.f32 %v6726_v54, %v797_v27  ;;  %v799_v15 = vpop.f32.mrb[185].mxu0  ;;  %v904_v27 = vmax.f32 %v678_v22, 0.0 }
 0x288   :  { %4909 = vmatpush3.bf16.msra.mxu1 %v4908_v28  ;;  %5230 = vmatpush3.bf16.msra.mxu0 %v5229_v48  ;;  %v1271_v28 = vld [vmem:[%s8330_s3 + $0x188] sm:$0xff]  ;;  %v2407_v48 = vld [vmem:[%s8330_s3 + $0x830] sm:$0xff] }
 0x289   :  { %v1002_v49 = vmax.f32 %v6413_v23, %v6860_v29  ;;  %v928_v51 = vmax.f32 %v798_v0, 0.0  ;;  %4910 = vmatprep.subr.bf16.mxu1 %v8345_v17  ;;  %5231 = vmatprep.subr.bf16.mxu0 %v8345_v17  ;;  %v4914_v63 = vpack.c.bf16 %v1271_v28, %v1270_v21  ;;  %v5235_v24 = vpack.c.bf16 %v2408_v58, %v2407_v48  ;;  %v1285_v23 = vld [vmem:[%s8330_s3 + $0x1f8] sm:$0xff]  ;;  %v2580_v29 = vld [vmem:[%s8330_s3 + $0x928] sm:$0xff] }
 0x28a   :  { %v802_v56 = vpop.f32.mrb[186].mxu0  ;;  %v683_v0 = vadd.f32 %v6726_v54, %v6594_v50  ;;  %v2410_v50 = vld [vmem:[%s8330_s3 + $0x848] sm:$0xff]  ;;  %v8348_v28 = vmax.f32 %v6225_v62, %v6634_v46  ;;  %v2411_v46 = vld [vmem:[%s8330_s3 + $0x850] sm:$0xff] }
 0x28b   :  { %v6881_v37 = vmax.f32 %v903_v2, %v928_v51  ;;  %v803_v45 = vadd.f32 %v6726_v54, %v802_v56  ;;  %v804_v20 = vpop.f32.mrb[187].mxu0  ;;  %v1275_v62 = vld [vmem:[%s8330_s3 + $0x1a8] sm:$0xff] }
 0x28c   :  { %4912 = vmatpush3.bf16.msra.mxu1 %v4911_v36  ;;  %5233 = vmatpush3.bf16.msra.mxu0 %v5232_v1  ;;  %v1273_v36 = vld [vmem:[%s8330_s3 + $0x198] sm:$0xff]  ;;  %v2409_v1 = vld [vmem:[%s8330_s3 + $0x840] sm:$0xff]  ;;  %v905_v20 = vmax.f32 %v683_v0, 0.0 }
 0x28d   :  { %v929_v2 = vmax.f32 %v803_v45, 0.0  ;;  %4913 = vmatprep.subr.bf16.mxu1 %v8345_v17  ;;  %5234 = vmatprep.subr.bf16.mxu0 %v8345_v17  ;;  %v4917_v58 = vpack.c.bf16 %v1273_v36, %v1272_v3  ;;  %v5238_v56 = vpack.c.bf16 %v2410_v50, %v2409_v1  ;;  %v1274_v45 = vld [vmem:[%s8330_s3 + $0x1a0] sm:$0xff]  ;;  %v1276_v50 = vld [vmem:[%s8330_s3 + $0x1b0] sm:$0xff] }
 0x28e   :  { %v807_v21 = vpop.f32.mrb[188].mxu0  ;;  %v4920_v36 = vpack.c.bf16 %v1275_v62, %v1274_v45 }
 0x28f   :  { %v6902_v22 = vmax.f32 %v904_v27, %v929_v2  ;;  %v808_v51 = vadd.f32 %v6726_v54, %v807_v21  ;;  %3951 = vmatmul.mubr.f32.vlgmr.msra.gmra.mrb[4].mxu1 %v8348_v28  ;;  %v809_v48 = vpop.f32.mrb[189].mxu0  ;;  %v688_v27 = vadd.f32 %v6726_v54, %v6596_v7  ;;  %v2412_v7 = vld [vmem:[%s8330_s3 + $0x858] sm:$0xff]  ;;  %v693_v28 = vadd.f32 %v6726_v54, %v6598_v34  ;;  %v2414_v34 = vld [vmem:[%s8330_s3 + $0x868] sm:$0xff] }
 0x290   :  { %4915 = vmatpush3.bf16.msra.mxu1 %v4914_v63  ;;  %5236 = vmatpush3.bf16.msra.mxu0 %v5235_v24  ;;  %v5241_v1 = vpack.c.bf16 %v2412_v7, %v2411_v46 }
 0x291   :  { %v1004_v2 = vmax.f32 %v6449_v60, %v6902_v22  ;;  %v930_v21 = vmax.f32 %v808_v51, 0.0  ;;  %4916 = vmatprep.subr.bf16.mxu1 %v8345_v17  ;;  %5237 = vmatprep.subr.bf16.mxu0 %v8345_v17  ;;  %v906_v51 = vmax.f32 %v688_v27, 0.0  ;;  %v2753_v60 = vld [vmem:[%s8330_s3 + $0xa20] sm:$0xff]  ;;  %v2754_v22 = vld [vmem:[%s8330_s3 + $0xa28] sm:$0xff] }
 0x292   :  { %v812_v63 = vpop.f32.mrb[190].mxu0  ;;  %3985 = vmatprep.mubr.msk.f32.mxu1 %vm5494_vm0, %v8344_v55 }
 0x293   :  { %v6928_v24 = vmax.f32 %v905_v20, %v930_v21  ;;  %v813_v3 = vadd.f32 %v6726_v54, %v812_v63  ;;  %v814_v0 = vpop.f32.mrb[191].mxu0  ;;  %v1278_v63 = vld [vmem:[%s8330_s3 + $0x1c0] sm:$0xff] }
 0x294   :  { %4918 = vmatpush3.bf16.msra.mxu1 %v4917_v58  ;;  %5239 = vmatpush3.bf16.msra.mxu0 %v5238_v56  ;;  %v1277_v58 = vld [vmem:[%s8330_s3 + $0x1b8] sm:$0xff]  ;;  %v2413_v56 = vld [vmem:[%s8330_s3 + $0x860] sm:$0xff]  ;;  %v698_v0 = vadd.f32 %v6726_v54, %v6600_v18 }
 0x295   :  { %v931_v20 = vmax.f32 %v813_v3, 0.0  ;;  %4919 = vmatprep.subr.bf16.mxu1 %v8345_v17  ;;  %5240 = vmatprep.subr.bf16.mxu0 %v8345_v17  ;;  %v4923_v46 = vpack.c.bf16 %v1277_v58, %v1276_v50  ;;  %v5244_v7 = vpack.c.bf16 %v2414_v34, %v2413_v56  ;;  %v907_v3 = vmax.f32 %v693_v28, 0.0  ;;  %v2416_v18 = vld [vmem:[%s8330_s3 + $0x878] sm:$0xff] }
 0x296   :  { %v817_v45 = vpop.f32.mrb[192].mxu0 }
 0x297   :  { %v6949_v27 = vmax.f32 %v906_v51, %v931_v20  ;;  %v818_v21 = vadd.f32 %v6726_v54, %v817_v45  ;;  %v819_v62 = vpop.f32.mrb[193].mxu0  ;;  %v1280_v45 = vld [vmem:[%s8330_s3 + $0x1d0] sm:$0xff] }
 0x298   :  { %4921 = vmatpush3.bf16.msra.mxu1 %v4920_v36  ;;  %5242 = vmatpush3.bf16.msra.mxu0 %v5241_v1  ;;  %v1279_v36 = vld [vmem:[%s8330_s3 + $0x1c8] sm:$0xff]  ;;  %v2415_v1 = vld [vmem:[%s8330_s3 + $0x870] sm:$0xff]  ;;  %v703_v62 = vadd.f32 %v6726_v54, %v6602_v5 }
 0x299   :  { %v1006_v48 = vmax.f32 %v6478_v39, %v6949_v27  ;;  %v932_v51 = vmax.f32 %v818_v21, 0.0  ;;  %4922 = vmatprep.subr.bf16.mxu1 %v8345_v17  ;;  %5243 = vmatprep.subr.bf16.mxu0 %v8345_v17  ;;  %v4926_v56 = vpack.c.bf16 %v1279_v36, %v1278_v63  ;;  %v5247_v34 = vpack.c.bf16 %v2416_v18, %v2415_v1  ;;  %v2576_v5 = vld [vmem:[%s8330_s3 + $0x908] sm:$0xff]  ;;  %v2927_v39 = vld [vmem:[%s8330_s3 + $0xb20] sm:$0xff] }
 0x29a   :  { %v822_v50 = vpop.f32.mrb[194].mxu0  ;;  %v908_v21 = vmax.f32 %v698_v0, 0.0 }
 0x29b   :  { %v6970_v28 = vmax.f32 %v907_v3, %v932_v51  ;;  %v823_v20 = vadd.f32 %v6726_v54, %v822_v50  ;;  %v824_v58 = vpop.f32.mrb[195].mxu0  ;;  %v1282_v50 = vld [vmem:[%s8330_s3 + $0x1e0] sm:$0xff] }
 0x29c   :  { %4924 = vmatpush3.bf16.msra.mxu1 %v4923_v46  ;;  %5245 = vmatpush3.bf16.msra.mxu0 %v5244_v7  ;;  %v1281_v46 = vld [vmem:[%s8330_s3 + $0x1d8] sm:$0xff]  ;;  %v2575_v7 = vld [vmem:[%s8330_s3 + $0x900] sm:$0xff]  ;;  %v708_v58 = vadd.f32 %v6726_v54, %v6604_v61 }
 0x29d   :  { %v933_v3 = vmax.f32 %v823_v20, 0.0  ;;  %4925 = vmatprep.subr.bf16.mxu1 %v8345_v17  ;;  %5246 = vmatprep.subr.bf16.mxu0 %v8345_v17  ;;  %v4929_v1 = vpack.c.bf16 %v1281_v46, %v1280_v45  ;;  %v5274_v18 = vpack.c.bf16 %v2576_v5, %v2575_v7  ;;  %v909_v20 = vmax.f32 %v703_v62, 0.0  ;;  %v2578_v61 = vld [vmem:[%s8330_s3 + $0x918] sm:$0xff] }
 0x29e   :  { %v827_v63 = vpop.f32.mrb[196].mxu0 }
 0x29f   :  { %v6991_v0 = vmax.f32 %v908_v21, %v933_v3  ;;  %v828_v51 = vadd.f32 %v6726_v54, %v827_v63  ;;  %v829_v36 = vpop.f32.mrb[197].mxu0  ;;  %v1284_v63 = vld [vmem:[%s8330_s3 + $0x1f0] sm:$0xff] }
 0x2a0   :  { %4927 = vmatpush3.bf16.msra.mxu1 %v4926_v56  ;;  %5248 = vmatpush3.bf16.msra.mxu0 %v5247_v34  ;;  %v1283_v56 = vld [vmem:[%s8330_s3 + $0x1e8] sm:$0xff]  ;;  %v2577_v34 = vld [vmem:[%s8330_s3 + $0x910] sm:$0xff] }
 0x2a1   :  { %v1008_v15 = vmax.f32 %v6490_v13, %v6991_v0  ;;  %v934_v21 = vmax.f32 %v828_v51, 0.0  ;;  %4928 = vmatprep.subr.bf16.mxu1 %v8345_v17  ;;  %5273 = vmatprep.subr.bf16.mxu0 %v8345_v17  ;;  %v4932_v7 = vpack.c.bf16 %v1283_v56, %v1282_v50  ;;  %v5277_v5 = vpack.c.bf16 %v2578_v61, %v2577_v34  ;;  %v1357_v50 = vld [vmem:[%s8330_s3 + $0x200] sm:$0xff]  ;;  %v1358_v56 = vld [vmem:[%s8330_s3 + $0x208] sm:$0xff]  ;;  %v2581_v34 = vld [vmem:[%s8330_s3 + $0x930] sm:$0xff] }
 0x2a2   :  { %v832_v45 = vpop.f32.mrb[198].mxu0  ;;  %v910_v51 = vmax.f32 %v708_v58, 0.0  ;;  %v8349_v58 = vld [vmem:[#allocation2_spill] sm:$0xff]  ;;  %v2582_v61 = vld [vmem:[%s8330_s3 + $0x938] sm:$0xff] }
 0x2a3   :  { %v7012_v62 = vmax.f32 %v909_v20, %v934_v21  ;;  %v833_v3 = vadd.f32 %v6726_v54, %v832_v45  ;;  %4441 = vmatmul.mubr.f32.vlgmr.msra.gmra.mrb[202].mxu0 %v1002_v49  ;;  %v834_v46 = vpop.f32.mrb[199].mxu0  ;;  %v2579_v54 = vld [vmem:[%s8330_s3 + $0x920] sm:$0xff]  ;;  %v4938_v45 = vpack.c.bf16 %v1358_v56, %v1357_v50  ;;  %v1363_v50 = vld [vmem:[%s8330_s3 + $0x230] sm:$0xff]  ;;  %v1364_v56 = vld [vmem:[%s8330_s3 + $0x238] sm:$0xff] }
 0x2a4   :  { %4930 = vmatpush3.bf16.msra.mxu1 %v4929_v1  ;;  %5275 = vmatpush3.bf16.msra.mxu0 %v5274_v18  ;;  %v4935_v1 = vpack.c.bf16 %v1285_v23, %v1284_v63  ;;  %v5280_v18 = vpack.c.bf16 %v2580_v29, %v2579_v54  ;;  %v1359_v46 = vld [vmem:[%s8330_s3 + $0x210] sm:$0xff]  ;;  %v2584_v63 = vld [vmem:[%s8330_s3 + $0x948] sm:$0xff]  ;;  %v1361_v54 = vld [vmem:[%s8330_s3 + $0x220] sm:$0xff] }
 0x2a5   :  { %v1009_v36 = vmax.f32 %v6495_v59, %v7012_v62  ;;  %v935_v20 = vmax.f32 %v833_v3, 0.0  ;;  %4931 = vmatprep.subr.bf16.mxu1 %v8345_v17  ;;  %5276 = vmatprep.subr.bf16.mxu0 %v8345_v17  ;;  %v5283_v3 = vpack.c.bf16 %v2582_v61, %v2581_v34  ;;  %v1362_v29 = vld [vmem:[%s8330_s3 + $0x228] sm:$0xff]  ;;  %v2587_v34 = vld [vmem:[%s8330_s3 + $0x960] sm:$0xff]  ;;  %v3195_v59 = vld [vmem:[%s8331_s5 + $0x10] sm:$0xff] }
 0x2a6   :  { %4510 = vmatprep.mubr.msk.f32.mxu0 %vm5494_vm0, %v8344_v55  ;;  %v2588_v61 = vld [vmem:[%s8330_s3 + $0x968] sm:$0xff]  ;;  %v3101_v13 = vld [vmem:[%s8330_s3 + $0xc20] sm:$0xff] }
 0x2a7   :  { %v7036_v49 = vmax.f32 %v910_v51, %v935_v20  ;;  %v8350_v51 = vmax.f32 %v6236_v12, %v6650_v8  ;;  %v2585_v12 = vld [vmem:[%s8330_s3 + $0x950] sm:$0xff]  ;;  %v2586_v8 = vld [vmem:[%s8330_s3 + $0x958] sm:$0xff] }
 0x2a8   :  { %4933 = vmatpush3.bf16.msra.mxu1 %v4932_v7  ;;  %5278 = vmatpush3.bf16.msra.mxu0 %v5277_v5  ;;  %v1360_v7 = vld [vmem:[%s8330_s3 + $0x218] sm:$0xff]  ;;  %v2583_v5 = vld [vmem:[%s8330_s3 + $0x940] sm:$0xff] }
 0x2a9   :  { %v1010_v21 = vmax.f32 %v8349_v58, %v7036_v49  ;;  %4934 = vmatprep.subr.bf16.mxu1 %v8345_v17  ;;  %5279 = vmatprep.subr.bf16.mxu0 %v8345_v17  ;;  %v4941_v20 = vpack.c.bf16 %v1360_v7, %v1359_v46  ;;  %v5286_v23 = vpack.c.bf16 %v2584_v63, %v2583_v5  ;;  %v1365_v46 = vld [vmem:[%s8330_s3 + $0x240] sm:$0xff]  ;;  %v1366_v7 = vld [vmem:[%s8330_s3 + $0x248] sm:$0xff]  ;;  %v2589_v5 = vld [vmem:[%s8330_s3 + $0x970] sm:$0xff] }
 0x2aa   :  { %v2590_v63 = vld [vmem:[%s8330_s3 + $0x978] sm:$0xff]  ;;  %v1705_v49 = vld [vmem:[%s8330_s3 + $0x400] sm:$0xff]  ;;  %v1706_v58 = vld [vmem:[%s8330_s3 + $0x408] sm:$0xff] }
 0x2ac   :  { %4936 = vmatpush3.bf16.msra.mxu1 %v4935_v1  ;;  %5281 = vmatpush3.bf16.msra.mxu0 %v5280_v18  ;;  %v4944_v1 = vpack.c.bf16 %v1362_v29, %v1361_v54  ;;  %v5289_v18 = vpack.c.bf16 %v2586_v8, %v2585_v12  ;;  %v1368_v54 = vld [vmem:[%s8330_s3 + $0x258] sm:$0xff]  ;;  %v2749_v29 = vld [vmem:[%s8330_s3 + $0xa00] sm:$0xff]  ;;  %v2750_v12 = vld [vmem:[%s8330_s3 + $0xa08] sm:$0xff] }
 0x2ad   :  { %4937 = vmatprep.subr.bf16.mxu1 %v8345_v17  ;;  %5282 = vmatprep.subr.bf16.mxu0 %v8345_v17 }
 0x2af   :  { %3986 = vmatmul.mubr.f32.vlgmr.msra.gmra.mrb[6].mxu1 %v8350_v51  ;;  %v4950_v51 = vpack.c.bf16 %v1366_v7, %v1365_v46  ;;  %v1372_v46 = vld [vmem:[%s8330_s3 + $0x278] sm:$0xff]  ;;  %v5328_v7 = vpack.c.bf16 %v2754_v22, %v2753_v60  ;;  %v2761_v22 = vld [vmem:[%s8330_s3 + $0xa60] sm:$0xff] }
 0x2b0   :  { %4939 = vmatpush3.bf16.msra.mxu1 %v4938_v45  ;;  %5284 = vmatpush3.bf16.msra.mxu0 %v5283_v3  ;;  %v4947_v45 = vpack.c.bf16 %v1364_v56, %v1363_v50  ;;  %v5292_v3 = vpack.c.bf16 %v2588_v61, %v2587_v34  ;;  %v1370_v50 = vld [vmem:[%s8330_s3 + $0x268] sm:$0xff]  ;;  %v2751_v56 = vld [vmem:[%s8330_s3 + $0xa10] sm:$0xff]  ;;  %v2752_v34 = vld [vmem:[%s8330_s3 + $0xa18] sm:$0xff] }
 0x2b1   :  { %4940 = vmatprep.subr.bf16.mxu1 %v8345_v17  ;;  %5285 = vmatprep.subr.bf16.mxu0 %v8345_v17  ;;  %v1451_v60 = vld [vmem:[%s8330_s3 + $0x2b8] sm:$0xff] }
 0x2b2   :  { %4020 = vmatprep.mubr.msk.f32.mxu1 %vm5494_vm0, %v8344_v55 }
 0x2b4   :  { %4942 = vmatpush3.bf16.msra.mxu1 %v4941_v20  ;;  %5287 = vmatpush3.bf16.msra.mxu0 %v5286_v23  ;;  %v5295_v20 = vpack.c.bf16 %v2590_v63, %v2589_v5  ;;  %v1367_v23 = vld [vmem:[%s8330_s3 + $0x250] sm:$0xff]  ;;  %v1444_v5 = vld [vmem:[%s8330_s3 + $0x280] sm:$0xff]  ;;  %v1445_v63 = vld [vmem:[%s8330_s3 + $0x288] sm:$0xff] }
 0x2b5   :  { %4943 = vmatprep.subr.bf16.mxu1 %v8345_v17  ;;  %5288 = vmatprep.subr.bf16.mxu0 %v8345_v17  ;;  %v4953_v8 = vpack.c.bf16 %v1368_v54, %v1367_v23  ;;  %v4962_v23 = vpack.c.bf16 %v1445_v63, %v1444_v5  ;;  %v1452_v63 = vld [vmem:[%s8330_s3 + $0x2c0] sm:$0xff] }
 0x2b8   :  { %4945 = vmatpush3.bf16.msra.mxu1 %v4944_v1  ;;  %5290 = vmatpush3.bf16.msra.mxu0 %v5289_v18  ;;  %v5322_v1 = vpack.c.bf16 %v2750_v12, %v2749_v29  ;;  %v1369_v18 = vld [vmem:[%s8330_s3 + $0x260] sm:$0xff]  ;;  %v1446_v29 = vld [vmem:[%s8330_s3 + $0x290] sm:$0xff]  ;;  %v1447_v12 = vld [vmem:[%s8330_s3 + $0x298] sm:$0xff] }
 0x2b9   :  { %4946 = vmatprep.subr.bf16.mxu1 %v8345_v17  ;;  %5291 = vmatprep.subr.bf16.mxu0 %v8345_v17  ;;  %v4956_v61 = vpack.c.bf16 %v1370_v50, %v1369_v18  ;;  %v8351_v18 = vmax.f32 %v6247_v26, %v6664_v10  ;;  %v4965_v50 = vpack.c.bf16 %v1447_v12, %v1446_v29  ;;  %v2759_v26 = vld [vmem:[%s8330_s3 + $0xa50] sm:$0xff]  ;;  %v2760_v10 = vld [vmem:[%s8330_s3 + $0xa58] sm:$0xff] }
 0x2ba   :  { %v1454_v12 = vld [vmem:[%s8330_s3 + $0x2d0] sm:$0xff] }
 0x2bc   :  { %4948 = vmatpush3.bf16.msra.mxu1 %v4947_v45  ;;  %5293 = vmatpush3.bf16.msra.mxu0 %v5292_v3  ;;  %v5325_v45 = vpack.c.bf16 %v2752_v34, %v2751_v56  ;;  %v1371_v3 = vld [vmem:[%s8330_s3 + $0x270] sm:$0xff]  ;;  %v1448_v34 = vld [vmem:[%s8330_s3 + $0x2a0] sm:$0xff] }
 0x2bd   :  { %4949 = vmatprep.subr.bf16.mxu1 %v8345_v17  ;;  %5294 = vmatprep.subr.bf16.mxu0 %v8345_v17 }
 0x2c0   :  { %4951 = vmatpush3.bf16.msra.mxu1 %v4950_v51  ;;  %5296 = vmatpush3.bf16.msra.mxu0 %v5295_v20  ;;  %v2755_v51 = vld [vmem:[%s8330_s3 + $0xa30] sm:$0xff]  ;;  %v2756_v20 = vld [vmem:[%s8330_s3 + $0xa38] sm:$0xff] }
 0x2c1   :  { %4952 = vmatprep.subr.bf16.mxu1 %v8345_v17  ;;  %5321 = vmatprep.subr.bf16.mxu0 %v8345_v17  ;;  %v5331_v54 = vpack.c.bf16 %v2756_v20, %v2755_v51  ;;  %v1453_v51 = vld [vmem:[%s8330_s3 + $0x2c8] sm:$0xff]  ;;  %v2763_v20 = vld [vmem:[%s8330_s3 + $0xa70] sm:$0xff] }
 0x2c3   :  { %4511 = vmatmul.mubr.f32.vlgmr.msra.gmra.mrb[204].mxu0 %v1004_v2  ;;  %v4959_v2 = vpack.c.bf16 %v1372_v46, %v1371_v3  ;;  %v5337_v3 = vpack.c.bf16 %v2760_v10, %v2759_v26  ;;  %v1450_v46 = vld [vmem:[%s8330_s3 + $0x2b0] sm:$0xff]  ;;  %v2926_v10 = vld [vmem:[%s8330_s3 + $0xb18] sm:$0xff] }
 0x2c4   :  { %4954 = vmatpush3.bf16.msra.mxu1 %v4953_v8  ;;  %5323 = vmatpush3.bf16.msra.mxu0 %v5322_v1  ;;  %v2757_v8 = vld [vmem:[%s8330_s3 + $0xa40] sm:$0xff]  ;;  %v2758_v1 = vld [vmem:[%s8330_s3 + $0xa48] sm:$0xff]  ;;  %v2925_v26 = vld [vmem:[%s8330_s3 + $0xb10] sm:$0xff] }
 0x2c5   :  { %4955 = vmatprep.subr.bf16.mxu1 %v8345_v17  ;;  %5324 = vmatprep.subr.bf16.mxu0 %v8345_v17  ;;  %v5334_v56 = vpack.c.bf16 %v2758_v1, %v2757_v8  ;;  %v1455_v8 = vld [vmem:[%s8330_s3 + $0x2d8] sm:$0xff]  ;;  %v2923_v1 = vld [vmem:[%s8330_s3 + $0xb00] sm:$0xff] }
 0x2c6   :  { %4580 = vmatprep.mubr.msk.f32.mxu0 %vm5494_vm0, %v8344_v55 }
 0x2c8   :  { %4957 = vmatpush3.bf16.msra.mxu1 %v4956_v61  ;;  %5326 = vmatpush3.bf16.msra.mxu0 %v5325_v45  ;;  %v1449_v61 = vld [vmem:[%s8330_s3 + $0x2a8] sm:$0xff] }
 0x2c9   :  { %4958 = vmatprep.subr.bf16.mxu1 %v8345_v17  ;;  %5327 = vmatprep.subr.bf16.mxu0 %v8345_v17  ;;  %v4968_v45 = vpack.c.bf16 %v1449_v61, %v1448_v34  ;;  %v1456_v34 = vld [vmem:[%s8330_s3 + $0x2e0] sm:$0xff]  ;;  %v1457_v61 = vld [vmem:[%s8330_s3 + $0x2e8] sm:$0xff] }
 0x2cc   :  { %4960 = vmatpush3.bf16.msra.mxu1 %v4959_v2  ;;  %5329 = vmatpush3.bf16.msra.mxu0 %v5328_v7  ;;  %v2762_v2 = vld [vmem:[%s8330_s3 + $0xa68] sm:$0xff]  ;;  %v4971_v7 = vpack.c.bf16 %v1451_v60, %v1450_v46  ;;  %v1458_v46 = vld [vmem:[%s8330_s3 + $0x2f0] sm:$0xff]  ;;  %v1459_v60 = vld [vmem:[%s8330_s3 + $0x2f8] sm:$0xff] }
 0x2cd   :  { %4961 = vmatprep.subr.bf16.mxu1 %v8345_v17  ;;  %5330 = vmatprep.subr.bf16.mxu0 %v8345_v17  ;;  %v5340_v5 = vpack.c.bf16 %v2762_v2, %v2761_v22  ;;  %v4983_v27 = vpack.c.bf16 %v1459_v60, %v1458_v46  ;;  %v1531_v2 = vld [vmem:[%s8330_s3 + $0x300] sm:$0xff] }
 0x2cf   :  { %4021 = vmatmul.mubr.f32.vlgmr.msra.gmra.mrb[8].mxu1 %v8351_v18  ;;  %v2924_v18 = vld [vmem:[%s8330_s3 + $0xb08] sm:$0xff] }
 0x2d0   :  { %4963 = vmatpush3.bf16.msra.mxu1 %v4962_v23  ;;  %5332 = vmatpush3.bf16.msra.mxu0 %v5331_v54  ;;  %v2764_v23 = vld [vmem:[%s8330_s3 + $0xa78] sm:$0xff]  ;;  %v4974_v54 = vpack.c.bf16 %v1453_v51, %v1452_v63 }
 0x2d1   :  { %4964 = vmatprep.subr.bf16.mxu1 %v8345_v17  ;;  %5333 = vmatprep.subr.bf16.mxu0 %v8345_v17  ;;  %v5343_v29 = vpack.c.bf16 %v2764_v23, %v2763_v20  ;;  %v2930_v63 = vld [vmem:[%s8330_s3 + $0xb38] sm:$0xff]  ;;  %v1533_v23 = vld [vmem:[%s8330_s3 + $0x310] sm:$0xff] }
 0x2d2   :  { %4055 = vmatprep.mubr.msk.f32.mxu1 %vm5494_vm0, %v8344_v55 }
 0x2d4   :  { %4966 = vmatpush3.bf16.msra.mxu1 %v4965_v50  ;;  %5335 = vmatpush3.bf16.msra.mxu0 %v5334_v56  ;;  %v4977_v50 = vpack.c.bf16 %v1455_v8, %v1454_v12  ;;  %v5370_v56 = vpack.c.bf16 %v2924_v18, %v2923_v1  ;;  %v2932_v12 = vld [vmem:[%s8330_s3 + $0xb48] sm:$0xff]  ;;  %v8352_v8 = vmax.f32 %v6258_v38, %v6678_v47  ;;  %v2933_v38 = vld [vmem:[%s8330_s3 + $0xb50] sm:$0xff]  ;;  %v2934_v47 = vld [vmem:[%s8330_s3 + $0xb58] sm:$0xff] }
 0x2d5   :  { %4967 = vmatprep.subr.bf16.mxu1 %v8345_v17  ;;  %5336 = vmatprep.subr.bf16.mxu0 %v8345_v17 }
 0x2d8   :  { %4969 = vmatpush3.bf16.msra.mxu1 %v4968_v45  ;;  %5338 = vmatpush3.bf16.msra.mxu0 %v5337_v3  ;;  %v4980_v45 = vpack.c.bf16 %v1457_v61, %v1456_v34  ;;  %v5373_v3 = vpack.c.bf16 %v2926_v10, %v2925_v26  ;;  %v5385_v61 = vpack.c.bf16 %v2934_v47, %v2933_v38  ;;  %v1537_v26 = vld [vmem:[%s8330_s3 + $0x330] sm:$0xff]  ;;  %v1538_v10 = vld [vmem:[%s8330_s3 + $0x338] sm:$0xff] }
 0x2d9   :  { %4970 = vmatprep.subr.bf16.mxu1 %v8345_v17  ;;  %5339 = vmatprep.subr.bf16.mxu0 %v8345_v17  ;;  %v4995_v46 = vpack.c.bf16 %v1538_v10, %v1537_v26  ;;  %v1546_v38 = vld [vmem:[%s8330_s3 + $0x378] sm:$0xff]  ;;  %v3103_v26 = vld [vmem:[%s8330_s3 + $0xc30] sm:$0xff] }
 0x2da   :  { %v3104_v10 = vld [vmem:[%s8330_s3 + $0xc38] sm:$0xff] }
 0x2dc   :  { %4972 = vmatpush3.bf16.msra.mxu1 %v4971_v7  ;;  %5341 = vmatpush3.bf16.msra.mxu0 %v5340_v5  ;;  %v1532_v7 = vld [vmem:[%s8330_s3 + $0x308] sm:$0xff]  ;;  %v2929_v5 = vld [vmem:[%s8330_s3 + $0xb30] sm:$0xff] }
 0x2dd   :  { %4973 = vmatprep.subr.bf16.mxu1 %v8345_v17  ;;  %5342 = vmatprep.subr.bf16.mxu0 %v8345_v17  ;;  %v4986_v51 = vpack.c.bf16 %v1532_v7, %v1531_v2  ;;  %v5379_v20 = vpack.c.bf16 %v2930_v63, %v2929_v5  ;;  %v1541_v5 = vld [vmem:[%s8330_s3 + $0x350] sm:$0xff]  ;;  %v1542_v63 = vld [vmem:[%s8330_s3 + $0x358] sm:$0xff] }
 0x2e0   :  { %4975 = vmatpush3.bf16.msra.mxu1 %v4974_v54  ;;  %5344 = vmatpush3.bf16.msra.mxu0 %v5343_v29  ;;  %v1534_v54 = vld [vmem:[%s8330_s3 + $0x318] sm:$0xff]  ;;  %v2931_v29 = vld [vmem:[%s8330_s3 + $0xb40] sm:$0xff] }
 0x2e1   :  { %4976 = vmatprep.subr.bf16.mxu1 %v8345_v17  ;;  %5369 = vmatprep.subr.bf16.mxu0 %v8345_v17  ;;  %v4989_v1 = vpack.c.bf16 %v1534_v54, %v1533_v23  ;;  %v5382_v18 = vpack.c.bf16 %v2932_v12, %v2931_v29  ;;  %v5001_v23 = vpack.c.bf16 %v1542_v63, %v1541_v5  ;;  %v1543_v29 = vld [vmem:[%s8330_s3 + $0x360] sm:$0xff]  ;;  %v1544_v12 = vld [vmem:[%s8330_s3 + $0x368] sm:$0xff] }
 0x2e2   :  { %v1623_v5 = vld [vmem:[%s8330_s3 + $0x3a8] sm:$0xff] }
 0x2e3   :  { %4581 = vmatmul.mubr.f32.vlgmr.msra.gmra.mrb[206].mxu0 %v1006_v48  ;;  %v2928_v48 = vld [vmem:[%s8330_s3 + $0xb28] sm:$0xff] }
 0x2e4   :  { %4978 = vmatpush3.bf16.msra.mxu1 %v4977_v50  ;;  %5371 = vmatpush3.bf16.msra.mxu0 %v5370_v56  ;;  %v5376_v22 = vpack.c.bf16 %v2928_v48, %v2927_v39  ;;  %v1535_v50 = vld [vmem:[%s8330_s3 + $0x320] sm:$0xff]  ;;  %v1536_v56 = vld [vmem:[%s8330_s3 + $0x328] sm:$0xff] }
 0x2e5   :  { %4979 = vmatprep.subr.bf16.mxu1 %v8345_v17  ;;  %5372 = vmatprep.subr.bf16.mxu0 %v8345_v17  ;;  %v4992_v34 = vpack.c.bf16 %v1536_v56, %v1535_v50  ;;  %v1539_v39 = vld [vmem:[%s8330_s3 + $0x340] sm:$0xff]  ;;  %v1540_v48 = vld [vmem:[%s8330_s3 + $0x348] sm:$0xff]  ;;  %v1545_v56 = vld [vmem:[%s8330_s3 + $0x370] sm:$0xff] }
 0x2e6   :  { %4650 = vmatprep.mubr.msk.f32.mxu0 %vm5494_vm0, %v8344_v55  ;;  %v4998_v2 = vpack.c.bf16 %v1540_v48, %v1539_v39  ;;  %v5007_v0 = vpack.c.bf16 %v1546_v38, %v1545_v56  ;;  %v3105_v39 = vld [vmem:[%s8330_s3 + $0xc40] sm:$0xff]  ;;  %v3106_v48 = vld [vmem:[%s8330_s3 + $0xc48] sm:$0xff]  ;;  %v3112_v56 = vld [vmem:[%s8330_s3 + $0xc78] sm:$0xff] }
 0x2e8   :  { %4981 = vmatpush3.bf16.msra.mxu1 %v4980_v45  ;;  %5374 = vmatpush3.bf16.msra.mxu0 %v5373_v3  ;;  %v2935_v45 = vld [vmem:[%s8330_s3 + $0xb60] sm:$0xff]  ;;  %v2936_v3 = vld [vmem:[%s8330_s3 + $0xb68] sm:$0xff] }
 0x2e9   :  { %4982 = vmatprep.subr.bf16.mxu1 %v8345_v17  ;;  %5375 = vmatprep.subr.bf16.mxu0 %v8345_v17  ;;  %v5388_v60 = vpack.c.bf16 %v2936_v3, %v2935_v45  ;;  %v5427_v3 = vpack.c.bf16 %v3104_v10, %v3103_v26 }
 0x2ec   :  { %4984 = vmatpush3.bf16.msra.mxu1 %v4983_v27  ;;  %5377 = vmatpush3.bf16.msra.mxu0 %v5376_v22  ;;  %v2937_v27 = vld [vmem:[%s8330_s3 + $0xb70] sm:$0xff]  ;;  %v2938_v22 = vld [vmem:[%s8330_s3 + $0xb78] sm:$0xff] }
 0x2ed   :  { %4985 = vmatprep.subr.bf16.mxu1 %v8345_v17  ;;  %5378 = vmatprep.subr.bf16.mxu0 %v8345_v17  ;;  %v5391_v7 = vpack.c.bf16 %v2938_v22, %v2937_v27  ;;  %v8353_v27 = vmax.f32 %v6269_v53, %v6692_v52  ;;  %v3107_v53 = vld [vmem:[%s8330_s3 + $0xc50] sm:$0xff]  ;;  %v3108_v52 = vld [vmem:[%s8330_s3 + $0xc58] sm:$0xff] }
 0x2ef   :  { %4056 = vmatmul.mubr.f32.vlgmr.msra.gmra.mrb[10].mxu1 %v8352_v8  ;;  %v3099_v8 = vld [vmem:[%s8330_s3 + $0xc10] sm:$0xff] }
 0x2f0   :  { %4987 = vmatpush3.bf16.msra.mxu1 %v4986_v51  ;;  %5380 = vmatpush3.bf16.msra.mxu0 %v5379_v20  ;;  %v3097_v51 = vld [vmem:[%s8330_s3 + $0xc00] sm:$0xff]  ;;  %v3098_v20 = vld [vmem:[%s8330_s3 + $0xc08] sm:$0xff] }
 0x2f1   :  { %4988 = vmatprep.subr.bf16.mxu1 %v8345_v17  ;;  %5381 = vmatprep.subr.bf16.mxu0 %v8345_v17  ;;  %v5418_v54 = vpack.c.bf16 %v3098_v20, %v3097_v51  ;;  %v5433_v51 = vpack.c.bf16 %v3108_v52, %v3107_v53  ;;  %v1624_v20 = vld [vmem:[%s8330_s3 + $0x3b0] sm:$0xff]  ;;  %v1713_v52 = vld [vmem:[%s8330_s3 + $0x440] sm:$0xff] }
 0x2f2   :  { %4090 = vmatprep.mubr.msk.f32.mxu1 %vm5494_vm0, %v8344_v55 }
 0x2f4   :  { %4990 = vmatpush3.bf16.msra.mxu1 %v4989_v1  ;;  %5383 = vmatpush3.bf16.msra.mxu0 %v5382_v18  ;;  %v3100_v1 = vld [vmem:[%s8330_s3 + $0xc18] sm:$0xff]  ;;  %v5004_v18 = vpack.c.bf16 %v1544_v12, %v1543_v29  ;;  %v3110_v29 = vld [vmem:[%s8330_s3 + $0xc68] sm:$0xff] }
 0x2f5   :  { %4991 = vmatprep.subr.bf16.mxu1 %v8345_v17  ;;  %5384 = vmatprep.subr.bf16.mxu0 %v8345_v17  ;;  %v5421_v50 = vpack.c.bf16 %v3100_v1, %v3099_v8  ;;  %v1626_v1 = vld [vmem:[%s8330_s3 + $0x3c0] sm:$0xff] }
 0x2f8   :  { %4993 = vmatpush3.bf16.msra.mxu1 %v4992_v34  ;;  %5386 = vmatpush3.bf16.msra.mxu0 %v5385_v61  ;;  %v1618_v34 = vld [vmem:[%s8330_s3 + $0x380] sm:$0xff]  ;;  %v1619_v61 = vld [vmem:[%s8330_s3 + $0x388] sm:$0xff] }
 0x2f9   :  { %4994 = vmatprep.subr.bf16.mxu1 %v8345_v17  ;;  %5387 = vmatprep.subr.bf16.mxu0 %v8345_v17  ;;  %v5010_v45 = vpack.c.bf16 %v1619_v61, %v1618_v34  ;;  %v1630_v34 = vld [vmem:[%s8330_s3 + $0x3e0] sm:$0xff]  ;;  %v1631_v61 = vld [vmem:[%s8330_s3 + $0x3e8] sm:$0xff] }
 0x2fc   :  { %4996 = vmatpush3.bf16.msra.mxu1 %v4995_v46  ;;  %5389 = vmatpush3.bf16.msra.mxu0 %v5388_v60  ;;  %v1620_v46 = vld [vmem:[%s8330_s3 + $0x390] sm:$0xff]  ;;  %v1621_v60 = vld [vmem:[%s8330_s3 + $0x398] sm:$0xff] }
 0x2fd   :  { %4997 = vmatprep.subr.bf16.mxu1 %v8345_v17  ;;  %5390 = vmatprep.subr.bf16.mxu0 %v8345_v17  ;;  %v5013_v22 = vpack.c.bf16 %v1621_v60, %v1620_v46  ;;  %v1633_v46 = vld [vmem:[%s8330_s3 + $0x3f8] sm:$0xff] }
 0x300   :  { %4999 = vmatpush3.bf16.msra.mxu1 %v4998_v2  ;;  %5392 = vmatpush3.bf16.msra.mxu0 %v5391_v7  ;;  %v5430_v2 = vpack.c.bf16 %v3106_v48, %v3105_v39  ;;  %v1622_v7 = vld [vmem:[%s8330_s3 + $0x3a0] sm:$0xff]  ;;  %v1707_v39 = vld [vmem:[%s8330_s3 + $0x410] sm:$0xff]  ;;  %v1708_v48 = vld [vmem:[%s8330_s3 + $0x418] sm:$0xff] }
 0x301   :  { %5000 = vmatprep.subr.bf16.mxu1 %v8345_v17  ;;  %5417 = vmatprep.subr.bf16.mxu0 %v8345_v17  ;;  %v5016_v63 = vpack.c.bf16 %v1623_v5, %v1622_v7  ;;  %v1710_v7 = vld [vmem:[%s8330_s3 + $0x428] sm:$0xff] }
 0x303   :  { %4651 = vmatmul.mubr.f32.vlgmr.msra.gmra.mrb[208].mxu0 %v1008_v15  ;;  %v3102_v15 = vld [vmem:[%s8330_s3 + $0xc28] sm:$0xff] }
 0x304   :  { %5002 = vmatpush3.bf16.msra.mxu1 %v5001_v23  ;;  %5419 = vmatpush3.bf16.msra.mxu0 %v5418_v54  ;;  %v5424_v47 = vpack.c.bf16 %v3102_v15, %v3101_v13  ;;  %v1625_v23 = vld [vmem:[%s8330_s3 + $0x3b8] sm:$0xff]  ;;  %v3109_v54 = vld [vmem:[%s8330_s3 + $0xc60] sm:$0xff]  ;;  %v1628_v15 = vld [vmem:[%s8330_s3 + $0x3d0] sm:$0xff] }
 0x305   :  { %5003 = vmatprep.subr.bf16.mxu1 %v8345_v17  ;;  %5420 = vmatprep.subr.bf16.mxu0 %v8345_v17  ;;  %v5019_v12 = vpack.c.bf16 %v1625_v23, %v1624_v20  ;;  %v5436_v8 = vpack.c.bf16 %v3110_v29, %v3109_v54  ;;  %v1715_v20 = vld [vmem:[%s8330_s3 + $0x450] sm:$0xff]  ;;  %v1716_v23 = vld [vmem:[%s8330_s3 + $0x458] sm:$0xff]  ;;  %v1717_v29 = vld [vmem:[%s8330_s3 + $0x460] sm:$0xff] }
 0x306   :  { %4720 = vmatprep.mubr.msk.f32.mxu0 %vm5494_vm0, %v8344_v55  ;;  %v5049_v54 = vpack.c.bf16 %v1716_v23, %v1715_v20  ;;  %v1879_v23 = vld [vmem:[%s8330_s3 + $0x500] sm:$0xff] }
 0x308   :  { %5005 = vmatpush3.bf16.msra.mxu1 %v5004_v18  ;;  %5422 = vmatpush3.bf16.msra.mxu0 %v5421_v50  ;;  %v1627_v18 = vld [vmem:[%s8330_s3 + $0x3c8] sm:$0xff]  ;;  %v3111_v50 = vld [vmem:[%s8330_s3 + $0xc70] sm:$0xff] }
 0x309   :  { %5006 = vmatprep.subr.bf16.mxu1 %v8345_v17  ;;  %5423 = vmatprep.subr.bf16.mxu0 %v8345_v17  ;;  %v5022_v38 = vpack.c.bf16 %v1627_v18, %v1626_v1  ;;  %v5439_v13 = vpack.c.bf16 %v3112_v56, %v3111_v50  ;;  %v1719_v56 = vld [vmem:[%s8330_s3 + $0x470] sm:$0xff] }
 0x30c   :  { %5008 = vmatpush3.bf16.msra.mxu1 %v5007_v0  ;;  %5425 = vmatpush3.bf16.msra.mxu0 %v5424_v47  ;;  %v1629_v0 = vld [vmem:[%s8330_s3 + $0x3d8] sm:$0xff] }
 0x30d   :  { %5009 = vmatprep.subr.bf16.mxu1 %v8345_v17  ;;  %5426 = vmatprep.subr.bf16.mxu0 %v8345_v17  ;;  %v5025_v47 = vpack.c.bf16 %v1629_v0, %v1628_v15  ;;  %v1792_v15 = vld [vmem:[%s8330_s3 + $0x480] sm:$0xff]  ;;  %v1793_v0 = vld [vmem:[%s8330_s3 + $0x488] sm:$0xff] }
 0x30f   :  { %4091 = vmatmul.mubr.f32.vlgmr.msra.gmra.mrb[12].mxu1 %v8353_v27  ;;  %v8354_v27 = vmax.f32 %v6280_v4, %v6706_v43  ;;  %v1711_v4 = vld [vmem:[%s8330_s3 + $0x430] sm:$0xff]  ;;  %v1712_v43 = vld [vmem:[%s8330_s3 + $0x438] sm:$0xff] }
 0x310   :  { %5011 = vmatpush3.bf16.msra.mxu1 %v5010_v45  ;;  %5428 = vmatpush3.bf16.msra.mxu0 %v5427_v3  ;;  %v5028_v45 = vpack.c.bf16 %v1631_v61, %v1630_v34  ;;  %v1632_v3 = vld [vmem:[%s8330_s3 + $0x3f0] sm:$0xff]  ;;  %v5043_v53 = vpack.c.bf16 %v1712_v43, %v1711_v4  ;;  %v1795_v61 = vld [vmem:[%s8330_s3 + $0x498] sm:$0xff] }
 0x311   :  { %5012 = vmatprep.subr.bf16.mxu1 %v8345_v17  ;;  %5429 = vmatprep.subr.bf16.mxu0 %v8345_v17  ;;  %v5031_v60 = vpack.c.bf16 %v1633_v46, %v1632_v3  ;;  %v1794_v34 = vld [vmem:[%s8330_s3 + $0x490] sm:$0xff]  ;;  %v1797_v3 = vld [vmem:[%s8330_s3 + $0x4a8] sm:$0xff] }
 0x312   :  { %4125 = vmatprep.mubr.msk.f32.mxu1 %vm5494_vm0, %v8344_v55 }
 0x314   :  { %5014 = vmatpush3.bf16.msra.mxu1 %v5013_v22  ;;  %5431 = vmatpush3.bf16.msra.mxu0 %v5430_v2  ;;  %v5037_v22 = vpack.c.bf16 %v1708_v48, %v1707_v39  ;;  %v1709_v2 = vld [vmem:[%s8330_s3 + $0x420] sm:$0xff]  ;;  %v1801_v39 = vld [vmem:[%s8330_s3 + $0x4c8] sm:$0xff] }
 0x315   :  { %5015 = vmatprep.subr.bf16.mxu1 %v8345_v17  ;;  %5432 = vmatprep.subr.bf16.mxu0 %v8345_v17  ;;  %v5040_v5 = vpack.c.bf16 %v1710_v7, %v1709_v2  ;;  %v1804_v7 = vld [vmem:[%s8330_s3 + $0x4e0] sm:$0xff] }
 0x318   :  { %5017 = vmatpush3.bf16.msra.mxu1 %v5016_v63  ;;  %5434 = vmatpush3.bf16.msra.mxu0 %v5433_v51  ;;  %v1714_v63 = vld [vmem:[%s8330_s3 + $0x448] sm:$0xff] }
 0x319   :  { %5018 = vmatprep.subr.bf16.mxu1 %v8345_v17  ;;  %5435 = vmatprep.subr.bf16.mxu0 %v8345_v17  ;;  %v5046_v51 = vpack.c.bf16 %v1714_v63, %v1713_v52  ;;  %v1806_v63 = vld [vmem:[%s8330_s3 + $0x4f0] sm:$0xff] }
 0x31c   :  { %5020 = vmatpush3.bf16.msra.mxu1 %v5019_v12  ;;  %5437 = vmatpush3.bf16.msra.mxu0 %v5436_v8  ;;  %v1718_v12 = vld [vmem:[%s8330_s3 + $0x468] sm:$0xff] }
 0x31d   :  { %5021 = vmatprep.subr.bf16.mxu1 %v8345_v17  ;;  %5438 = vmatprep.subr.bf16.mxu0 %v8345_v17  ;;  %v5052_v50 = vpack.c.bf16 %v1718_v12, %v1717_v29  ;;  %v1881_v12 = vld [vmem:[%s8330_s3 + $0x510] sm:$0xff] }
 0x320   :  { %5023 = vmatpush3.bf16.msra.mxu1 %v5022_v38  ;;  %5440 = vmatpush3.bf16.msra.mxu0 %v5439_v13  ;;  %v1720_v38 = vld [vmem:[%s8330_s3 + $0x478] sm:$0xff] }
 0x321   :  { %5024 = vmatprep.subr.bf16.mxu1 %v8345_v17  ;;  %5465 = vmatprep.subr.bf16.mxu0 %v8345_v17  ;;  %v5055_v13 = vpack.c.bf16 %v1720_v38, %v1719_v56  ;;  %v1884_v56 = vld [vmem:[%s8330_s3 + $0x528] sm:$0xff] }
 0x322   :  { %v1109_v26 = vpop.f32.mrb[0].mxu1 }
 0x323   :  { %4721 = vmatmul.mubr.f32.vlgmr.msra.gmra.mrb[210].mxu0 %v1010_v21  ;;  %v3882_v10 = vpop.f32.mrb[1].mxu1  ;;  %v5034_v21 = vpack.c.bf16 %v1706_v58, %v1705_v49 }
 0x324   :  { %5026 = vmatpush3.bf16.msra.mxu1 %v5025_v47  ;;  %4790 = vmatprep.mubr.msk.f32.mxu0 %vm5494_vm0, %v8344_v55  ;;  %v5058_v47 = vpack.c.bf16 %v1793_v0, %v1792_v15  ;;  %v5061_v10 = vpack.c.bf16 %v1795_v61, %v1794_v34  ;;  %v1888_v34 = vld [vmem:[%s8330_s3 + $0x548] sm:$0xff] }
 0x325   :  { %5027 = vmatprep.subr.bf16.mxu1 %v8345_v17 }
 0x328   :  { %5029 = vmatpush3.bf16.msra.mxu1 %v5028_v45  ;;  %v1796_v45 = vld [vmem:[%s8330_s3 + $0x4a0] sm:$0xff] }
 0x329   :  { %5030 = vmatprep.subr.bf16.mxu1 %v8345_v17  ;;  %v5064_v46 = vpack.c.bf16 %v1797_v3, %v1796_v45  ;;  %v1891_v3 = vld [vmem:[%s8330_s3 + $0x560] sm:$0xff] }
 0x32c   :  { %5032 = vmatpush3.bf16.msra.mxu1 %v5031_v60 }
 0x32d   :  { %5033 = vmatprep.subr.bf16.mxu1 %v8345_v17 }
 0x32f   :  { %4126 = vmatmul.mubr.f32.vlgmr.msra.gmra.mrb[14].mxu1 %v8354_v27  ;;  %v1802_v27 = vld [vmem:[%s8330_s3 + $0x4d0] sm:$0xff] }
 0x330   :  { %5035 = vmatpush3.bf16.msra.mxu1 %v5034_v21  ;;  %4160 = vmatprep.mubr.msk.f32.mxu1 %vm5494_vm0, %v8344_v55  ;;  %v1800_v21 = vld [vmem:[%s8330_s3 + $0x4c0] sm:$0xff] }
 0x331   :  { %5036 = vmatprep.subr.bf16.mxu1 %v8345_v17  ;;  %v5070_v48 = vpack.c.bf16 %v1801_v39, %v1800_v21  ;;  %v1893_v21 = vld [vmem:[%s8330_s3 + $0x570] sm:$0xff]  ;;  %v1894_v39 = vld [vmem:[%s8330_s3 + $0x578] sm:$0xff] }
 0x334   :  { %5038 = vmatpush3.bf16.msra.mxu1 %v5037_v22  ;;  %v1803_v22 = vld [vmem:[%s8330_s3 + $0x4d8] sm:$0xff] }
 0x335   :  { %5039 = vmatprep.subr.bf16.mxu1 %v8345_v17  ;;  %v5073_v2 = vpack.c.bf16 %v1803_v22, %v1802_v27  ;;  %v1966_v27 = vld [vmem:[%s8330_s3 + $0x580] sm:$0xff]  ;;  %v1967_v22 = vld [vmem:[%s8330_s3 + $0x588] sm:$0xff] }
 0x338   :  { %5041 = vmatpush3.bf16.msra.mxu1 %v5040_v5  ;;  %v1805_v5 = vld [vmem:[%s8330_s3 + $0x4e8] sm:$0xff] }
 0x339   :  { %5042 = vmatprep.subr.bf16.mxu1 %v8345_v17  ;;  %v5076_v52 = vpack.c.bf16 %v1805_v5, %v1804_v7  ;;  %v1968_v7 = vld [vmem:[%s8330_s3 + $0x590] sm:$0xff]  ;;  %v1969_v5 = vld [vmem:[%s8330_s3 + $0x598] sm:$0xff] }
 0x33c   :  { %5044 = vmatpush3.bf16.msra.mxu1 %v5043_v53 }
 0x33d   :  { %5045 = vmatprep.subr.bf16.mxu1 %v8345_v17 }
 0x340   :  { %5047 = vmatpush3.bf16.msra.mxu1 %v5046_v51  ;;  %v1807_v51 = vld [vmem:[%s8330_s3 + $0x4f8] sm:$0xff] }
 0x341   :  { %5048 = vmatprep.subr.bf16.mxu1 %v8345_v17  ;;  %v5079_v20 = vpack.c.bf16 %v1807_v51, %v1806_v63 }
 0x342   :  { %v1179_v8 = vpop.f32.mrb[2].mxu1 }
 0x343   :  { %v1180_v1 = vadd.f32 %v1179_v8, %v1109_v26  ;;  %v3917_v18 = vpop.f32.mrb[3].mxu1  ;;  %v8355_v26 = vmax.f32 %v6291_v19, %v6720_v35  ;;  %v1798_v19 = vld [vmem:[%s8330_s3 + $0x4b0] sm:$0xff]  ;;  %v1799_v35 = vld [vmem:[%s8330_s3 + $0x4b8] sm:$0xff] }
 0x344   :  { %5050 = vmatpush3.bf16.msra.mxu1 %v5049_v54  ;;  %v5067_v58 = vpack.c.bf16 %v1799_v35, %v1798_v19  ;;  %v1880_v54 = vld [vmem:[%s8330_s3 + $0x508] sm:$0xff]  ;;  %v1882_v8 = vld [vmem:[%s8330_s3 + $0x518] sm:$0xff] }
 0x345   :  { %5051 = vmatprep.subr.bf16.mxu1 %v8345_v17  ;;  %v5082_v29 = vpack.c.bf16 %v1880_v54, %v1879_v23  ;;  %v5085_v18 = vpack.c.bf16 %v1882_v8, %v1881_v12  ;;  %v1974_v54 = vld [vmem:[%s8330_s3 + $0x5c0] sm:$0xff]  ;;  %v1976_v8 = vld [vmem:[%s8330_s3 + $0x5d0] sm:$0xff] }
 0x348   :  { %5053 = vmatpush3.bf16.msra.mxu1 %v5052_v50  ;;  %v1883_v50 = vld [vmem:[%s8330_s3 + $0x520] sm:$0xff] }
 0x349   :  { %5054 = vmatprep.subr.bf16.mxu1 %v8345_v17  ;;  %v5088_v38 = vpack.c.bf16 %v1884_v56, %v1883_v50  ;;  %v1978_v50 = vld [vmem:[%s8330_s3 + $0x5e0] sm:$0xff]  ;;  %v1979_v56 = vld [vmem:[%s8330_s3 + $0x5e8] sm:$0xff] }
 0x34c   :  { %5056 = vmatpush3.bf16.msra.mxu1 %v5055_v13 }
 0x34d   :  { %5057 = vmatprep.subr.bf16.mxu1 %v8345_v17 }
 0x34f   :  { %4161 = vmatmul.mubr.f32.vlgmr.msra.gmra.mrb[16].mxu1 %v8355_v26  ;;  %v1889_v26 = vld [vmem:[%s8330_s3 + $0x550] sm:$0xff] }
 0x350   :  { %5059 = vmatpush3.bf16.msra.mxu1 %v5058_v47  ;;  %4195 = vmatprep.mubr.msk.f32.mxu1 %vm5494_vm0, %v8344_v55  ;;  %v1887_v47 = vld [vmem:[%s8330_s3 + $0x540] sm:$0xff] }
 0x351   :  { %5060 = vmatprep.subr.bf16.mxu1 %v8345_v17  ;;  %v5094_v61 = vpack.c.bf16 %v1888_v34, %v1887_v47  ;;  %v1981_v47 = vld [vmem:[%s8330_s3 + $0x5f8] sm:$0xff] }
 0x354   :  { %5062 = vmatpush3.bf16.msra.mxu1 %v5061_v10  ;;  %v1890_v10 = vld [vmem:[%s8330_s3 + $0x558] sm:$0xff] }
 0x355   :  { %5063 = vmatprep.subr.bf16.mxu1 %v8345_v17  ;;  %v5097_v45 = vpack.c.bf16 %v1890_v10, %v1889_v26  ;;  %v2054_v26 = vld [vmem:[%s8330_s3 + $0x608] sm:$0xff] }
 0x356   :  { %v7603_v60 = vpop.f32.mrb[200].mxu0 }
 0x357   :  { %v4372_v49 = vpop.f32.mrb[201].mxu0 }
 0x358   :  { %5065 = vmatpush3.bf16.msra.mxu1 %v5064_v46  ;;  %v1892_v46 = vld [vmem:[%s8330_s3 + $0x568] sm:$0xff] }
 0x359   :  { %5066 = vmatprep.subr.bf16.mxu1 %v8345_v17 }
 0x35c   :  { %5068 = vmatpush3.bf16.msra.mxu1 %v5067_v58  ;;  %v5100_v58 = vpack.c.bf16 %v1892_v46, %v1891_v3  ;;  %v2056_v3 = vld [vmem:[%s8330_s3 + $0x618] sm:$0xff]  ;;  %v8358_v46 = vmax.f32 %v6324_v57, %v6772_v40  ;;  %v2059_v57 = vld [vmem:[%s8330_s3 + $0x630] sm:$0xff] }
 0x35d   :  { %5069 = vmatprep.subr.bf16.mxu1 %v8345_v17  ;;  %v2060_v40 = vld [vmem:[%s8330_s3 + $0x638] sm:$0xff] }
 0x360   :  { %5071 = vmatpush3.bf16.msra.mxu1 %v5070_v48  ;;  %v5103_v48 = vpack.c.bf16 %v1894_v39, %v1893_v21 }
 0x361   :  { %5072 = vmatprep.subr.bf16.mxu1 %v8345_v17 }
 0x362   :  { %v1265_v4 = vpop.f32.mrb[4].mxu1 }
 0x363   :  { %v1269_v43 = vadd.f32 %v1265_v4, %v1180_v1  ;;  %v3952_v53 = vpop.f32.mrb[5].mxu1  ;;  %v8356_v1 = vmax.f32 %v6302_v30, %v6739_v44  ;;  %v1885_v30 = vld [vmem:[%s8330_s3 + $0x530] sm:$0xff]  ;;  %v1886_v44 = vld [vmem:[%s8330_s3 + $0x538] sm:$0xff]  ;;  %v8357_v4 = vmax.f32 %v6313_v42, %v6753_v14 }
 0x364   :  { %5074 = vmatpush3.bf16.msra.mxu1 %v5073_v2  ;;  %v5091_v0 = vpack.c.bf16 %v1886_v44, %v1885_v30  ;;  %v5106_v2 = vpack.c.bf16 %v1967_v22, %v1966_v27  ;;  %v1970_v53 = vld [vmem:[%s8330_s3 + $0x5a0] sm:$0xff]  ;;  %v1972_v42 = vld [vmem:[%s8330_s3 + $0x5b0] sm:$0xff]  ;;  %v1973_v14 = vld [vmem:[%s8330_s3 + $0x5b8] sm:$0xff] }
 0x365   :  { %5075 = vmatprep.subr.bf16.mxu1 %v8345_v17  ;;  %v5115_v23 = vpack.c.bf16 %v1973_v14, %v1972_v42  ;;  %v2061_v27 = vld [vmem:[%s8330_s3 + $0x640] sm:$0xff]  ;;  %v2062_v22 = vld [vmem:[%s8330_s3 + $0x648] sm:$0xff] }
 0x368   :  { %5077 = vmatpush3.bf16.msra.mxu1 %v5076_v52  ;;  %v1971_v52 = vld [vmem:[%s8330_s3 + $0x5a8] sm:$0xff] }
 0x369   :  { %5078 = vmatprep.subr.bf16.mxu1 %v8345_v17  ;;  %v5112_v63 = vpack.c.bf16 %v1971_v52, %v1970_v53  ;;  %v2066_v53 = vld [vmem:[%s8330_s3 + $0x668] sm:$0xff] }
 0x36c   :  { %5080 = vmatpush3.bf16.msra.mxu1 %v5079_v20 }
 0x36d   :  { %5081 = vmatprep.subr.bf16.mxu1 %v8345_v17 }
 0x36f   :  { %4196 = vmatmul.mubr.f32.vlgmr.msra.gmra.mrb[18].mxu1 %v8356_v1  ;;  %v1977_v1 = vld [vmem:[%s8330_s3 + $0x5d8] sm:$0xff] }
 0x370   :  { %5083 = vmatpush3.bf16.msra.mxu1 %v5082_v29  ;;  %4230 = vmatprep.mubr.msk.f32.mxu1 %vm5494_vm0, %v8344_v55  ;;  %v1975_v29 = vld [vmem:[%s8330_s3 + $0x5c8] sm:$0xff] }
 0x371   :  { %5084 = vmatprep.subr.bf16.mxu1 %v8345_v17  ;;  %v5118_v12 = vpack.c.bf16 %v1975_v29, %v1974_v54  ;;  %v2140_v29 = vld [vmem:[%s8330_s3 + $0x680] sm:$0xff] }
 0x374   :  { %5086 = vmatpush3.bf16.msra.mxu1 %v5085_v18  ;;  %v5121_v18 = vpack.c.bf16 %v1977_v1, %v1976_v8  ;;  %v2142_v1 = vld [vmem:[%s8330_s3 + $0x690] sm:$0xff] }
 0x375   :  { %5087 = vmatprep.subr.bf16.mxu1 %v8345_v17 }
 0x376   :  { %v7666_v13 = vpop.f32.mrb[202].mxu0 }
 0x377   :  { %v4442_v15 = vpop.f32.mrb[203].mxu0 }
 0x378   :  { %5089 = vmatpush3.bf16.msra.mxu1 %v5088_v38  ;;  %v5124_v15 = vpack.c.bf16 %v1979_v56, %v1978_v50  ;;  %v8359_v50 = vmax.f32 %v6341_v11, %v6786_v33  ;;  %v2146_v11 = vld [vmem:[%s8330_s3 + $0x6b0] sm:$0xff]  ;;  %v2147_v33 = vld [vmem:[%s8330_s3 + $0x6b8] sm:$0xff] }
 0x379   :  { %5090 = vmatprep.subr.bf16.mxu1 %v8345_v17 }
 0x37c   :  { %5092 = vmatpush3.bf16.msra.mxu1 %v5091_v0  ;;  %v1980_v0 = vld [vmem:[%s8330_s3 + $0x5f0] sm:$0xff] }
 0x37d   :  { %5093 = vmatprep.subr.bf16.mxu1 %v8345_v17  ;;  %v5127_v34 = vpack.c.bf16 %v1981_v47, %v1980_v0  ;;  %v5163_v47 = vpack.c.bf16 %v2147_v33, %v2146_v11 }
 0x380   :  { %5095 = vmatpush3.bf16.msra.mxu1 %v5094_v61  ;;  %v2053_v61 = vld [vmem:[%s8330_s3 + $0x600] sm:$0xff] }
 0x381   :  { %5096 = vmatprep.subr.bf16.mxu1 %v8345_v17  ;;  %v5130_v10 = vpack.c.bf16 %v2054_v26, %v2053_v61  ;;  %v2149_v61 = vld [vmem:[%s8330_s3 + $0x6c8] sm:$0xff] }
 0x382   :  { %v1352_v19 = vpop.f32.mrb[6].mxu1 }
 0x383   :  { %v1356_v35 = vadd.f32 %v1352_v19, %v1269_v43  ;;  %v3987_v49 = vpop.f32.mrb[7].mxu1  ;;  %v5109_v43 = vpack.c.bf16 %v1969_v5, %v1968_v7  ;;  %v2063_v7 = vld [vmem:[%s8330_s3 + $0x650] sm:$0xff]  ;;  %v2064_v5 = vld [vmem:[%s8330_s3 + $0x658] sm:$0xff] }
 0x384   :  { %5098 = vmatpush3.bf16.msra.mxu1 %v5097_v45  ;;  %v2055_v45 = vld [vmem:[%s8330_s3 + $0x610] sm:$0xff]  ;;  %v2058_v49 = vld [vmem:[%s8330_s3 + $0x628] sm:$0xff] }
 0x385   :  { %5099 = vmatprep.subr.bf16.mxu1 %v8345_v17  ;;  %v5133_v19 = vpack.c.bf16 %v2056_v3, %v2055_v45  ;;  %v2151_v45 = vld [vmem:[%s8330_s3 + $0x6d8] sm:$0xff] }
 0x388   :  { %5101 = vmatpush3.bf16.msra.mxu1 %v5100_v58 }
 0x389   :  { %5102 = vmatprep.subr.bf16.mxu1 %v8345_v17 }
 0x38c   :  { %5104 = vmatpush3.bf16.msra.mxu1 %v5103_v48  ;;  %v5139_v48 = vpack.c.bf16 %v2060_v40, %v2059_v57  ;;  %v2154_v40 = vld [vmem:[%s8330_s3 + $0x6f0] sm:$0xff] }
 0x38d   :  { %5105 = vmatprep.subr.bf16.mxu1 %v8345_v17 }
 0x38f   :  { %4231 = vmatmul.mubr.f32.vlgmr.msra.gmra.mrb[20].mxu1 %v8357_v4  ;;  %v5145_v4 = vpack.c.bf16 %v2064_v5, %v2063_v7  ;;  %v2316_v7 = vld [vmem:[%s8330_s3 + $0x790] sm:$0xff]  ;;  %v2317_v5 = vld [vmem:[%s8330_s3 + $0x798] sm:$0xff] }
 0x390   :  { %5107 = vmatpush3.bf16.msra.mxu1 %v5106_v2  ;;  %4265 = vmatprep.mubr.msk.f32.mxu1 %vm5494_vm0, %v8344_v55  ;;  %v5142_v2 = vpack.c.bf16 %v2062_v22, %v2061_v27  ;;  %v2314_v27 = vld [vmem:[%s8330_s3 + $0x780] sm:$0xff]  ;;  %v2315_v22 = vld [vmem:[%s8330_s3 + $0x788] sm:$0xff] }
 0x391   :  { %5108 = vmatprep.subr.bf16.mxu1 %v8345_v17 }
 0x394   :  { %5110 = vmatpush3.bf16.msra.mxu1 %v5109_v43  ;;  %v2065_v43 = vld [vmem:[%s8330_s3 + $0x660] sm:$0xff] }
 0x395   :  { %5111 = vmatprep.subr.bf16.mxu1 %v8345_v17  ;;  %v5148_v14 = vpack.c.bf16 %v2066_v53, %v2065_v43  ;;  %v5205_v53 = vpack.c.bf16 %v2317_v5, %v2316_v7 }
 0x396   :  { %v7729_v51 = vpop.f32.mrb[204].mxu0 }
 0x397   :  { %v4512_v20 = vpop.f32.mrb[205].mxu0 }
 0x398   :  { %5113 = vmatpush3.bf16.msra.mxu1 %v5112_v63  ;;  %v2067_v20 = vld [vmem:[%s8330_s3 + $0x670] sm:$0xff] }
 0x399   :  { %5114 = vmatprep.subr.bf16.mxu1 %v8345_v17 }
 0x39c   :  { %5116 = vmatpush3.bf16.msra.mxu1 %v5115_v23  ;;  %v2068_v23 = vld [vmem:[%s8330_s3 + $0x678] sm:$0xff] }
 0x39d   :  { %5117 = vmatprep.subr.bf16.mxu1 %v8345_v17  ;;  %v5151_v54 = vpack.c.bf16 %v2068_v23, %v2067_v20 }
 0x3a0   :  { %5119 = vmatpush3.bf16.msra.mxu1 %v5118_v12  ;;  %v2141_v12 = vld [vmem:[%s8330_s3 + $0x688] sm:$0xff] }
 0x3a1   :  { %5120 = vmatprep.subr.bf16.mxu1 %v8345_v17  ;;  %v5154_v8 = vpack.c.bf16 %v2141_v12, %v2140_v29  ;;  %v2322_v29 = vld [vmem:[%s8330_s3 + $0x7c0] sm:$0xff]  ;;  %v2323_v12 = vld [vmem:[%s8330_s3 + $0x7c8] sm:$0xff] }
 0x3a2   :  { %v1439_v38 = vpop.f32.mrb[8].mxu1 }
 0x3a3   :  { %v1443_v30 = vadd.f32 %v1439_v38, %v1356_v35  ;;  %v4022_v44 = vpop.f32.mrb[9].mxu1  ;;  %v2057_v35 = vld [vmem:[%s8330_s3 + $0x620] sm:$0xff] }
 0x3a4   :  { %5122 = vmatpush3.bf16.msra.mxu1 %v5121_v18  ;;  %v5136_v58 = vpack.c.bf16 %v2058_v49, %v2057_v35  ;;  %v2143_v18 = vld [vmem:[%s8330_s3 + $0x698] sm:$0xff]  ;;  %v2144_v38 = vld [vmem:[%s8330_s3 + $0x6a0] sm:$0xff] }
 0x3a5   :  { %5123 = vmatprep.subr.bf16.mxu1 %v8345_v17  ;;  %v5157_v56 = vpack.c.bf16 %v2143_v18, %v2142_v1  ;;  %v2324_v1 = vld [vmem:[%s8330_s3 + $0x7d0] sm:$0xff]  ;;  %v2325_v18 = vld [vmem:[%s8330_s3 + $0x7d8] sm:$0xff] }
 0x3a8   :  { %5125 = vmatpush3.bf16.msra.mxu1 %v5124_v15 }
 0x3a9   :  { %5126 = vmatprep.subr.bf16.mxu1 %v8345_v17 }
 0x3ac   :  { %5128 = vmatpush3.bf16.msra.mxu1 %v5127_v34  ;;  %v2148_v34 = vld [vmem:[%s8330_s3 + $0x6c0] sm:$0xff] }
 0x3ad   :  { %5129 = vmatprep.subr.bf16.mxu1 %v8345_v17  ;;  %v5166_v26 = vpack.c.bf16 %v2149_v61, %v2148_v34  ;;  %v2488_v61 = vld [vmem:[%s8330_s3 + $0x880] sm:$0xff] }
 0x3af   :  { %4266 = vmatmul.mubr.f32.vlgmr.msra.gmra.mrb[22].mxu1 %v8358_v46  ;;  %v2152_v46 = vld [vmem:[%s8330_s3 + $0x6e0] sm:$0xff] }
 0x3b0   :  { %5131 = vmatpush3.bf16.msra.mxu1 %v5130_v10  ;;  %4300 = vmatprep.mubr.msk.f32.mxu1 %vm5494_vm0, %v8344_v55  ;;  %v2150_v10 = vld [vmem:[%s8330_s3 + $0x6d0] sm:$0xff] }
 0x3b1   :  { %5132 = vmatprep.subr.bf16.mxu1 %v8345_v17  ;;  %v5169_v3 = vpack.c.bf16 %v2151_v45, %v2150_v10  ;;  %v2490_v45 = vld [vmem:[%s8330_s3 + $0x890] sm:$0xff] }
 0x3b4   :  { %5134 = vmatpush3.bf16.msra.mxu1 %v5133_v19  ;;  %v2153_v19 = vld [vmem:[%s8330_s3 + $0x6e8] sm:$0xff] }
 0x3b5   :  { %5135 = vmatprep.subr.bf16.mxu1 %v8345_v17  ;;  %v5172_v57 = vpack.c.bf16 %v2153_v19, %v2152_v46  ;;  %v2492_v19 = vld [vmem:[%s8330_s3 + $0x8a0] sm:$0xff] }
 0x3b6   :  { %v7792_v21 = vpop.f32.mrb[206].mxu0 }
 0x3b7   :  { %v4582_v39 = vpop.f32.mrb[207].mxu0 }
 0x3b8   :  { %5137 = vmatpush3.bf16.msra.mxu1 %v5136_v58  ;;  %v2155_v39 = vld [vmem:[%s8330_s3 + $0x6f8] sm:$0xff] }
 0x3b9   :  { %5138 = vmatprep.subr.bf16.mxu1 %v8345_v17 }
 0x3bc   :  { %5140 = vmatpush3.bf16.msra.mxu1 %v5139_v48  ;;  %v5175_v48 = vpack.c.bf16 %v2155_v39, %v2154_v40  ;;  %v2498_v39 = vld [vmem:[%s8330_s3 + $0x8d0] sm:$0xff] }
 0x3bd   :  { %5141 = vmatprep.subr.bf16.mxu1 %v8345_v17 }
 0x3c0   :  { %5143 = vmatpush3.bf16.msra.mxu1 %v5142_v2  ;;  %v5202_v2 = vpack.c.bf16 %v2315_v22, %v2314_v27  ;;  %v2500_v22 = vld [vmem:[%s8330_s3 + $0x8e0] sm:$0xff] }
 0x3c1   :  { %5144 = vmatprep.subr.bf16.mxu1 %v8345_v17 }
 0x3c2   :  { %v1526_v52 = vpop.f32.mrb[10].mxu1 }
 0x3c3   :  { %v1530_v63 = vadd.f32 %v1526_v52, %v1443_v30  ;;  %v4057_v42 = vpop.f32.mrb[11].mxu1  ;;  %v2145_v30 = vld [vmem:[%s8330_s3 + $0x6a8] sm:$0xff]  ;;  %v2318_v52 = vld [vmem:[%s8330_s3 + $0x7a0] sm:$0xff] }
 0x3c4   :  { %5146 = vmatpush3.bf16.msra.mxu1 %v5145_v4  ;;  %v5160_v44 = vpack.c.bf16 %v2145_v30, %v2144_v38  ;;  %v8360_v4 = vld [vmem:[#allocation3_spill] sm:$0xff] }
 0x3c5   :  { %5147 = vmatprep.subr.bf16.mxu1 %v8345_v17  ;;  %v8361_v43 = vmax.f32 %v6359_v32, %v8360_v4  ;;  %v2320_v32 = vld [vmem:[%s8330_s3 + $0x7b0] sm:$0xff]  ;;  %v2327_v38 = vld [vmem:[%s8330_s3 + $0x7e8] sm:$0xff] }
 0x3c8   :  { %5149 = vmatpush3.bf16.msra.mxu1 %v5148_v14  ;;  %v2321_v14 = vld [vmem:[%s8330_s3 + $0x7b8] sm:$0xff] }
 0x3c9   :  { %5150 = vmatprep.subr.bf16.mxu1 %v8345_v17 }
 0x3cc   :  { %5152 = vmatpush3.bf16.msra.mxu1 %v5151_v54  ;;  %v5211_v54 = vpack.c.bf16 %v2321_v14, %v2320_v32  ;;  %v2663_v32 = vld [vmem:[%s8330_s3 + $0x988] sm:$0xff] }
 0x3cd   :  { %5153 = vmatprep.subr.bf16.mxu1 %v8345_v17 }
 0x3cf   :  { %4301 = vmatmul.mubr.f32.vlgmr.msra.gmra.mrb[24].mxu1 %v8359_v50  ;;  %v5217_v50 = vpack.c.bf16 %v2325_v18, %v2324_v1  ;;  %v2667_v1 = vld [vmem:[%s8330_s3 + $0x9a8] sm:$0xff] }
 0x3d0   :  { %5155 = vmatpush3.bf16.msra.mxu1 %v5154_v8  ;;  %4335 = vmatprep.mubr.msk.f32.mxu1 %vm5494_vm0, %v8344_v55  ;;  %v5214_v8 = vpack.c.bf16 %v2323_v12, %v2322_v29  ;;  %v8362_v29 = vmax.f32 %v6431_v41, %v6881_v37  ;;  %v2668_v41 = vld [vmem:[%s8330_s3 + $0x9b0] sm:$0xff]  ;;  %v2669_v37 = vld [vmem:[%s8330_s3 + $0x9b8] sm:$0xff] }
 0x3d1   :  { %5156 = vmatprep.subr.bf16.mxu1 %v8345_v17 }
 0x3d4   :  { %5158 = vmatpush3.bf16.msra.mxu1 %v5157_v56  ;;  %v2326_v56 = vld [vmem:[%s8330_s3 + $0x7e0] sm:$0xff] }
 0x3d5   :  { %5159 = vmatprep.subr.bf16.mxu1 %v8345_v17  ;;  %v5220_v33 = vpack.c.bf16 %v2327_v38, %v2326_v56  ;;  %v2670_v56 = vld [vmem:[%s8330_s3 + $0x9c0] sm:$0xff]  ;;  %v2671_v38 = vld [vmem:[%s8330_s3 + $0x9c8] sm:$0xff] }
 0x3d6   :  { %v7855_v15 = vpop.f32.mrb[208].mxu0 }
 0x3d7   :  { %v4652_v0 = vpop.f32.mrb[209].mxu0 }
 0x3d8   :  { %5161 = vmatpush3.bf16.msra.mxu1 %v5160_v44  ;;  %v2328_v0 = vld [vmem:[%s8330_s3 + $0x7f0] sm:$0xff] }
 0x3d9   :  { %5162 = vmatprep.subr.bf16.mxu1 %v8345_v17 }
 0x3dc   :  { %5164 = vmatpush3.bf16.msra.mxu1 %v5163_v47  ;;  %v2329_v47 = vld [vmem:[%s8330_s3 + $0x7f8] sm:$0xff] }
 0x3dd   :  { %5165 = vmatprep.subr.bf16.mxu1 %v8345_v17  ;;  %v5223_v34 = vpack.c.bf16 %v2329_v47, %v2328_v0  ;;  %v2674_v0 = vld [vmem:[%s8330_s3 + $0x9e0] sm:$0xff]  ;;  %v2675_v47 = vld [vmem:[%s8330_s3 + $0x9e8] sm:$0xff] }
 0x3e0   :  { %5167 = vmatpush3.bf16.msra.mxu1 %v5166_v26  ;;  %v2489_v26 = vld [vmem:[%s8330_s3 + $0x888] sm:$0xff] }
 0x3e1   :  { %5168 = vmatprep.subr.bf16.mxu1 %v8345_v17  ;;  %v5250_v10 = vpack.c.bf16 %v2489_v26, %v2488_v61 }
 0x3e2   :  { %v1613_v35 = vpop.f32.mrb[12].mxu1 }
 0x3e3   :  { %v1617_v49 = vadd.f32 %v1613_v35, %v1530_v63  ;;  %v4092_v58 = vpop.f32.mrb[13].mxu1  ;;  %v2319_v63 = vld [vmem:[%s8330_s3 + $0x7a8] sm:$0xff] }
 0x3e4   :  { %5170 = vmatpush3.bf16.msra.mxu1 %v5169_v3  ;;  %v5208_v42 = vpack.c.bf16 %v2319_v63, %v2318_v52  ;;  %v2491_v3 = vld [vmem:[%s8330_s3 + $0x898] sm:$0xff]  ;;  %v2493_v35 = vld [vmem:[%s8330_s3 + $0x8a8] sm:$0xff]  ;;  %v2496_v58 = vld [vmem:[%s8330_s3 + $0x8c0] sm:$0xff] }
 0x3e5   :  { %5171 = vmatprep.subr.bf16.mxu1 %v8345_v17  ;;  %v5253_v46 = vpack.c.bf16 %v2491_v3, %v2490_v45  ;;  %v2503_v52 = vld [vmem:[%s8330_s3 + $0x8f8] sm:$0xff]  ;;  %v2676_v45 = vld [vmem:[%s8330_s3 + $0x9f0] sm:$0xff] }
 0x3e6   :  { %v2677_v3 = vld [vmem:[%s8330_s3 + $0x9f8] sm:$0xff] }
 0x3e8   :  { %5173 = vmatpush3.bf16.msra.mxu1 %v5172_v57  ;;  %v2497_v57 = vld [vmem:[%s8330_s3 + $0x8c8] sm:$0xff] }
 0x3e9   :  { %5174 = vmatprep.subr.bf16.mxu1 %v8345_v17  ;;  %v5262_v40 = vpack.c.bf16 %v2497_v57, %v2496_v58  ;;  %v2840_v57 = vld [vmem:[%s8330_s3 + $0xaa0] sm:$0xff] }
 0x3ec   :  { %5176 = vmatpush3.bf16.msra.mxu1 %v5175_v48  ;;  %v2499_v48 = vld [vmem:[%s8330_s3 + $0x8d8] sm:$0xff] }
 0x3ed   :  { %5201 = vmatprep.subr.bf16.mxu1 %v8345_v17  ;;  %v5265_v27 = vpack.c.bf16 %v2499_v48, %v2498_v39 }
 0x3ef   :  { %4336 = vmatmul.mubr.f32.vlgmr.msra.gmra.mrb[26].mxu1 %v8361_v43 }
 0x3f0   :  { %5203 = vmatpush3.bf16.msra.mxu1 %v5202_v2  ;;  %4405 = vmatprep.mubr.msk.f32.mxu1 %vm5494_vm0, %v8344_v55  ;;  %v2501_v2 = vld [vmem:[%s8330_s3 + $0x8e8] sm:$0xff] }
 0x3f1   :  { %5204 = vmatprep.subr.bf16.mxu1 %v8345_v17  ;;  %v5268_v43 = vpack.c.bf16 %v2501_v2, %v2500_v22  ;;  %v2845_v22 = vld [vmem:[%s8330_s3 + $0xac8] sm:$0xff] }
 0x3f4   :  { %5206 = vmatpush3.bf16.msra.mxu1 %v5205_v53  ;;  %v2502_v53 = vld [vmem:[%s8330_s3 + $0x8f0] sm:$0xff] }
 0x3f5   :  { %5207 = vmatprep.subr.bf16.mxu1 %v8345_v17  ;;  %v5271_v63 = vpack.c.bf16 %v2503_v52, %v2502_v53  ;;  %v2849_v53 = vld [vmem:[%s8330_s3 + $0xae8] sm:$0xff] }
 0x3f6   :  { %v7918_v20 = vpop.f32.mrb[210].mxu0 }
 0x3f7   :  { %v4722_v23 = vpop.f32.mrb[211].mxu0 }
 0x3f8   :  { %5209 = vmatpush3.bf16.msra.mxu1 %v5208_v42  ;;  %v2662_v42 = vld [vmem:[%s8330_s3 + $0x980] sm:$0xff]  ;;  %v2664_v23 = vld [vmem:[%s8330_s3 + $0x990] sm:$0xff] }
 0x3f9   :  { %5210 = vmatprep.subr.bf16.mxu1 %v8345_v17  ;;  %v5298_v14 = vpack.c.bf16 %v2663_v32, %v2662_v42 }
 0x3fc   :  { %5212 = vmatpush3.bf16.msra.mxu1 %v5211_v54  ;;  %v2665_v54 = vld [vmem:[%s8330_s3 + $0x998] sm:$0xff] }
 0x3fd   :  { %5213 = vmatprep.subr.bf16.mxu1 %v8345_v17  ;;  %v5301_v12 = vpack.c.bf16 %v2665_v54, %v2664_v23  ;;  %v2851_v23 = vld [vmem:[%s8330_s3 + $0xaf8] sm:$0xff] }
 0x400   :  { %5215 = vmatpush3.bf16.msra.mxu1 %v5214_v8  ;;  %v2666_v8 = vld [vmem:[%s8330_s3 + $0x9a0] sm:$0xff] }
 0x401   :  { %5216 = vmatprep.subr.bf16.mxu1 %v8345_v17  ;;  %v5304_v18 = vpack.c.bf16 %v2667_v1, %v2666_v8  ;;  %v3012_v1 = vld [vmem:[%s8330_s3 + $0xb90] sm:$0xff] }
 0x402   :  { %v1700_v30 = vpop.f32.mrb[14].mxu1 }
 0x403   :  { %v1704_v44 = vadd.f32 %v1700_v30, %v1617_v49  ;;  %v4127_v11 = vpop.f32.mrb[15].mxu1  ;;  %v5256_v49 = vpack.c.bf16 %v2493_v35, %v2492_v19  ;;  %v5310_v30 = vpack.c.bf16 %v2671_v38, %v2670_v56  ;;  %v2836_v19 = vld [vmem:[%s8330_s3 + $0xa80] sm:$0xff]  ;;  %v2837_v35 = vld [vmem:[%s8330_s3 + $0xa88] sm:$0xff] }
 0x404   :  { %5218 = vmatpush3.bf16.msra.mxu1 %v5217_v50  ;;  %v5307_v50 = vpack.c.bf16 %v2669_v37, %v2668_v41  ;;  %v2673_v11 = vld [vmem:[%s8330_s3 + $0x9d8] sm:$0xff]  ;;  %v8364_v41 = vmax.f32 %v6485_v9, %v6970_v28  ;;  %v3015_v56 = vld [vmem:[%s8330_s3 + $0xba8] sm:$0xff]  ;;  %v3016_v9 = vld [vmem:[%s8330_s3 + $0xbb0] sm:$0xff] }
 0x405   :  { %5219 = vmatprep.subr.bf16.mxu1 %v8345_v17  ;;  %v3017_v28 = vld [vmem:[%s8330_s3 + $0xbb8] sm:$0xff] }
 0x408   :  { %5221 = vmatpush3.bf16.msra.mxu1 %v5220_v33 }
 0x409   :  { %5222 = vmatprep.subr.bf16.mxu1 %v8345_v17 }
 0x40c   :  { %5224 = vmatpush3.bf16.msra.mxu1 %v5223_v34 }
 0x40d   :  { %5249 = vmatprep.subr.bf16.mxu1 %v8345_v17 }
 0x40f   :  { %4406 = vmatmul.mubr.f32.vlgmr.msra.gmra.mrb[28].mxu1 %v1001_v31  ;;  %v5259_v31 = vpack.c.bf16 %v2495_v25, %v2494_v6  ;;  %v2838_v6 = vld [vmem:[%s8330_s3 + $0xa90] sm:$0xff]  ;;  %v2839_v25 = vld [vmem:[%s8330_s3 + $0xa98] sm:$0xff] }
 0x410   :  { %5251 = vmatpush3.bf16.msra.mxu1 %v5250_v10  ;;  %4475 = vmatprep.mubr.msk.f32.mxu1 %vm5494_vm0, %v8344_v55  ;;  %v5316_v10 = vpack.c.bf16 %v2675_v47, %v2674_v0  ;;  %v5349_v58 = vpack.c.bf16 %v2839_v25, %v2838_v6  ;;  %v3020_v0 = vld [vmem:[%s8330_s3 + $0xbd0] sm:$0xff]  ;;  %v3021_v47 = vld [vmem:[%s8330_s3 + $0xbd8] sm:$0xff] }
 0x411   :  { %5252 = vmatprep.subr.bf16.mxu1 %v8345_v17 }
 0x414   :  { %5254 = vmatpush3.bf16.msra.mxu1 %v5253_v46  ;;  %v5319_v46 = vpack.c.bf16 %v2677_v3, %v2676_v45 }
 0x415   :  { %5255 = vmatprep.subr.bf16.mxu1 %v8345_v17 }
 0x418   :  { %5257 = vmatpush3.bf16.msra.mxu1 %v5256_v49  ;;  %v5346_v49 = vpack.c.bf16 %v2837_v35, %v2836_v19  ;;  %v3024_v19 = vld [vmem:[%s8330_s3 + $0xbf0] sm:$0xff]  ;;  %v3025_v35 = vld [vmem:[%s8330_s3 + $0xbf8] sm:$0xff] }
 0x419   :  { %5258 = vmatprep.subr.bf16.mxu1 %v8345_v17 }
 0x41c   :  { %5260 = vmatpush3.bf16.msra.mxu1 %v5259_v31  ;;  %v8363_v31 = vmax.f32 %v6467_v16, %v6928_v24  ;;  %v2842_v16 = vld [vmem:[%s8330_s3 + $0xab0] sm:$0xff]  ;;  %v2843_v24 = vld [vmem:[%s8330_s3 + $0xab8] sm:$0xff] }
 0x41d   :  { %5261 = vmatprep.subr.bf16.mxu1 %v8345_v17  ;;  %v5355_v48 = vpack.c.bf16 %v2843_v24, %v2842_v16  ;;  %v3194_v16 = vld [vmem:[%s8331_s5 + $0x8] sm:$0xff] }
 0x420   :  { %5263 = vmatpush3.bf16.msra.mxu1 %v5262_v40  ;;  %v2841_v40 = vld [vmem:[%s8330_s3 + $0xaa8] sm:$0xff] }
 0x421   :  { %5264 = vmatprep.subr.bf16.mxu1 %v8345_v17  ;;  %v5352_v39 = vpack.c.bf16 %v2841_v40, %v2840_v57 }
 0x422   :  { %v1787_v7 = vpop.f32.mrb[16].mxu1 }
 0x423   :  { %v1791_v5 = vadd.f32 %v1787_v7, %v1704_v44  ;;  %v4162_v4 = vpop.f32.mrb[17].mxu1  ;;  %v2672_v44 = vld [vmem:[%s8330_s3 + $0x9d0] sm:$0xff] }
 0x424   :  { %5266 = vmatpush3.bf16.msra.mxu1 %v5265_v27  ;;  %v5313_v33 = vpack.c.bf16 %v2673_v11, %v2672_v44  ;;  %v2844_v27 = vld [vmem:[%s8330_s3 + $0xac0] sm:$0xff]  ;;  %v2846_v7 = vld [vmem:[%s8330_s3 + $0xad0] sm:$0xff]  ;;  %v3019_v11 = vld [vmem:[%s8330_s3 + $0xbc8] sm:$0xff] }
 0x425   :  { %5267 = vmatprep.subr.bf16.mxu1 %v8345_v17  ;;  %v5358_v2 = vpack.c.bf16 %v2845_v22, %v2844_v27  ;;  %v3018_v44 = vld [vmem:[%s8330_s3 + $0xbc0] sm:$0xff]  ;;  %v3198_v27 = vld [vmem:[%s8331_s5 + $0x28] sm:$0xff] }
 0x428   :  { %5269 = vmatpush3.bf16.msra.mxu1 %v5268_v43  ;;  %v2848_v43 = vld [vmem:[%s8330_s3 + $0xae0] sm:$0xff] }
 0x429   :  { %5270 = vmatprep.subr.bf16.mxu1 %v8345_v17  ;;  %v5364_v32 = vpack.c.bf16 %v2849_v53, %v2848_v43  ;;  %v3203_v53 = vld [vmem:[%s8331_s5 + $0x50] sm:$0xff] }
 0x42c   :  { %5272 = vmatpush3.bf16.msra.mxu1 %v5271_v63 }
 0x42d   :  { %5297 = vmatprep.subr.bf16.mxu1 %v8345_v17 }
 0x42f   :  { %4476 = vmatmul.mubr.f32.vlgmr.msra.gmra.mrb[30].mxu1 %v8362_v29  ;;  %v3010_v29 = vld [vmem:[%s8330_s3 + $0xb80] sm:$0xff] }
 0x430   :  { %5299 = vmatpush3.bf16.msra.mxu1 %v5298_v14  ;;  %4545 = vmatprep.mubr.msk.f32.mxu1 %vm5494_vm0, %v8344_v55  ;;  %v2850_v14 = vld [vmem:[%s8330_s3 + $0xaf0] sm:$0xff] }
 0x431   :  { %5300 = vmatprep.subr.bf16.mxu1 %v8345_v17  ;;  %v5367_v54 = vpack.c.bf16 %v2851_v23, %v2850_v14 }
 0x434   :  { %5302 = vmatpush3.bf16.msra.mxu1 %v5301_v12  ;;  %v3011_v12 = vld [vmem:[%s8330_s3 + $0xb88] sm:$0xff] }
 0x435   :  { %5303 = vmatprep.subr.bf16.mxu1 %v8345_v17  ;;  %v5394_v8 = vpack.c.bf16 %v3011_v12, %v3010_v29 }
 0x438   :  { %5305 = vmatpush3.bf16.msra.mxu1 %v5304_v18  ;;  %v3013_v18 = vld [vmem:[%s8330_s3 + $0xb98] sm:$0xff] }
 0x439   :  { %5306 = vmatprep.subr.bf16.mxu1 %v8345_v17  ;;  %v5397_v37 = vpack.c.bf16 %v3013_v18, %v3012_v1  ;;  %v3208_v1 = vld [vmem:[%s8331_s5 + $0x78] sm:$0xff] }
 0x43c   :  { %5308 = vmatpush3.bf16.msra.mxu1 %v5307_v50  ;;  %v3014_v50 = vld [vmem:[%s8330_s3 + $0xba0] sm:$0xff] }
 0x43d   :  { %5309 = vmatprep.subr.bf16.mxu1 %v8345_v17  ;;  %v5400_v38 = vpack.c.bf16 %v3015_v56, %v3014_v50  ;;  %v3290_v56 = vld [vmem:[%s8332_s7 + $0x18] sm:$0xff] }
 0x440   :  { %5311 = vmatpush3.bf16.msra.mxu1 %v5310_v30  ;;  %v5403_v30 = vpack.c.bf16 %v3017_v28, %v3016_v9  ;;  %v3291_v9 = vld [vmem:[%s8332_s7 + $0x20] sm:$0xff]  ;;  %v3292_v28 = vld [vmem:[%s8332_s7 + $0x28] sm:$0xff] }
 0x441   :  { %5312 = vmatprep.subr.bf16.mxu1 %v8345_v17 }
 0x442   :  { %v1874_v34 = vpop.f32.mrb[18].mxu1 }
 0x443   :  { %v1878_v61 = vadd.f32 %v1874_v34, %v1791_v5  ;;  %v4197_v26 = vpop.f32.mrb[19].mxu1  ;;  %v2847_v5 = vld [vmem:[%s8330_s3 + $0xad8] sm:$0xff]  ;;  %v5409_v34 = vpack.c.bf16 %v3021_v47, %v3020_v0  ;;  %v3295_v0 = vld [vmem:[%s8332_s7 + $0x40] sm:$0xff]  ;;  %v3296_v47 = vld [vmem:[%s8332_s7 + $0x48] sm:$0xff] }
 0x444   :  { %5314 = vmatpush3.bf16.msra.mxu1 %v5313_v33  ;;  %v5361_v4 = vpack.c.bf16 %v2847_v5, %v2846_v7  ;;  %v5406_v33 = vpack.c.bf16 %v3019_v11, %v3018_v44  ;;  %v3023_v26 = vld [vmem:[%s8330_s3 + $0xbe8] sm:$0xff]  ;;  %v3201_v5 = vld [vmem:[%s8331_s5 + $0x40] sm:$0xff]  ;;  %v3293_v44 = vld [vmem:[%s8332_s7 + $0x30] sm:$0xff] }
 0x445   :  { %5315 = vmatprep.subr.bf16.mxu1 %v8345_v17  ;;  %v3294_v11 = vld [vmem:[%s8332_s7 + $0x38] sm:$0xff] }
 0x448   :  { %5317 = vmatpush3.bf16.msra.mxu1 %v5316_v10 }
 0x449   :  { %5318 = vmatprep.subr.bf16.mxu1 %v8345_v17 }
 0x44c   :  { %5320 = vmatpush3.bf16.msra.mxu1 %v5319_v46 }
 0x44d   :  { %5345 = vmatprep.subr.bf16.mxu1 %v8345_v17 }
 0x44f   :  { %4546 = vmatmul.mubr.f32.vlgmr.msra.gmra.mrb[32].mxu1 %v8363_v31 }
 0x450   :  { %5347 = vmatpush3.bf16.msra.mxu1 %v5346_v49  ;;  %4615 = vmatprep.mubr.msk.f32.mxu1 %vm5494_vm0, %v8344_v55  ;;  %v5415_v49 = vpack.c.bf16 %v3025_v35, %v3024_v19 }
 0x451   :  { %5348 = vmatprep.subr.bf16.mxu1 %v8345_v17 }
 0x454   :  { %5350 = vmatpush3.bf16.msra.mxu1 %v5349_v58 }
 0x455   :  { %5351 = vmatprep.subr.bf16.mxu1 %v8345_v17 }
 0x458   :  { %5353 = vmatpush3.bf16.msra.mxu1 %v5352_v39  ;;  %v3193_v39 = vld [vmem:[%s8331_s5] sm:$0xff] }
 0x459   :  { %5354 = vmatprep.subr.bf16.mxu1 %v8345_v17  ;;  %v5442_v62 = vpack.c.bf16 %v3194_v16, %v3193_v39 }
 0x45c   :  { %5356 = vmatpush3.bf16.msra.mxu1 %v5355_v48  ;;  %v3197_v48 = vld [vmem:[%s8331_s5 + $0x20] sm:$0xff] }
 0x45d   :  { %5357 = vmatprep.subr.bf16.mxu1 %v8345_v17  ;;  %v5448_v22 = vpack.c.bf16 %v3198_v27, %v3197_v48 }
 0x460   :  { %5359 = vmatpush3.bf16.msra.mxu1 %v5358_v2  ;;  %v3200_v2 = vld [vmem:[%s8331_s5 + $0x38] sm:$0xff] }
 0x461   :  { %5360 = vmatprep.subr.bf16.mxu1 %v8345_v17 }
 0x462   :  { %v1961_v52 = vpop.f32.mrb[20].mxu1 }
 0x463   :  { %v1965_v63 = vadd.f32 %v1961_v52, %v1878_v61  ;;  %v4232_v42 = vpop.f32.mrb[21].mxu1  ;;  %v3022_v61 = vld [vmem:[%s8330_s3 + $0xbe0] sm:$0xff]  ;;  %v3204_v52 = vld [vmem:[%s8331_s5 + $0x58] sm:$0xff] }
 0x464   :  { %5362 = vmatpush3.bf16.msra.mxu1 %v5361_v4  ;;  %v5412_v46 = vpack.c.bf16 %v3023_v26, %v3022_v61  ;;  %v3202_v4 = vld [vmem:[%s8331_s5 + $0x48] sm:$0xff]  ;;  %v3205_v42 = vld [vmem:[%s8331_s5 + $0x60] sm:$0xff]  ;;  %v3297_v61 = vld [vmem:[%s8332_s7 + $0x50] sm:$0xff] }
 0x465   :  { %5363 = vmatprep.subr.bf16.mxu1 %v8345_v17  ;;  %v5454_v43 = vpack.c.bf16 %v3202_v4, %v3201_v5  ;;  %v3298_v26 = vld [vmem:[%s8332_s7 + $0x58] sm:$0xff]  ;;  %v3388_v5 = vld [vmem:[%s8335_s8] ss:$0 sm:$0xff] }
 0x468   :  { %5365 = vmatpush3.bf16.msra.mxu1 %v5364_v32  ;;  %v3206_v32 = vld [vmem:[%s8331_s5 + $0x68] sm:$0xff] }
 0x469   :  { %5366 = vmatprep.subr.bf16.mxu1 %v8345_v17  ;;  %v5460_v23 = vpack.c.bf16 %v3206_v32, %v3205_v42 }
 0x46c   :  { %5368 = vmatpush3.bf16.msra.mxu1 %v5367_v54 }
 0x46d   :  { %5393 = vmatprep.subr.bf16.mxu1 %v8345_v17 }
 0x46f   :  { %4616 = vmatmul.mubr.f32.vlgmr.msra.gmra.mrb[34].mxu1 %v8364_v41  ;;  %v3287_v41 = vld [vmem:[%s8332_s7] sm:$0xff] }
 0x470   :  { %5395 = vmatpush3.bf16.msra.mxu1 %v5394_v8  ;;  %4685 = vmatprep.mubr.msk.f32.mxu1 %vm5494_vm0, %v8344_v55  ;;  %v3207_v8 = vld [vmem:[%s8331_s5 + $0x70] sm:$0xff] }
 0x471   :  { %5396 = vmatprep.subr.bf16.mxu1 %v8345_v17  ;;  %v5463_v18 = vpack.c.bf16 %v3208_v1, %v3207_v8 }
 0x474   :  { %5398 = vmatpush3.bf16.msra.mxu1 %v5397_v37  ;;  %v3289_v37 = vld [vmem:[%s8332_s7 + $0x10] sm:$0xff] }
 0x475   :  { %5399 = vmatprep.subr.bf16.mxu1 %v8345_v17 }
 0x478   :  { %5401 = vmatpush3.bf16.msra.mxu1 %v5400_v38  ;;  %v5469_v38 = vpack.c.bf16 %v3290_v56, %v3289_v37 }
 0x479   :  { %5402 = vmatprep.subr.bf16.mxu1 %v8345_v17 }
 0x47c   :  { %5404 = vmatpush3.bf16.msra.mxu1 %v5403_v30  ;;  %v5472_v30 = vpack.c.bf16 %v3292_v28, %v3291_v9 }
 0x47d   :  { %5405 = vmatprep.subr.bf16.mxu1 %v8345_v17 }
 0x480   :  { %5407 = vmatpush3.bf16.msra.mxu1 %v5406_v33  ;;  %v5475_v33 = vpack.c.bf16 %v3294_v11, %v3293_v44 }
 0x481   :  { %5408 = vmatprep.subr.bf16.mxu1 %v8345_v17 }
 0x482   :  { %v2048_v10 = vpop.f32.mrb[22].mxu1 }
 0x483   :  { %v2052_v45 = vadd.f32 %v2048_v10, %v1965_v63  ;;  %v4267_v3 = vpop.f32.mrb[23].mxu1  ;;  %v5457_v63 = vpack.c.bf16 %v3204_v52, %v3203_v53  ;;  %v5481_v10 = vpack.c.bf16 %v3298_v26, %v3297_v61 }
 0x484   :  { %5410 = vmatpush3.bf16.msra.mxu1 %v5409_v34  ;;  %v5478_v34 = vpack.c.bf16 %v3296_v47, %v3295_v0  ;;  %v3300_v3 = vld [vmem:[%s8332_s7 + $0x68] sm:$0xff] }
 0x485   :  { %5411 = vmatprep.subr.bf16.mxu1 %v8345_v17 }
 0x488   :  { %5413 = vmatpush3.bf16.msra.mxu1 %v5412_v46 }
 0x489   :  { %5414 = vmatprep.subr.bf16.mxu1 %v8345_v17 }
 0x48c   :  { %5416 = vmatpush3.bf16.msra.mxu1 %v5415_v49 }
 0x48d   :  { %5441 = vmatprep.subr.bf16.mxu1 %v8345_v17 }
 0x48f   :  { %4686 = vmatmul.mubr.f32.vlgmr.msra.gmra.mrb[36].mxu1 %v1009_v36  ;;  %v3196_v36 = vld [vmem:[%s8331_s5 + $0x18] sm:$0xff] }
 0x490   :  { %4755 = vmatprep.mubr.msk.f32.mxu1 %vm5494_vm0, %v8344_v55  ;;  %5443 = vmatpush3.bf16.msra.mxu1 %v5442_v62  ;;  %v5445_v24 = vpack.c.bf16 %v3196_v36, %v3195_v59 }
 0x491   :  { %5444 = vmatprep.subr.bf16.mxu1 %v8345_v17 }
 0x494   :  { %5446 = vmatpush3.bf16.msra.mxu1 %v5445_v24 }
 0x495   :  { %5447 = vmatprep.subr.bf16.mxu1 %v8345_v17 }
 0x498   :  { %5449 = vmatpush3.bf16.msra.mxu1 %v5448_v22  ;;  %v3387_v22 = vld [vmem:[%s8334_s6] ss:$0 sm:$0xff] }
 0x499   :  { %5450 = vmatprep.subr.bf16.mxu1 %v8345_v17 }
 0x4a2   :  { %v2135_v6 = vpop.f32.mrb[24].mxu1 }
 0x4a3   :  { %v2139_v25 = vadd.f32 %v2135_v6, %v2052_v45  ;;  %v4302_v31 = vpop.f32.mrb[25].mxu1  ;;  %v3299_v45 = vld [vmem:[%s8332_s7 + $0x60] sm:$0xff] }
 0x4a4   :  { %v5484_v49 = vpack.c.bf16 %v3300_v3, %v3299_v45 }
 0x4c2   :  { %v2222_v58 = vpop.f32.mrb[26].mxu1 }
 0x4c3   :  { %v2226_v57 = vadd.f32 %v2222_v58, %v2139_v25  ;;  %v4337_v40 = vpop.f32.mrb[27].mxu1 }
 0x4c5   :  { %v2313_v55 = vadd.f32 %v7603_v60, %v2226_v57  ;;  %v3199_v60 = vld [vmem:[%s8331_s5 + $0x30] sm:$0xff] }
 0x4c6   :  { %v5451_v7 = vpack.c.bf16 %v3200_v2, %v3199_v60 }
 0x4c8   :  { %5452 = vmatpush3.bf16.msra.mxu1 %v5451_v7 }
 0x4c9   :  { %5453 = vmatprep.subr.bf16.mxu1 %v8345_v17 }
 0x4cc   :  { %5455 = vmatpush3.bf16.msra.mxu1 %v5454_v43 }
 0x4cd   :  { %5456 = vmatprep.subr.bf16.mxu1 %v8345_v17 }
 0x4d0   :  { %5458 = vmatpush3.bf16.msra.mxu1 %v5457_v63 }
 0x4d1   :  { %5459 = vmatprep.subr.bf16.mxu1 %v8345_v17 }
 0x4d4   :  { %5461 = vmatpush3.bf16.msra.mxu1 %v5460_v23 }
 0x4d5   :  { %5462 = vmatprep.subr.bf16.mxu1 %v8345_v17 }
 0x4d8   :  { %5464 = vmatpush3.bf16.msra.mxu1 %v5463_v18 }
 0x4e2   :  { %v2396_v14 = vpop.f32.mrb[28].mxu1 }
 0x4e3   :  { %v2400_v54 = vadd.f32 %v2396_v14, %v2313_v55  ;;  %v4407_v29 = vpop.f32.mrb[29].mxu1 }
 0x4e5   :  { %v2487_v12 = vadd.f32 %v7666_v13, %v2400_v54  ;;  %v3288_v13 = vld [vmem:[%s8332_s7 + $0x8] sm:$0xff] }
 0x4e6   :  { %v5466_v50 = vpack.c.bf16 %v3288_v13, %v3287_v41 }
 0x4e8   :  { %5467 = vmatpush3.bf16.msra.mxu0 %v5466_v50 }
 0x4e9   :  { %5468 = vmatprep.subr.bf16.mxu0 %v8345_v17 }
 0x4ec   :  { %5470 = vmatpush3.bf16.msra.mxu0 %v5469_v38 }
 0x4ed   :  { %5471 = vmatprep.subr.bf16.mxu0 %v8345_v17 }
 0x4f0   :  { %5473 = vmatpush3.bf16.msra.mxu0 %v5472_v30 }
 0x4f1   :  { %5474 = vmatprep.subr.bf16.mxu0 %v8345_v17 }
 0x4f4   :  { %5476 = vmatpush3.bf16.msra.mxu0 %v5475_v33 }
 0x4f5   :  { %5477 = vmatprep.subr.bf16.mxu0 %v8345_v17 }
 0x4f8   :  { %5479 = vmatpush3.bf16.msra.mxu0 %v5478_v34 }
 0x4f9   :  { %5480 = vmatprep.subr.bf16.mxu0 %v8345_v17 }
 0x4fc   :  { %5482 = vmatpush3.bf16.msra.mxu0 %v5481_v10 }
 0x4fd   :  { %5483 = vmatprep.subr.bf16.mxu0 %v8345_v17 }
 0x500   :  { %5485 = vmatpush3.bf16.msra.mxu0 %v5484_v49 }
 0x501   :  { %5486 = vmatprep.subr.bf16.mxu0 %v8345_v17 }
 0x502   :  { %v2570_v46 = vpop.f32.mrb[30].mxu1 }
 0x503   :  { %v2574_v19 = vadd.f32 %v2570_v46, %v2487_v12  ;;  %v4477_v35 = vpop.f32.mrb[31].mxu1 }
 0x505   :  { %v2661_v6 = vadd.f32 %v7729_v51, %v2574_v19  ;;  %v3386_v51 = vld [vmem:[%s8333_s4] ss:$0 sm:$0xff] }
 0x522   :  { %v2744_v25 = vpop.f32.mrb[32].mxu1 }
 0x523   :  { %v2748_v31 = vadd.f32 %v2744_v25, %v2661_v6  ;;  %v4547_v58 = vpop.f32.mrb[33].mxu1 }
 0x525   :  { %v2835_v57 = vadd.f32 %v7792_v21, %v2748_v31  ;;  %v3301_v21 = vld [vmem:[%s8332_s7 + $0x70] sm:$0xff] }
 0x542   :  { %v2918_v40 = vpop.f32.mrb[34].mxu1 }
 0x543   :  { %v2922_v39 = vadd.f32 %v2918_v40, %v2835_v57  ;;  %v4617_v16 = vpop.f32.mrb[35].mxu1 }
 0x545   :  { %v3009_v59 = vadd.f32 %v7855_v15, %v2922_v39  ;;  %v3302_v15 = vld [vmem:[%s8332_s7 + $0x78] sm:$0xff] }
 0x546   :  { %v5487_v27 = vpack.c.bf16 %v3302_v15, %v3301_v21 }
 0x548   :  { %5488 = vmatpush3.bf16.msra.mxu0 %v5487_v27 }
 0x562   :  { %v3092_v55 = vpop.f32.mrb[36].mxu1 }
 0x563   :  { %v3096_v62 = vadd.f32 %v3092_v55, %v3009_v59  ;;  %v4687_v36 = vpop.f32.mrb[37].mxu1 }
 0x565   :  { %v3183_v24 = vadd.f32 %v7918_v20, %v3096_v62 }
 0x567   :  { %v3191_v17 = vadd.f32 %v3386_v51, %v3183_v24 }
 0x569   :  { %v3192_v48 = vmax.f32 %v3191_v17, 0.0 }
 0x56b   :  { %4756 = vmatmul.mubr.f32.vlgmr.msra.gmra.mrb[38].mxu1 %v3192_v48 }
 0x63e   :  { %v3282_v60 = vpop.f32.mrb[38].mxu1 }
 0x63f   :  { %v3283_v2 = vadd.f32 %v3387_v22, %v3282_v60  ;;  %v4757_v20 = vpop.f32.mrb[39].mxu1 }
 0x641   :  { %v3286_v7 = vmax.f32 %v3283_v2, 0.0 }
 0x643   :  { %4791 = vmatmul.mubr.f32.vlgmr.msra.gmra.mrb[212].mxu0 %v3286_v7 }
 0x716   :  { %v3376_v4 = vpop.f32.mrb[212].mxu0 }
 0x717   :  { %v3377_v43 = vadd.f32 %v3388_v5, %v3376_v4  ;;  %v4792_v53 = vpop.f32.mrb[213].mxu0 }
 0x719   :  { %3380 = vst [vmem:[%s8336_s9] sm:$0xff] %v3377_v43 }

</bundles_post_ra>
